<compile_context>
chip_gen: v5e
topology: v5e:2x2
jax: 0.10.0
libtpu: 0.0.40
codegen_flags: <defaults>
</compile_context>

<pallas_src>
import functools
import math

import jax
import jax.numpy as jnp
from jax import lax
from jax.experimental import pallas as pl
from jax.experimental.pallas import tpu as pltpu


def _round_up(x, m):
    return (x + m - 1) // m * m


def _hw_config():
    """Per-generation VMEM limit / max GEMM tile (budget v7x at 64 MiB/TC)."""
    vmem_cap = None
    try:
        info = pltpu.get_tpu_info()
        vmem_cap = getattr(info, "vmem_capacity_bytes", None)
    except Exception:
        vmem_cap = None
    if not vmem_cap:
        vmem_cap = 64 * 1024 * 1024                  # conservative fallback (v7x-sized)
    vmem_limit = min(int(vmem_cap) * 3 // 4, 96 * 1024 * 1024)
    max_tile = 512 if vmem_cap > 64 * 1024 * 1024 else 256
    return vmem_limit, max_tile


_VMEM_LIMIT, _TMAX = _hw_config()
_TM = _TN = _TK = _TMAX


def _pick_tile(dim_p, max_t):
    """Largest 128-multiple tile <= max_t that divides dim_p (dim_p is a 128-multiple)."""
    t = min(max_t, dim_p)
    while dim_p % t:
        t -= 128
    return t


def _apply_act(y, act):
    if act == "relu":
        return jnp.maximum(y, 0.0)
    if act == "quick_gelu":
        return y * jax.nn.sigmoid(1.702 * y)
    return y


# ------------------------- tiled fused matmul (GEMM) -------------------------

def _matmul_kernel(x_ref, w_ref, b_ref, *rest, act, has_res):
    if has_res:
        r_ref, o_ref, acc_ref = rest
    else:
        o_ref, acc_ref = rest
    k = pl.program_id(2)

    @pl.when(k == 0)
    def _init():
        acc_ref[...] = jnp.zeros_like(acc_ref)

    acc_ref[...] += jnp.dot(x_ref[...], w_ref[...],
                            preferred_element_type=jnp.float32)

    @pl.when(k == pl.num_programs(2) - 1)
    def _finalize():
        y = _apply_act(acc_ref[...] + b_ref[...], act)
        if has_res:
            y = y + r_ref[...].astype(jnp.float32)       # residual add in f32
        o_ref[...] = y.astype(o_ref.dtype)


def linear(x, lp, act="none", residual=None):
    """y = act(x @ w + b) [+ residual]; weights pre-padded; bf16 out, f32 acc."""
    w, b = lp["w"], lp["b"]                              # (Kp, Np) bf16, (1, Np) f32
    Kp, Np = w.shape
    lead = x.shape[:-1]
    x2 = x.reshape(-1, x.shape[-1])
    if x2.shape[-1] != Kp:                               # only conv features need this
        x2 = jnp.pad(x2, ((0, 0), (0, Kp - x2.shape[-1])))
    x2 = x2.astype(jnp.bfloat16)
    M = x2.shape[0]
    tm = min(_TM, _round_up(M, 8))
    Mp = _round_up(M, tm)
    if Mp != M:
        x2 = jnp.pad(x2, ((0, Mp - M), (0, 0)))
    tn = _pick_tile(Np, _TN)
    tk = _pick_tile(Kp, _TK)

    operands = [x2, w, b]
    in_specs = [
        pl.BlockSpec((tm, tk), lambda i, j, k: (i, k)),
        pl.BlockSpec((tk, tn), lambda i, j, k: (k, j)),
        pl.BlockSpec((1, tn), lambda i, j, k: (0, j)),
    ]
    if residual is not None:
        r2 = residual.reshape(-1, residual.shape[-1]).astype(jnp.bfloat16)
        if Mp != M:
            r2 = jnp.pad(r2, ((0, Mp - M), (0, 0)))
        operands.append(r2)
        in_specs.append(pl.BlockSpec((tm, tn), lambda i, j, k: (i, j)))

    out = pl.pallas_call(
        functools.partial(_matmul_kernel, act=act, has_res=residual is not None),
        grid=(Mp // tm, Np // tn, Kp // tk),
        in_specs=in_specs,
        out_specs=pl.BlockSpec((tm, tn), lambda i, j, k: (i, j)),
        out_shape=jax.ShapeDtypeStruct((Mp, Np), jnp.bfloat16),
        scratch_shapes=[pltpu.VMEM((tm, tn), jnp.float32)],
        compiler_params=pltpu.CompilerParams(
            dimension_semantics=("parallel", "parallel", "arbitrary"),
            vmem_limit_bytes=_VMEM_LIMIT),
        cost_estimate=pl.CostEstimate(
            flops=2 * Mp * Np * Kp, transcendentals=0,
            bytes_accessed=2 * (Mp * Kp + Kp * Np + Mp * Np)),
    )(*operands)
    if Mp != M:
        out = out[:M]
    return out.reshape(lead + (Np,))


# --------------------- fused LayerNorm + matmul (+ act) ----------------------

def _ln_matmul_kernel(x_ref, g_ref, bl_ref, w_ref, b_ref, o_ref, xn_ref, *,
                      act, d_true, eps):
    # LN is computed once per row tile (j == 0) and cached in a bf16 VMEM scratch
    # that is reused for every output-column tile (j inner grid axis).
    @pl.when(pl.program_id(1) == 0)
    def _normalize():
        x = x_ref[...].astype(jnp.float32)               # (tm, Kp); padded cols are 0
        inv_d = 1.0 / d_true
        mu = jnp.sum(x, axis=-1, keepdims=True) * inv_d
        xc = x - mu
        col = lax.broadcasted_iota(jnp.int32, x.shape, 1)
        xc_valid = jnp.where(col < d_true, xc, 0.0)      # two-pass var, mask padded cols
        var = jnp.sum(xc_valid * xc_valid, axis=-1, keepdims=True) * inv_d
        xn = xc * lax.rsqrt(var + eps) * g_ref[...] + bl_ref[...]   # padded gamma=0 -> 0
        xn_ref[...] = xn.astype(jnp.bfloat16)

    y = jnp.dot(xn_ref[...], w_ref[...], preferred_element_type=jnp.float32) + b_ref[...]
    o_ref[...] = _apply_act(y, act).astype(o_ref.dtype)


def ln_linear(x, lnp, lp, d_true, act="none", eps=1e-5):
    """y = act(LayerNorm(x) @ w + b); LN stats over the true feature dim only."""
    w, b = lp["w"], lp["b"]
    Kp, Np = w.shape
    g, bl = lnp["g"], lnp["b"]
    lead = x.shape[:-1]
    x2 = x.reshape(-1, x.shape[-1])
    if x2.shape[-1] != Kp:
        x2 = jnp.pad(x2, ((0, 0), (0, Kp - x2.shape[-1])))
    x2 = x2.astype(jnp.bfloat16)
    M = x2.shape[0]
    tm = min(_TM, _round_up(M, 8))
    Mp = _round_up(M, tm)
    if Mp != M:
        x2 = jnp.pad(x2, ((0, Mp - M), (0, 0)))
    tn = _pick_tile(Np, _TN)

    out = pl.pallas_call(
        functools.partial(_ln_matmul_kernel, act=act, d_true=int(d_true), eps=eps),
        grid=(Mp // tm, Np // tn),
        in_specs=[
            pl.BlockSpec((tm, Kp), lambda i, j: (i, 0)),
            pl.BlockSpec((1, Kp), lambda i, j: (0, 0)),
            pl.BlockSpec((1, Kp), lambda i, j: (0, 0)),
            pl.BlockSpec((Kp, tn), lambda i, j: (0, j)),
            pl.BlockSpec((1, tn), lambda i, j: (0, j)),
        ],
        out_specs=pl.BlockSpec((tm, tn), lambda i, j: (i, j)),
        out_shape=jax.ShapeDtypeStruct((Mp, Np), jnp.bfloat16),
        scratch_shapes=[pltpu.VMEM((tm, Kp), jnp.bfloat16)],
        compiler_params=pltpu.CompilerParams(
            dimension_semantics=("parallel", "arbitrary"),
            vmem_limit_bytes=_VMEM_LIMIT),
        cost_estimate=pl.CostEstimate(
            flops=2 * Mp * Np * Kp + 8 * Mp * Kp, transcendentals=Mp,
            bytes_accessed=2 * (Mp * Kp + Kp * Np + Mp * Np)),
    )(x2, g, bl, w, b)
    if Mp != M:
        out = out[:M]
    return out.reshape(lead + (Np,))


# ------------------------ multi-head attention kernel ------------------------

def _mha_kernel(*refs, num_heads, d_head, d_pad, scale, causal, has_mask, out_probs):
    qkv_ref = refs[0]
    i = 1
    m_ref = None
    if has_mask:
        m_ref = refs[i]
        i += 1
    o_ref = refs[i]
    i += 1
    p_ref = None
    if out_probs:
        p_ref = refs[i]
        i += 1
    o_acc = refs[i]                                     # (Sp, Dp) f32 VMEM scratch

    Sp = qkv_ref.shape[0]
    qkv = qkv_ref[...]                                  # (Sp, 3*Dp) bf16

    keep = None
    if has_mask:
        keep = m_ref[...] >= 0.5                        # (1, Sp) key-keep mask
    if causal:
        row = lax.broadcasted_iota(jnp.int32, (Sp, Sp), 0)
        col = lax.broadcasted_iota(jnp.int32, (Sp, Sp), 1)
        cm = row >= col
        keep = cm if keep is None else jnp.logical_and(keep, cm)

    o_acc[...] = jnp.zeros_like(o_acc)                  # padded feature cols stay 0
    neg = jnp.float32(-1e9)
    # TODO(synk): for long visual sequences, tile the key dim flash-style and move
    # the head loop onto a grid axis; at these sizes the unrolled loop is fine.
    for h in range(num_heads):
        lo = h * d_head
        qh = qkv[:, lo:lo + d_head]
        kh = qkv[:, d_pad + lo:d_pad + lo + d_head]
        vh = qkv[:, 2 * d_pad + lo:2 * d_pad + lo + d_head]
        # bf16 MXU matmul, f32 accumulation; no k transpose materialized.
        s = lax.dot_general(qh, kh, (((1,), (1,)), ((), ())),
                            preferred_element_type=jnp.float32) * scale
        if keep is not None:
            s = jnp.where(keep, s, neg)
        s = s - jnp.max(s, axis=-1, keepdims=True)
        e = jnp.exp(s)
        denom = jnp.sum(e, axis=-1, keepdims=True)
        # exact reciprocal when probs are returned (rows must sum to ~1); approx else.
        p = e * pl.reciprocal(denom, approx=not out_probs)
        if out_probs:
            p_ref[h, :, :] = p.astype(p_ref.dtype)
        o_acc[:, lo:lo + d_head] = jnp.dot(p.astype(jnp.bfloat16), vh,
                                           preferred_element_type=jnp.float32)
    o_ref[...] = o_acc[...].astype(o_ref.dtype)          # single lane-dense store


def mha(qkv, key_mask3, num_heads, d_true, d_pad, causal, return_probs):
    """qkv: (B, Sp, 3*Dp) bf16; key_mask3: (B, 1, Sp) float or None."""
    B, Sp, three_dp = qkv.shape
    d_head = d_true // num_heads
    scale = 1.0 / math.sqrt(d_head)

    in_specs = [pl.BlockSpec((None, Sp, three_dp), lambda b: (b, 0, 0))]
    operands = [qkv]
    if key_mask3 is not None:
        in_specs.append(pl.BlockSpec((None, 1, Sp), lambda b: (b, 0, 0)))
        operands.append(key_mask3)

    o_spec = pl.BlockSpec((None, Sp, d_pad), lambda b: (b, 0, 0))
    o_shape = jax.ShapeDtypeStruct((B, Sp, d_pad), jnp.bfloat16)
    if return_probs:
        out_specs = (o_spec,
                     pl.BlockSpec((None, num_heads, Sp, Sp), lambda b: (b, 0, 0, 0)))
        out_shape = (o_shape,
                     jax.ShapeDtypeStruct((B, num_heads, Sp, Sp), jnp.bfloat16))
    else:
        out_specs = o_spec
        out_shape = o_shape

    res = pl.pallas_call(
        functools.partial(_mha_kernel, num_heads=num_heads, d_head=d_head,
                          d_pad=d_pad, scale=scale, causal=causal,
                          has_mask=key_mask3 is not None, out_probs=return_probs),
        grid=(B,),
        in_specs=in_specs,
        out_specs=out_specs,
        out_shape=out_shape,
        scratch_shapes=[pltpu.VMEM((Sp, d_pad), jnp.float32)],
        compiler_params=pltpu.CompilerParams(
            dimension_semantics=("parallel",),
            vmem_limit_bytes=_VMEM_LIMIT),
    )(*operands)
    if return_probs:
        return res[0], res[1]
    return res, None


def transformer_block(x, key_mask3, blk, num_heads, d_true, ffn_act, causal,
                      return_probs):
    """Pre-norm block: fused LN1+QKV, MHA, out-proj(+res), fused LN2+FFN1, FFN2(+res)."""
    d_pad = x.shape[-1]
    qkv = ln_linear(x, blk["ln1"], blk["wqkv"], d_true)          # (B, S, 3*Dp) bf16
    a, probs = mha(qkv, key_mask3, num_heads, d_true, d_pad, causal, return_probs)
    x = linear(a, blk["wo"], residual=x)
    h = ln_linear(x, blk["ln2"], blk["ff1"], d_true, act=ffn_act)
    x = linear(h, blk["ff2"], residual=x)
    return x, probs


# -------------------- fused 3-layer prediction-head kernel -------------------

def _head_kernel(x_ref, w1_ref, b1_ref, w2_ref, b2_ref, w3_ref, b3_ref, o_ref):
    h = jnp.maximum(jnp.dot(x_ref[...], w1_ref[...],
                            preferred_element_type=jnp.float32) + b1_ref[...], 0.0)
    h = jnp.maximum(jnp.dot(h.astype(jnp.bfloat16), w2_ref[...],
                            preferred_element_type=jnp.float32) + b2_ref[...], 0.0)
    o_ref[...] = (jnp.dot(h.astype(jnp.bfloat16), w3_ref[...],
                          preferred_element_type=jnp.float32) + b3_ref[...])


def prediction_head(x, hp):
    """All three head GEMMs in a single Pallas invocation (micro-GEMM fusion)."""
    w1, b1 = hp["l1"]["w"], hp["l1"]["b"]
    w2, b2 = hp["l2"]["w"], hp["l2"]["b"]
    w3, b3 = hp["l3"]["w"], hp["l3"]["b"]
    Dp = w1.shape[0]
    Np = w3.shape[1]
    B = x.shape[0]
    Mp = _round_up(B, 8)
    x2 = x.reshape(B, -1)
    if x2.shape[-1] != Dp:
        x2 = jnp.pad(x2, ((0, 0), (0, Dp - x2.shape[-1])))
    x2 = jnp.pad(x2.astype(jnp.bfloat16), ((0, Mp - B), (0, 0)))
    out = pl.pallas_call(
        _head_kernel,
        grid=(1,),
        in_specs=[pl.BlockSpec((Mp, Dp), lambda i: (0, 0)),
                  pl.BlockSpec((Dp, Dp), lambda i: (0, 0)),
                  pl.BlockSpec((1, Dp), lambda i: (0, 0)),
                  pl.BlockSpec((Dp, Dp), lambda i: (0, 0)),
                  pl.BlockSpec((1, Dp), lambda i: (0, 0)),
                  pl.BlockSpec((Dp, Np), lambda i: (0, 0)),
                  pl.BlockSpec((1, Np), lambda i: (0, 0))],
        out_specs=pl.BlockSpec((Mp, Np), lambda i: (0, 0)),
        out_shape=jax.ShapeDtypeStruct((Mp, Np), jnp.float32),
        compiler_params=pltpu.CompilerParams(
            dimension_semantics=("arbitrary",),
            vmem_limit_bytes=_VMEM_LIMIT),
    )(x2, w1, b1, w2, b2, w3, b3)
    return out[:B, :4]


# ----------------------- conv stem (BN folded at prep) -----------------------

def conv_bn_relu(x, cp, stride):
    """3x3 Conv (bias=False) + folded eval BatchNorm + ReLU (NHWC)."""
    # TODO(synk): the conv itself stays on lax.conv_general_dilated (no 9x im2col
    # duplication); bias+ReLU is plain jnp so XLA fuses it into the conv epilogue.
    y = lax.conv_general_dilated(
        x, cp["w"], window_strides=(stride, stride), padding=((1, 1), (1, 1)),
        dimension_numbers=("NHWC", "HWIO", "NHWC"))
    return jnp.maximum(y + cp["b"], 0.0)


def avg_pool2(x):
    B, H, W, C = x.shape
    return x.reshape(B, H // 2, 2, W // 2, 2, C).mean(axis=(2, 4))


def adaptive_avg_pool(x, th, tw):
    B, H, W, C = x.shape
    return x.reshape(B, th, H // th, tw, W // tw, C).mean(axis=(2, 4))


# ------------------------------ CLIP surrogate -------------------------------

def clip_visual_forward(image_nchw, p):
    """modified_visual_forward with concat=True (scaled down). Returns NHWC."""
    x = jnp.transpose(image_nchw, (0, 2, 3, 1))          # NCHW -> NHWC
    x = conv_bn_relu(x, p["conv1"], stride=2)
    x = conv_bn_relu(x, p["conv2"], stride=1)
    x = conv_bn_relu(x, p["conv3"], stride=1)
    x = avg_pool2(x)
    # TODO(synk): CLIP's ResNet stages are Bottleneck stacks; approximated here by a
    # single conv+BN+ReLU per stage with the same stride/channel-growth schedule.
    x1 = conv_bn_relu(x, p["layer1"], stride=1)
    x2 = conv_bn_relu(x1, p["layer2"], stride=2)
    x3 = conv_bn_relu(x2, p["layer3"], stride=2)
    x4 = conv_bn_relu(x3, p["layer4"], stride=1)
    th, tw = x4.shape[1], x4.shape[2]
    cat = jnp.concatenate(
        [adaptive_avg_pool(x1, th, tw),
         adaptive_avg_pool(x2, th, tw),
         adaptive_avg_pool(x3, th, tw),
         x4], axis=-1)
    return cat                                           # (B, h, w, C) NHWC


def clip_encode_text(text_ids, p, num_heads, w_true):
    """modified_encode_text: tok+pos emb + causal pre-norm transformer + ln + proj."""
    x = p["token_embedding"][text_ids]                   # gather on padded table
    x = (x + p["positional_embedding"][None]).astype(jnp.bfloat16)
    for blk in p["blocks"]:
        x, _ = transformer_block(x, None, blk, num_heads, w_true, "quick_gelu",
                                 causal=True, return_probs=False)
    # fused ln_final + (x @ text_projection), zero bias
    return ln_linear(x, p["ln_final"], p["text_projection"], w_true)


# --------------------------- encoder stack + head ----------------------------

def sinusoidal_pe(seq_len, d_model):
    pos = jnp.arange(seq_len, dtype=jnp.float32)[:, None]
    i = jnp.arange(0, d_model, 2, dtype=jnp.float32)[None, :]
    div = jnp.exp(-jnp.log(10000.0) * i / d_model)
    pe = jnp.zeros((seq_len, d_model), jnp.float32)
    pe = pe.at[:, 0::2].set(jnp.sin(pos * div))
    pe = pe.at[:, 1::2].set(jnp.cos(pos * div))
    return pe


def encoder_stack(x, key_mask3, layers, num_heads, d_true):
    # TODO(synk): build_encoder_stack internals are not given; standard pre-norm
    # encoder (MHA + ReLU FFN) is used, dropout omitted (inference).
    attn_all = []
    for lp in layers:
        x, probs = transformer_block(x, key_mask3, lp, num_heads, d_true, "relu",
                                     causal=False, return_probs=True)
        attn_all.append(probs)
    return x, jnp.stack(attn_all)


def vlt_forward(prep, image, text, *, cfg):
    image_embeds = clip_visual_forward(image, prep["clip_visual"])        # (B, h, w, C)
    textual_mask = jnp.where(text != 0, 1.0, 0.0).astype(jnp.float32)     # (B, St)
    text_embeds = clip_encode_text(text, prep["clip_text"], cfg["text_heads"],
                                   cfg["text_width"])

    B, hh, ww, C = image_embeds.shape
    image_feat = image_embeds.reshape(B, hh * ww, C)     # == flatten(2).permute(0,2,1)
    if C == cfg["visual_c4"]:
        projected_visual = linear(image_feat, prep["visual_proj"])
    else:
        projected_visual = linear(image_feat, prep["richer_visual_proj"])
    projected_textual = linear(text_embeds, prep["textual_proj"])

    d_true = cfg["d_model"]
    d_pad = projected_textual.shape[-1]
    reg_token = jnp.zeros((B, 1, d_pad), projected_textual.dtype)
    x = jnp.concatenate([projected_visual, projected_textual, reg_token], axis=1)
    S = x.shape[1]
    pe = jnp.pad(sinusoidal_pe(S, d_true), ((0, 0), (0, d_pad - d_true)))
    x = (x.astype(jnp.float32) + pe[None]).astype(jnp.bfloat16)

    visual_mask = jnp.ones((B, projected_visual.shape[1]), jnp.float32)
    reg_mask = jnp.ones((B, 1), jnp.float32)
    key_mask = jnp.concatenate([visual_mask, textual_mask, reg_mask], axis=1)  # (B, S)

    # Pad the sequence once; padded keys are masked so real rows are exact.
    Sp = _round_up(S, 8)
    if Sp != S:
        x = jnp.pad(x, ((0, 0), (0, Sp - S), (0, 0)))
        key_mask = jnp.pad(key_mask, ((0, 0), (0, Sp - S)))
    key_mask3 = key_mask[:, None, :]                     # (B, 1, Sp) — no (B,Sp,Sp) mask

    out, all_attn = encoder_stack(x, key_mask3, prep["encoder_layers"],
                                  cfg["enc_heads"], d_true)
    all_attn = all_attn[..., :S, :S]
    educated_reg_token = out[:, S - 1, :]
    predicted_bbox = prediction_head(educated_reg_token, prep["head"])
    return predicted_bbox, all_attn


# --------------------------- parameter preparation ---------------------------

def prepare_params(params, cfg):
    """One-time weight prep: fold BN, pre-concat QKV, pre-pad everything to 128s."""
    def prep_linear(w, b):
        K, N = w.shape
        Kp, Np = _round_up(K, 128), _round_up(N, 128)
        return {"w": jnp.pad(w.astype(jnp.bfloat16), ((0, Kp - K), (0, Np - N))),
                "b": jnp.pad(b.astype(jnp.float32).reshape(1, N), ((0, 0), (0, Np - N)))}

    def prep_ln(g, b):
        K = g.shape[0]
        Kp = _round_up(K, 128)
        return {"g": jnp.pad(g.astype(jnp.float32).reshape(1, K), ((0, 0), (0, Kp - K))),
                "b": jnp.pad(b.astype(jnp.float32).reshape(1, K), ((0, 0), (0, Kp - K)))}

    def prep_qkv(attn, d):
        dp = _round_up(d, 128)
        ws, bs = [], []
        for n in ("q", "k", "v"):                    # pad each to Dp so splits are aligned
            ws.append(jnp.pad(attn["w" + n].astype(jnp.bfloat16),
                              ((0, dp - d), (0, dp - d))))
            bs.append(jnp.pad(attn["b" + n].astype(jnp.float32).reshape(1, d),
                              ((0, 0), (0, dp - d))))
        return {"w": jnp.concatenate(ws, axis=1), "b": jnp.concatenate(bs, axis=1)}

    def prep_block(blk, d, w1, b1, w2, b2):
        return {"ln1": prep_ln(blk["ln1_g"], blk["ln1_b"]),
                "ln2": prep_ln(blk["ln2_g"], blk["ln2_b"]),
                "wqkv": prep_qkv(blk["attn"], d),
                "wo": prep_linear(blk["attn"]["wo"], blk["attn"]["bo"]),
                "ff1": prep_linear(w1, b1),
                "ff2": prep_linear(w2, b2)}

    def prep_conv(cp):
        scale = cp["bn_g"] * lax.rsqrt(cp["bn_var"] + 1e-5)
        w_f = cp["w"] * scale[:, None, None, None]
        return {"w": jnp.transpose(w_f, (2, 3, 1, 0)).astype(jnp.float32),
                "b": (cp["bn_b"] - cp["bn_mean"] * scale).astype(jnp.float32)}

    W = cfg["text_width"]
    Wp = _round_up(W, 128)
    ct = params["clip_text"]
    d = cfg["d_model"]
    E = cfg["text_embed_dim"]

    # TODO(synk): on v7x the frozen CLIP projection/FFN weights could be fp8-quantized
    # for ~2x MXU throughput; kept bf16 here for cross-generation simplicity.
    return {
        "clip_visual": {k: prep_conv(v) for k, v in params["clip_visual"].items()},
        "clip_text": {
            "token_embedding": jnp.pad(ct["token_embedding"].astype(jnp.float32),
                                       ((0, 0), (0, Wp - W))),
            "positional_embedding": jnp.pad(ct["positional_embedding"].astype(jnp.float32),
                                            ((0, 0), (0, Wp - W))),
            "blocks": [prep_block(b, W, b["fc_w"], b["fc_b"], b["proj_w"], b["proj_b"])
                       for b in ct["blocks"]],
            "ln_final": prep_ln(ct["ln_final_g"], ct["ln_final_b"]),
            "text_projection": prep_linear(ct["text_projection"],
                                           jnp.zeros((E,), jnp.float32)),
        },
        "visual_proj": prep_linear(params["visual_proj"]["w"], params["visual_proj"]["b"]),
        "richer_visual_proj": prep_linear(params["richer_visual_proj"]["w"],
                                          params["richer_visual_proj"]["b"]),
        "textual_proj": prep_linear(params["textual_proj"]["w"], params["textual_proj"]["b"]),
        "encoder_layers": [prep_block(l, d, l["ff1_w"], l["ff1_b"], l["ff2_w"], l["ff2_b"])
                           for l in params["encoder_layers"]],
        "head": {"l1": prep_linear(params["head"]["w1"], params["head"]["b1"]),
                 "l2": prep_linear(params["head"]["w2"], params["head"]["b2"]),
                 "l3": prep_linear(params["head"]["w3"], params["head"]["b3"])},
    }


# -------------------------------- param init ---------------------------------

def init_params(key, cfg):
    keys = iter(jax.random.split(key, 512))

    def nk():
        return next(keys)

    def lin(i, o, s=0.05):
        return {"w": jax.random.normal(nk(), (i, o), jnp.float32) * s,
                "b": jax.random.normal(nk(), (o,), jnp.float32) * 0.01}

    def conv(ci, co):
        return {"w": jax.random.normal(nk(), (co, ci, 3, 3), jnp.float32) * 0.1,
                "bn_g": 1.0 + 0.1 * jax.random.normal(nk(), (co,), jnp.float32),
                "bn_b": 0.1 * jax.random.normal(nk(), (co,), jnp.float32),
                "bn_mean": 0.1 * jax.random.normal(nk(), (co,), jnp.float32),
                "bn_var": 1.0 + 0.1 * jax.random.uniform(nk(), (co,), jnp.float32)}

    def attn_p(d):
        a = {}
        for name in ("q", "k", "v", "o"):
            l = lin(d, d)
            a["w" + name], a["b" + name] = l["w"], l["b"]
        return a

    def enc_layer(d, d_ff):
        ff1, ff2 = lin(d, d_ff), lin(d_ff, d)
        return {"ln1_g": jnp.ones((d,), jnp.float32), "ln1_b": jnp.zeros((d,), jnp.float32),
                "ln2_g": jnp.ones((d,), jnp.float32), "ln2_b": jnp.zeros((d,), jnp.float32),
                "attn": attn_p(d),
                "ff1_w": ff1["w"], "ff1_b": ff1["b"],
                "ff2_w": ff2["w"], "ff2_b": ff2["b"]}

    def text_block(w):
        fc, pj = lin(w, 4 * w), lin(4 * w, w)
        return {"ln1_g": jnp.ones((w,), jnp.float32), "ln1_b": jnp.zeros((w,), jnp.float32),
                "ln2_g": jnp.ones((w,), jnp.float32), "ln2_b": jnp.zeros((w,), jnp.float32),
                "attn": attn_p(w),
                "fc_w": fc["w"], "fc_b": fc["b"],
                "proj_w": pj["w"], "proj_b": pj["b"]}

    s1, s2, s3 = cfg["stem"]
    c1, c2, c3, c4 = cfg["stages"]
    W = cfg["text_width"]
    d = cfg["d_model"]

    params = {
        "clip_visual": {"conv1": conv(3, s1), "conv2": conv(s1, s2), "conv3": conv(s2, s3),
                        "layer1": conv(s3, c1), "layer2": conv(c1, c2),
                        "layer3": conv(c2, c3), "layer4": conv(c3, c4)},
        "clip_text": {
            "token_embedding": jax.random.normal(nk(), (cfg["text_vocab"], W), jnp.float32) * 0.02,
            "positional_embedding": jax.random.normal(nk(), (cfg["text_seq"], W), jnp.float32) * 0.01,
            "blocks": [text_block(W) for _ in range(cfg["text_layers"])],
            "ln_final_g": jnp.ones((W,), jnp.float32),
            "ln_final_b": jnp.zeros((W,), jnp.float32),
            "text_projection": jax.random.normal(nk(), (W, cfg["text_embed_dim"]), jnp.float32) * 0.05,
        },
        "visual_proj": lin(c4, d),
        "richer_visual_proj": lin(c1 + c2 + c3 + c4, d),
        "textual_proj": lin(cfg["text_embed_dim"], d),
        "encoder_layers": [enc_layer(d, cfg["d_ff"]) for _ in range(cfg["num_encoders"])],
        "head": {},
    }
    h1, h2, h3 = lin(d, d), lin(d, d), lin(d, 4)
    params["head"] = {"w1": h1["w"], "b1": h1["b"],
                      "w2": h2["w"], "b2": h2["b"],
                      "w3": h3["w"], "b3": h3["b"]}
    return params


# ------------------------------------ main ------------------------------------

if __name__ == "__main__":
    cfg = dict(
        num_encoders=2, d_model=32, enc_heads=4, d_ff=64,          # VLT (256/8/2048 scaled down)
        text_vocab=50, text_seq=8, text_width=48, text_heads=4,    # CLIP text surrogate
        text_layers=2, text_embed_dim=64,
        stem=(8, 8, 16), stages=(16, 32, 64, 128),                 # CLIP visual surrogate
        visual_c4=128,
    )
    key = jax.random.PRNGKey(0)
    kp, ki, kt = jax.random.split(key, 3)
    params = init_params(kp, cfg)
    prep = prepare_params(params, cfg)                             # one-time weight prep

    B = 2
    image = jax.random.normal(ki, (B, 3, 32, 32), jnp.float32)     # NCHW like PyTorch
    text = jax.random.randint(kt, (B, cfg["text_seq"]), 1, cfg["text_vocab"]).astype(jnp.int32)
    text = text.at[:, 6:].set(0)                                   # padding -> textual_mask zeros

    forward = jax.jit(functools.partial(vlt_forward, cfg=cfg))
    bbox, all_heads_attention = forward(prep, image, text)
    jax.block_until_ready((bbox, all_heads_attention))

    total_seq = 2 * 2 + cfg["text_seq"] + 1                        # visual tokens + text + reg
    assert bbox.shape == (B, 4)
    assert all_heads_attention.shape == (cfg["num_encoders"], B, cfg["enc_heads"],
                                         total_seq, total_seq)
    assert bool(jnp.all(jnp.isfinite(bbox)))
    assert bool(jnp.all(jnp.isfinite(all_heads_attention.astype(jnp.float32))))
    print("KERNEL_OK")
</pallas_src>

<mosaic_0001>
module attributes {stable_mosaic.version = 11 : i64} {
  func.func @_mha_kernel(%arg0: i32, %arg1: memref<1x8x384xbf16, #tpu.memory_space<vmem>>, %arg2: memref<1x8x128xbf16, #tpu.memory_space<vmem>>, %arg3: memref<8x128xf32, #tpu.memory_space<vmem>>) attributes {dimension_semantics = [#tpu.dimension_semantics<parallel>], iteration_bounds = array<i64: 2>, scalar_prefetch = 0 : i64, scratch_operands = 1 : i64, tpu.core_type = #tpu.core_type<tc>, window_params = [{transform_indices = @transform_0, window_bounds = array<i64: 1, 8, 384>}, {transform_indices = @transform_1, window_bounds = array<i64: 1, 8, 128>}]} {
    %c0 = arith.constant 0 : index
    %c0_0 = arith.constant 0 : index
    %c0_1 = arith.constant 0 : index
    %0 = vector.load %arg1[%c0, %c0_0, %c0_1] : memref<1x8x384xbf16, #tpu.memory_space<vmem>>, vector<1x8x384xbf16>
    %1 = vector.shape_cast %0 : vector<1x8x384xbf16> to vector<8x384xbf16>
    %2 = tpu.iota {dimensions = array<i32: 0>} : vector<8x8xi32>
    %3 = tpu.iota {dimensions = array<i32: 1>} : vector<8x8xi32>
    %4 = arith.cmpi sge, %2, %3 : vector<8x8xi32>
    %cst = arith.constant 0.000000e+00 : f32
    %5 = vector.broadcast %cst : f32 to vector<8x128xf32>
    %c0_2 = arith.constant 0 : index
    %c0_3 = arith.constant 0 : index
    %6 = vector.load %arg3[%c0_2, %c0_3] : memref<8x128xf32, #tpu.memory_space<vmem>>, vector<8x128xf32>
    tpu.vector_store %arg3[%c0_2, %c0_3], %5 {strides = array<i32>} : memref<8x128xf32, #tpu.memory_space<vmem>>, vector<8x128xf32>,
    %7 = vector.extract_strided_slice %1 {offsets = [0, 0], sizes = [8, 12], strides = [1, 1]} : vector<8x384xbf16> to vector<8x12xbf16>
    %8 = vector.extract_strided_slice %1 {offsets = [0, 128], sizes = [8, 12], strides = [1, 1]} : vector<8x384xbf16> to vector<8x12xbf16>
    %9 = vector.extract_strided_slice %1 {offsets = [0, 256], sizes = [8, 12], strides = [1, 1]} : vector<8x384xbf16> to vector<8x12xbf16>
    %cst_4 = arith.constant dense<0.000000e+00> : vector<8x8xf32>
    %10 = tpu.matmul %7, %8, %cst_4 {dimension_numbers = #tpu.dot_dimension_numbers<[1], [1], [0], [0], [0, 0, 1, 0], [], []>} : vector<8x12xbf16>, vector<8x12xbf16>, vector<8x8xf32> -> vector<8x8xf32>
    %cst_5 = arith.constant 0.288675129 : f32
    %11 = vector.broadcast %cst_5 : f32 to vector<8x8xf32>
    %12 = arith.mulf %10, %11 : vector<8x8xf32>
    %cst_6 = arith.constant -1.000000e+09 : f32
    %13 = vector.broadcast %cst_6 : f32 to vector<8x8xf32>
    %14 = arith.select %4, %12, %13 : vector<8x8xi1>, vector<8x8xf32>
    %cst_7 = arith.constant dense<0xFF800000> : vector<8xf32>
    %15 = vector.multi_reduction <maximumf>, %14, %cst_7 [1] : vector<8x8xf32> to vector<8xf32>
    %16 = vector.shape_cast %15 : vector<8xf32> to vector<8x1xf32>
    %17 = vector.broadcast %16 : vector<8x1xf32> to vector<8x8xf32>
    %18 = arith.subf %14, %17 : vector<8x8xf32>
    %19 = math.exp %18 : vector<8x8xf32>
    %cst_8 = arith.constant dense<0.000000e+00> : vector<8xf32>
    %20 = vector.multi_reduction <add>, %19, %cst_8 [1] : vector<8x8xf32> to vector<8xf32>
    %21 = vector.shape_cast %20 : vector<8xf32> to vector<8x1xf32>
    %22 = tpu.reciprocal %21 {approx = true} : vector<8x1xf32> -> vector<8x1xf32>
    %23 = vector.broadcast %22 : vector<8x1xf32> to vector<8x8xf32>
    %24 = arith.mulf %19, %23 : vector<8x8xf32>
    %25 = arith.truncf %24 : vector<8x8xf32> to vector<8x8xbf16>
    %cst_9 = arith.constant dense<0.000000e+00> : vector<8x12xf32>
    %26 = tpu.matmul %25, %9, %cst_9 {dimension_numbers = #tpu.dot_dimension_numbers<[1], [0], [0], [1], [0, 0, 1, 1], [], []>} : vector<8x8xbf16>, vector<8x12xbf16>, vector<8x12xf32> -> vector<8x12xf32>
    %c0_10 = arith.constant 0 : index
    %c0_11 = arith.constant 0 : index
    %27 = vector.load %arg3[%c0_10, %c0_11] : memref<8x128xf32, #tpu.memory_space<vmem>>, vector<8x12xf32>
    tpu.vector_store %arg3[%c0_10, %c0_11], %26 {strides = array<i32>} : memref<8x128xf32, #tpu.memory_space<vmem>>, vector<8x12xf32>,
    %28 = vector.extract_strided_slice %1 {offsets = [0, 12], sizes = [8, 12], strides = [1, 1]} : vector<8x384xbf16> to vector<8x12xbf16>
    %29 = vector.extract_strided_slice %1 {offsets = [0, 140], sizes = [8, 12], strides = [1, 1]} : vector<8x384xbf16> to vector<8x12xbf16>
    %30 = vector.extract_strided_slice %1 {offsets = [0, 268], sizes = [8, 12], strides = [1, 1]} : vector<8x384xbf16> to vector<8x12xbf16>
    %cst_12 = arith.constant dense<0.000000e+00> : vector<8x8xf32>
    %31 = tpu.matmul %28, %29, %cst_12 {dimension_numbers = #tpu.dot_dimension_numbers<[1], [1], [0], [0], [0, 0, 1, 0], [], []>} : vector<8x12xbf16>, vector<8x12xbf16>, vector<8x8xf32> -> vector<8x8xf32>
    %cst_13 = arith.constant 0.288675129 : f32
    %32 = vector.broadcast %cst_13 : f32 to vector<8x8xf32>
    %33 = arith.mulf %31, %32 : vector<8x8xf32>
    %cst_14 = arith.constant -1.000000e+09 : f32
    %34 = vector.broadcast %cst_14 : f32 to vector<8x8xf32>
    %35 = arith.select %4, %33, %34 : vector<8x8xi1>, vector<8x8xf32>
    %cst_15 = arith.constant dense<0xFF800000> : vector<8xf32>
    %36 = vector.multi_reduction <maximumf>, %35, %cst_15 [1] : vector<8x8xf32> to vector<8xf32>
    %37 = vector.shape_cast %36 : vector<8xf32> to vector<8x1xf32>
    %38 = vector.broadcast %37 : vector<8x1xf32> to vector<8x8xf32>
    %39 = arith.subf %35, %38 : vector<8x8xf32>
    %40 = math.exp %39 : vector<8x8xf32>
    %cst_16 = arith.constant dense<0.000000e+00> : vector<8xf32>
    %41 = vector.multi_reduction <add>, %40, %cst_16 [1] : vector<8x8xf32> to vector<8xf32>
    %42 = vector.shape_cast %41 : vector<8xf32> to vector<8x1xf32>
    %43 = tpu.reciprocal %42 {approx = true} : vector<8x1xf32> -> vector<8x1xf32>
    %44 = vector.broadcast %43 : vector<8x1xf32> to vector<8x8xf32>
    %45 = arith.mulf %40, %44 : vector<8x8xf32>
    %46 = arith.truncf %45 : vector<8x8xf32> to vector<8x8xbf16>
    %cst_17 = arith.constant dense<0.000000e+00> : vector<8x12xf32>
    %47 = tpu.matmul %46, %30, %cst_17 {dimension_numbers = #tpu.dot_dimension_numbers<[1], [0], [0], [1], [0, 0, 1, 1], [], []>} : vector<8x8xbf16>, vector<8x12xbf16>, vector<8x12xf32> -> vector<8x12xf32>
    %c0_18 = arith.constant 0 : index
    %c12 = arith.constant 12 : index
    %48 = vector.load %arg3[%c0_18, %c12] : memref<8x128xf32, #tpu.memory_space<vmem>>, vector<8x12xf32>
    tpu.vector_store %arg3[%c0_18, %c12], %47 {strides = array<i32>} : memref<8x128xf32, #tpu.memory_space<vmem>>, vector<8x12xf32>,
    %49 = vector.extract_strided_slice %1 {offsets = [0, 24], sizes = [8, 12], strides = [1, 1]} : vector<8x384xbf16> to vector<8x12xbf16>
    %50 = vector.extract_strided_slice %1 {offsets = [0, 152], sizes = [8, 12], strides = [1, 1]} : vector<8x384xbf16> to vector<8x12xbf16>
    %51 = vector.extract_strided_slice %1 {offsets = [0, 280], sizes = [8, 12], strides = [1, 1]} : vector<8x384xbf16> to vector<8x12xbf16>
    %cst_19 = arith.constant dense<0.000000e+00> : vector<8x8xf32>
    %52 = tpu.matmul %49, %50, %cst_19 {dimension_numbers = #tpu.dot_dimension_numbers<[1], [1], [0], [0], [0, 0, 1, 0], [], []>} : vector<8x12xbf16>, vector<8x12xbf16>, vector<8x8xf32> -> vector<8x8xf32>
    %cst_20 = arith.constant 0.288675129 : f32
    %53 = vector.broadcast %cst_20 : f32 to vector<8x8xf32>
    %54 = arith.mulf %52, %53 : vector<8x8xf32>
    %cst_21 = arith.constant -1.000000e+09 : f32
    %55 = vector.broadcast %cst_21 : f32 to vector<8x8xf32>
    %56 = arith.select %4, %54, %55 : vector<8x8xi1>, vector<8x8xf32>
    %cst_22 = arith.constant dense<0xFF800000> : vector<8xf32>
    %57 = vector.multi_reduction <maximumf>, %56, %cst_22 [1] : vector<8x8xf32> to vector<8xf32>
    %58 = vector.shape_cast %57 : vector<8xf32> to vector<8x1xf32>
    %59 = vector.broadcast %58 : vector<8x1xf32> to vector<8x8xf32>
    %60 = arith.subf %56, %59 : vector<8x8xf32>
    %61 = math.exp %60 : vector<8x8xf32>
    %cst_23 = arith.constant dense<0.000000e+00> : vector<8xf32>
    %62 = vector.multi_reduction <add>, %61, %cst_23 [1] : vector<8x8xf32> to vector<8xf32>
    %63 = vector.shape_cast %62 : vector<8xf32> to vector<8x1xf32>
    %64 = tpu.reciprocal %63 {approx = true} : vector<8x1xf32> -> vector<8x1xf32>
    %65 = vector.broadcast %64 : vector<8x1xf32> to vector<8x8xf32>
    %66 = arith.mulf %61, %65 : vector<8x8xf32>
    %67 = arith.truncf %66 : vector<8x8xf32> to vector<8x8xbf16>
    %cst_24 = arith.constant dense<0.000000e+00> : vector<8x12xf32>
    %68 = tpu.matmul %67, %51, %cst_24 {dimension_numbers = #tpu.dot_dimension_numbers<[1], [0], [0], [1], [0, 0, 1, 1], [], []>} : vector<8x8xbf16>, vector<8x12xbf16>, vector<8x12xf32> -> vector<8x12xf32>
    %c0_25 = arith.constant 0 : index
    %c24 = arith.constant 24 : index
    %69 = vector.load %arg3[%c0_25, %c24] : memref<8x128xf32, #tpu.memory_space<vmem>>, vector<8x12xf32>
    tpu.vector_store %arg3[%c0_25, %c24], %68 {strides = array<i32>} : memref<8x128xf32, #tpu.memory_space<vmem>>, vector<8x12xf32>,
    %70 = vector.extract_strided_slice %1 {offsets = [0, 36], sizes = [8, 12], strides = [1, 1]} : vector<8x384xbf16> to vector<8x12xbf16>
    %71 = vector.extract_strided_slice %1 {offsets = [0, 164], sizes = [8, 12], strides = [1, 1]} : vector<8x384xbf16> to vector<8x12xbf16>
    %72 = vector.extract_strided_slice %1 {offsets = [0, 292], sizes = [8, 12], strides = [1, 1]} : vector<8x384xbf16> to vector<8x12xbf16>
    %cst_26 = arith.constant dense<0.000000e+00> : vector<8x8xf32>
    %73 = tpu.matmul %70, %71, %cst_26 {dimension_numbers = #tpu.dot_dimension_numbers<[1], [1], [0], [0], [0, 0, 1, 0], [], []>} : vector<8x12xbf16>, vector<8x12xbf16>, vector<8x8xf32> -> vector<8x8xf32>
    %cst_27 = arith.constant 0.288675129 : f32
    %74 = vector.broadcast %cst_27 : f32 to vector<8x8xf32>
    %75 = arith.mulf %73, %74 : vector<8x8xf32>
    %cst_28 = arith.constant -1.000000e+09 : f32
    %76 = vector.broadcast %cst_28 : f32 to vector<8x8xf32>
    %77 = arith.select %4, %75, %76 : vector<8x8xi1>, vector<8x8xf32>
    %cst_29 = arith.constant dense<0xFF800000> : vector<8xf32>
    %78 = vector.multi_reduction <maximumf>, %77, %cst_29 [1] : vector<8x8xf32> to vector<8xf32>
    %79 = vector.shape_cast %78 : vector<8xf32> to vector<8x1xf32>
    %80 = vector.broadcast %79 : vector<8x1xf32> to vector<8x8xf32>
    %81 = arith.subf %77, %80 : vector<8x8xf32>
    %82 = math.exp %81 : vector<8x8xf32>
    %cst_30 = arith.constant dense<0.000000e+00> : vector<8xf32>
    %83 = vector.multi_reduction <add>, %82, %cst_30 [1] : vector<8x8xf32> to vector<8xf32>
    %84 = vector.shape_cast %83 : vector<8xf32> to vector<8x1xf32>
    %85 = tpu.reciprocal %84 {approx = true} : vector<8x1xf32> -> vector<8x1xf32>
    %86 = vector.broadcast %85 : vector<8x1xf32> to vector<8x8xf32>
    %87 = arith.mulf %82, %86 : vector<8x8xf32>
    %88 = arith.truncf %87 : vector<8x8xf32> to vector<8x8xbf16>
    %cst_31 = arith.constant dense<0.000000e+00> : vector<8x12xf32>
    %89 = tpu.matmul %88, %72, %cst_31 {dimension_numbers = #tpu.dot_dimension_numbers<[1], [0], [0], [1], [0, 0, 1, 1], [], []>} : vector<8x8xbf16>, vector<8x12xbf16>, vector<8x12xf32> -> vector<8x12xf32>
    %c0_32 = arith.constant 0 : index
    %c36 = arith.constant 36 : index
    %90 = vector.load %arg3[%c0_32, %c36] : memref<8x128xf32, #tpu.memory_space<vmem>>, vector<8x12xf32>
    tpu.vector_store %arg3[%c0_32, %c36], %89 {strides = array<i32>} : memref<8x128xf32, #tpu.memory_space<vmem>>, vector<8x12xf32>,
    %c0_33 = arith.constant 0 : index
    %c0_34 = arith.constant 0 : index
    %91 = vector.load %arg3[%c0_33, %c0_34] : memref<8x128xf32, #tpu.memory_space<vmem>>, vector<8x128xf32>
    %92 = arith.truncf %91 : vector<8x128xf32> to vector<8x128xbf16>
    %c0_35 = arith.constant 0 : index
    %c0_36 = arith.constant 0 : index
    %c0_37 = arith.constant 0 : index
    %93 = vector.load %arg2[%c0_35, %c0_36, %c0_37] : memref<1x8x128xbf16, #tpu.memory_space<vmem>>, vector<1x8x128xbf16>
    %94 = vector.shape_cast %93 : vector<1x8x128xbf16> to vector<8x128xbf16>
    %95 = vector.shape_cast %92 : vector<8x128xbf16> to vector<1x8x128xbf16>
    tpu.vector_store %arg2[%c0_35, %c0_36, %c0_37], %95 {strides = array<i32>} : memref<1x8x128xbf16, #tpu.memory_space<vmem>>, vector<1x8x128xbf16>,
    return
  }
  func.func @transform_0(%arg0: i32) -> (i32, i32, i32) {
    %c0_i32 = arith.constant 0 : i32
    %c0_i32_0 = arith.constant 0 : i32
    %c0_i32_1 = arith.constant 0 : i32
    return %arg0, %c0_i32, %c0_i32_0 : i32, i32, i32
  }
  func.func @transform_1(%arg0: i32) -> (i32, i32, i32) {
    %c0_i32 = arith.constant 0 : i32
    %c0_i32_0 = arith.constant 0 : i32
    %c0_i32_1 = arith.constant 0 : i32
    return %arg0, %c0_i32, %c0_i32_0 : i32, i32, i32
  }
}

module attributes {stable_mosaic.version = 11 : i64} {
  func.func @_matmul_kernel(%arg0: i32, %arg1: i32, %arg2: i32, %arg3: memref<16x128xbf16, #tpu.memory_space<vmem>>, %arg4: memref<128x128xbf16, #tpu.memory_space<vmem>>, %arg5: memref<1x128xf32, #tpu.memory_space<vmem>>, %arg6: memref<16x128xbf16, #tpu.memory_space<vmem>>, %arg7: memref<16x128xbf16, #tpu.memory_space<vmem>>, %arg8: memref<16x128xf32, #tpu.memory_space<vmem>>) attributes {dimension_semantics = [#tpu.dimension_semantics<parallel>, #tpu.dimension_semantics<parallel>, #tpu.dimension_semantics<arbitrary>], iteration_bounds = array<i64: 1, 1, 1>, scalar_prefetch = 0 : i64, scratch_operands = 1 : i64, tpu.core_type = #tpu.core_type<tc>, window_params = [{transform_indices = @transform_0, window_bounds = array<i64: 16, 128>}, {transform_indices = @transform_1, window_bounds = array<i64: 128, 128>}, {transform_indices = @transform_2, window_bounds = array<i64: 1, 128>}, {transform_indices = @transform_3, window_bounds = array<i64: 16, 128>}, {transform_indices = @transform_4, window_bounds = array<i64: 16, 128>}]} {
    %c0_i32 = arith.constant 0 : i32
    %0 = arith.cmpi eq, %arg2, %c0_i32 : i32
    %1 = arith.extui %0 : i1 to i32
    %c0_i32_0 = arith.constant 0 : i32
    %2 = arith.cmpi ne, %1, %c0_i32_0 : i32
    scf.if %2 {
      %cst_10 = arith.constant 0.000000e+00 : f32
      %12 = vector.broadcast %cst_10 : f32 to vector<16x128xf32>
      %c0_11 = arith.constant 0 : index
      %c0_12 = arith.constant 0 : index
      %13 = vector.load %arg8[%c0_11, %c0_12] : memref<16x128xf32, #tpu.memory_space<vmem>>, vector<16x128xf32>
      tpu.vector_store %arg8[%c0_11, %c0_12], %12 {strides = array<i32>} : memref<16x128xf32, #tpu.memory_space<vmem>>, vector<16x128xf32>,
    } else {
    }
    %c0 = arith.constant 0 : index
    %c0_1 = arith.constant 0 : index
    %3 = vector.load %arg8[%c0, %c0_1] : memref<16x128xf32, #tpu.memory_space<vmem>>, vector<16x128xf32>
    %c0_2 = arith.constant 0 : index
    %c0_3 = arith.constant 0 : index
    %4 = vector.load %arg3[%c0_2, %c0_3] : memref<16x128xbf16, #tpu.memory_space<vmem>>, vector<16x128xbf16>
    %c0_4 = arith.constant 0 : index
    %c0_5 = arith.constant 0 : index
    %5 = vector.load %arg4[%c0_4, %c0_5] : memref<128x128xbf16, #tpu.memory_space<vmem>>, vector<128x128xbf16>
    %cst = arith.constant dense<0.000000e+00> : vector<16x128xf32>
    %6 = tpu.matmul %4, %5, %cst {dimension_numbers = #tpu.dot_dimension_numbers<[1], [0], [0], [1], [0, 0, 1, 1], [], []>} : vector<16x128xbf16>, vector<128x128xbf16>, vector<16x128xf32> -> vector<16x128xf32>
    %7 = arith.addf %3, %6 : vector<16x128xf32>
    %c0_6 = arith.constant 0 : index
    %c0_7 = arith.constant 0 : index
    %8 = vector.load %arg8[%c0_6, %c0_7] : memref<16x128xf32, #tpu.memory_space<vmem>>, vector<16x128xf32>
    tpu.vector_store %arg8[%c0_6, %c0_7], %7 {strides = array<i32>} : memref<16x128xf32, #tpu.memory_space<vmem>>, vector<16x128xf32>,
    %c0_i32_8 = arith.constant 0 : i32
    %9 = arith.cmpi eq, %arg2, %c0_i32_8 : i32
    %10 = arith.extui %9 : i1 to i32
    %c0_i32_9 = arith.constant 0 : i32
    %11 = arith.cmpi ne, %10, %c0_i32_9 : i32
    scf.if %11 {
      %c0_10 = arith.constant 0 : index
      %c0_11 = arith.constant 0 : index
      %12 = vector.load %arg8[%c0_10, %c0_11] : memref<16x128xf32, #tpu.memory_space<vmem>>, vector<16x128xf32>
      %c0_12 = arith.constant 0 : index
      %c0_13 = arith.constant 0 : index
      %13 = vector.load %arg5[%c0_12, %c0_13] : memref<1x128xf32, #tpu.memory_space<vmem>>, vector<1x128xf32>
      %14 = vector.broadcast %13 : vector<1x128xf32> to vector<16x128xf32>
      %15 = arith.addf %12, %14 : vector<16x128xf32>
      %c0_14 = arith.constant 0 : index
      %c0_15 = arith.constant 0 : index
      %16 = vector.load %arg6[%c0_14, %c0_15] : memref<16x128xbf16, #tpu.memory_space<vmem>>, vector<16x128xbf16>
      %17 = arith.extf %16 : vector<16x128xbf16> to vector<16x128xf32>
      %18 = arith.addf %15, %17 : vector<16x128xf32>
      %19 = arith.truncf %18 : vector<16x128xf32> to vector<16x128xbf16>
      %c0_16 = arith.constant 0 : index
      %c0_17 = arith.constant 0 : index
      %20 = vector.load %arg7[%c0_16, %c0_17] : memref<16x128xbf16, #tpu.memory_space<vmem>>, vector<16x128xbf16>
      tpu.vector_store %arg7[%c0_16, %c0_17], %19 {strides = array<i32>} : memref<16x128xbf16, #tpu.memory_space<vmem>>, vector<16x128xbf16>,
    } else {
    }
    return
  }
  func.func @transform_0(%arg0: i32, %arg1: i32, %arg2: i32) -> (i32, i32) {
    %c0_i32 = arith.constant 0 : i32
    return %arg0, %arg2 : i32, i32
  }
  func.func @transform_1(%arg0: i32, %arg1: i32, %arg2: i32) -> (i32, i32) {
    %c0_i32 = arith.constant 0 : i32
    return %arg2, %arg1 : i32, i32
  }
  func.func @transform_2(%arg0: i32, %arg1: i32, %arg2: i32) -> (i32, i32) {
    %c0_i32 = arith.constant 0 : i32
    %c0_i32_0 = arith.constant 0 : i32
    return %c0_i32, %arg1 : i32, i32
  }
  func.func @transform_3(%arg0: i32, %arg1: i32, %arg2: i32) -> (i32, i32) {
    %c0_i32 = arith.constant 0 : i32
    return %arg0, %arg1 : i32, i32
  }
  func.func @transform_4(%arg0: i32, %arg1: i32, %arg2: i32) -> (i32, i32) {
    %c0_i32 = arith.constant 0 : i32
    return %arg0, %arg1 : i32, i32
  }
}

module attributes {stable_mosaic.version = 11 : i64} {
  func.func @_matmul_kernel(%arg0: i32, %arg1: i32, %arg2: i32, %arg3: memref<8x256xbf16, #tpu.memory_space<vmem>>, %arg4: memref<256x128xbf16, #tpu.memory_space<vmem>>, %arg5: memref<1x128xf32, #tpu.memory_space<vmem>>, %arg6: memref<8x128xbf16, #tpu.memory_space<vmem>>, %arg7: memref<8x128xf32, #tpu.memory_space<vmem>>) attributes {dimension_semantics = [#tpu.dimension_semantics<parallel>, #tpu.dimension_semantics<parallel>, #tpu.dimension_semantics<arbitrary>], iteration_bounds = array<i64: 1, 1, 1>, scalar_prefetch = 0 : i64, scratch_operands = 1 : i64, tpu.core_type = #tpu.core_type<tc>, window_params = [{transform_indices = @transform_0, window_bounds = array<i64: 8, 256>}, {transform_indices = @transform_1, window_bounds = array<i64: 256, 128>}, {transform_indices = @transform_2, window_bounds = array<i64: 1, 128>}, {transform_indices = @transform_3, window_bounds = array<i64: 8, 128>}]} {
    %c0_i32 = arith.constant 0 : i32
    %0 = arith.cmpi eq, %arg2, %c0_i32 : i32
    %1 = arith.extui %0 : i1 to i32
    %c0_i32_0 = arith.constant 0 : i32
    %2 = arith.cmpi ne, %1, %c0_i32_0 : i32
    scf.if %2 {
      %cst_10 = arith.constant 0.000000e+00 : f32
      %12 = vector.broadcast %cst_10 : f32 to vector<8x128xf32>
      %c0_11 = arith.constant 0 : index
      %c0_12 = arith.constant 0 : index
      %13 = vector.load %arg7[%c0_11, %c0_12] : memref<8x128xf32, #tpu.memory_space<vmem>>, vector<8x128xf32>
      tpu.vector_store %arg7[%c0_11, %c0_12], %12 {strides = array<i32>} : memref<8x128xf32, #tpu.memory_space<vmem>>, vector<8x128xf32>,
    } else {
    }
    %c0 = arith.constant 0 : index
    %c0_1 = arith.constant 0 : index
    %3 = vector.load %arg7[%c0, %c0_1] : memref<8x128xf32, #tpu.memory_space<vmem>>, vector<8x128xf32>
    %c0_2 = arith.constant 0 : index
    %c0_3 = arith.constant 0 : index
    %4 = vector.load %arg3[%c0_2, %c0_3] : memref<8x256xbf16, #tpu.memory_space<vmem>>, vector<8x256xbf16>
    %c0_4 = arith.constant 0 : index
    %c0_5 = arith.constant 0 : index
    %5 = vector.load %arg4[%c0_4, %c0_5] : memref<256x128xbf16, #tpu.memory_space<vmem>>, vector<256x128xbf16>
    %cst = arith.constant dense<0.000000e+00> : vector<8x128xf32>
    %6 = tpu.matmul %4, %5, %cst {dimension_numbers = #tpu.dot_dimension_numbers<[1], [0], [0], [1], [0, 0, 1, 1], [], []>} : vector<8x256xbf16>, vector<256x128xbf16>, vector<8x128xf32> -> vector<8x128xf32>
    %7 = arith.addf %3, %6 : vector<8x128xf32>
    %c0_6 = arith.constant 0 : index
    %c0_7 = arith.constant 0 : index
    %8 = vector.load %arg7[%c0_6, %c0_7] : memref<8x128xf32, #tpu.memory_space<vmem>>, vector<8x128xf32>
    tpu.vector_store %arg7[%c0_6, %c0_7], %7 {strides = array<i32>} : memref<8x128xf32, #tpu.memory_space<vmem>>, vector<8x128xf32>,
    %c0_i32_8 = arith.constant 0 : i32
    %9 = arith.cmpi eq, %arg2, %c0_i32_8 : i32
    %10 = arith.extui %9 : i1 to i32
    %c0_i32_9 = arith.constant 0 : i32
    %11 = arith.cmpi ne, %10, %c0_i32_9 : i32
    scf.if %11 {
      %c0_10 = arith.constant 0 : index
      %c0_11 = arith.constant 0 : index
      %12 = vector.load %arg7[%c0_10, %c0_11] : memref<8x128xf32, #tpu.memory_space<vmem>>, vector<8x128xf32>
      %c0_12 = arith.constant 0 : index
      %c0_13 = arith.constant 0 : index
      %13 = vector.load %arg5[%c0_12, %c0_13] : memref<1x128xf32, #tpu.memory_space<vmem>>, vector<1x128xf32>
      %14 = vector.broadcast %13 : vector<1x128xf32> to vector<8x128xf32>
      %15 = arith.addf %12, %14 : vector<8x128xf32>
      %16 = arith.truncf %15 : vector<8x128xf32> to vector<8x128xbf16>
      %c0_14 = arith.constant 0 : index
      %c0_15 = arith.constant 0 : index
      %17 = vector.load %arg6[%c0_14, %c0_15] : memref<8x128xbf16, #tpu.memory_space<vmem>>, vector<8x128xbf16>
      tpu.vector_store %arg6[%c0_14, %c0_15], %16 {strides = array<i32>} : memref<8x128xbf16, #tpu.memory_space<vmem>>, vector<8x128xbf16>,
    } else {
    }
    return
  }
  func.func @transform_0(%arg0: i32, %arg1: i32, %arg2: i32) -> (i32, i32) {
    %c0_i32 = arith.constant 0 : i32
    return %arg0, %arg2 : i32, i32
  }
  func.func @transform_1(%arg0: i32, %arg1: i32, %arg2: i32) -> (i32, i32) {
    %c0_i32 = arith.constant 0 : i32
    return %arg2, %arg1 : i32, i32
  }
  func.func @transform_2(%arg0: i32, %arg1: i32, %arg2: i32) -> (i32, i32) {
    %c0_i32 = arith.constant 0 : i32
    %c0_i32_0 = arith.constant 0 : i32
    return %c0_i32, %arg1 : i32, i32
  }
  func.func @transform_3(%arg0: i32, %arg1: i32, %arg2: i32) -> (i32, i32) {
    %c0_i32 = arith.constant 0 : i32
    return %arg0, %arg1 : i32, i32
  }
}

module attributes {stable_mosaic.version = 11 : i64} {
  func.func @_ln_matmul_kernel(%arg0: i32, %arg1: i32, %arg2: memref<16x128xbf16, #tpu.memory_space<vmem>>, %arg3: memref<1x128xf32, #tpu.memory_space<vmem>>, %arg4: memref<1x128xf32, #tpu.memory_space<vmem>>, %arg5: memref<128x128xbf16, #tpu.memory_space<vmem>>, %arg6: memref<1x128xf32, #tpu.memory_space<vmem>>, %arg7: memref<16x128xbf16, #tpu.memory_space<vmem>>, %arg8: memref<16x128xbf16, #tpu.memory_space<vmem>>) attributes {dimension_semantics = [#tpu.dimension_semantics<parallel>, #tpu.dimension_semantics<arbitrary>], iteration_bounds = array<i64: 1, 3>, scalar_prefetch = 0 : i64, scratch_operands = 1 : i64, tpu.core_type = #tpu.core_type<tc>, window_params = [{transform_indices = @transform_0, window_bounds = array<i64: 16, 128>}, {pipeline_mode = #tpu.pipeline_mode<synchronous>, transform_indices = @transform_1, window_bounds = array<i64: 1, 128>}, {pipeline_mode = #tpu.pipeline_mode<synchronous>, transform_indices = @transform_2, window_bounds = array<i64: 1, 128>}, {transform_indices = @transform_3, window_bounds = array<i64: 128, 128>}, {transform_indices = @transform_4, window_bounds = array<i64: 1, 128>}, {transform_indices = @transform_5, window_bounds = array<i64: 16, 128>}]} {
    %c0_i32 = arith.constant 0 : i32
    %0 = arith.cmpi eq, %arg1, %c0_i32 : i32
    %1 = arith.extui %0 : i1 to i32
    %c0_i32_0 = arith.constant 0 : i32
    %2 = arith.cmpi ne, %1, %c0_i32_0 : i32
    scf.if %2 {
      %c0_8 = arith.constant 0 : index
      %c0_9 = arith.constant 0 : index
      %11 = vector.load %arg2[%c0_8, %c0_9] : memref<16x128xbf16, #tpu.memory_space<vmem>>, vector<16x128xbf16>
      %12 = arith.extf %11 : vector<16x128xbf16> to vector<16x128xf32>
      %cst_10 = arith.constant dense<0.000000e+00> : vector<16xf32>
      %13 = vector.multi_reduction <add>, %12, %cst_10 [1] : vector<16x128xf32> to vector<16xf32>
      %14 = vector.shape_cast %13 : vector<16xf32> to vector<16x1xf32>
      %cst_11 = arith.constant 0.020833334 : f32
      %15 = vector.broadcast %cst_11 : f32 to vector<16x1xf32>
      %16 = arith.mulf %14, %15 : vector<16x1xf32>
      %17 = vector.broadcast %16 : vector<16x1xf32> to vector<16x128xf32>
      %18 = arith.subf %12, %17 : vector<16x128xf32>
      %19 = tpu.iota {dimensions = array<i32: 1>} : vector<16x128xi32>
      %c48_i32 = arith.constant 48 : i32
      %20 = vector.broadcast %c48_i32 : i32 to vector<16x128xi32>
      %21 = arith.cmpi slt, %19, %20 : vector<16x128xi32>
      %cst_12 = arith.constant 0.000000e+00 : f32
      %22 = vector.broadcast %cst_12 : f32 to vector<16x128xf32>
      %23 = arith.select %21, %18, %22 : vector<16x128xi1>, vector<16x128xf32>
      %24 = arith.mulf %23, %23 : vector<16x128xf32>
      %cst_13 = arith.constant dense<0.000000e+00> : vector<16xf32>
      %25 = vector.multi_reduction <add>, %24, %cst_13 [1] : vector<16x128xf32> to vector<16xf32>
      %26 = vector.shape_cast %25 : vector<16xf32> to vector<16x1xf32>
      %cst_14 = arith.constant 0.020833334 : f32
      %27 = vector.broadcast %cst_14 : f32 to vector<16x1xf32>
      %28 = arith.mulf %26, %27 : vector<16x1xf32>
      %cst_15 = arith.constant 9.99999974E-6 : f32
      %29 = vector.broadcast %cst_15 : f32 to vector<16x1xf32>
      %30 = arith.addf %28, %29 : vector<16x1xf32>
      %31 = math.rsqrt %30 : vector<16x1xf32>
      %32 = vector.broadcast %31 : vector<16x1xf32> to vector<16x128xf32>
      %33 = arith.mulf %18, %32 : vector<16x128xf32>
      %c0_16 = arith.constant 0 : index
      %c0_17 = arith.constant 0 : index
      %34 = vector.load %arg3[%c0_16, %c0_17] : memref<1x128xf32, #tpu.memory_space<vmem>>, vector<1x128xf32>
      %35 = vector.broadcast %34 : vector<1x128xf32> to vector<16x128xf32>
      %36 = arith.mulf %33, %35 : vector<16x128xf32>
      %c0_18 = arith.constant 0 : index
      %c0_19 = arith.constant 0 : index
      %37 = vector.load %arg4[%c0_18, %c0_19] : memref<1x128xf32, #tpu.memory_space<vmem>>, vector<1x128xf32>
      %38 = vector.broadcast %37 : vector<1x128xf32> to vector<16x128xf32>
      %39 = arith.addf %36, %38 : vector<16x128xf32>
      %40 = arith.truncf %39 : vector<16x128xf32> to vector<16x128xbf16>
      %c0_20 = arith.constant 0 : index
      %c0_21 = arith.constant 0 : index
      %41 = vector.load %arg8[%c0_20, %c0_21] : memref<16x128xbf16, #tpu.memory_space<vmem>>, vector<16x128xbf16>
      tpu.vector_store %arg8[%c0_20, %c0_21], %40 {strides = array<i32>} : memref<16x128xbf16, #tpu.memory_space<vmem>>, vector<16x128xbf16>,
    } else {
    }
    %c0 = arith.constant 0 : index
    %c0_1 = arith.constant 0 : index
    %3 = vector.load %arg8[%c0, %c0_1] : memref<16x128xbf16, #tpu.memory_space<vmem>>, vector<16x128xbf16>
    %c0_2 = arith.constant 0 : index
    %c0_3 = arith.constant 0 : index
    %4 = vector.load %arg5[%c0_2, %c0_3] : memref<128x128xbf16, #tpu.memory_space<vmem>>, vector<128x128xbf16>
    %cst = arith.constant dense<0.000000e+00> : vector<16x128xf32>
    %5 = tpu.matmul %3, %4, %cst {dimension_numbers = #tpu.dot_dimension_numbers<[1], [0], [0], [1], [0, 0, 1, 1], [], []>} : vector<16x128xbf16>, vector<128x128xbf16>, vector<16x128xf32> -> vector<16x128xf32>
    %c0_4 = arith.constant 0 : index
    %c0_5 = arith.constant 0 : index
    %6 = vector.load %arg6[%c0_4, %c0_5] : memref<1x128xf32, #tpu.memory_space<vmem>>, vector<1x128xf32>
    %7 = vector.broadcast %6 : vector<1x128xf32> to vector<16x128xf32>
    %8 = arith.addf %5, %7 : vector<16x128xf32>
    %9 = arith.truncf %8 : vector<16x128xf32> to vector<16x128xbf16>
    %c0_6 = arith.constant 0 : index
    %c0_7 = arith.constant 0 : index
    %10 = vector.load %arg7[%c0_6, %c0_7] : memref<16x128xbf16, #tpu.memory_space<vmem>>, vector<16x128xbf16>
    tpu.vector_store %arg7[%c0_6, %c0_7], %9 {strides = array<i32>} : memref<16x128xbf16, #tpu.memory_space<vmem>>, vector<16x128xbf16>,
    return
  }
  func.func @transform_0(%arg0: i32, %arg1: i32) -> (i32, i32) {
    %c0_i32 = arith.constant 0 : i32
    %c0_i32_0 = arith.constant 0 : i32
    return %arg0, %c0_i32 : i32, i32
  }
  func.func @transform_1(%arg0: i32, %arg1: i32) -> (i32, i32) {
    %c0_i32 = arith.constant 0 : i32
    %c0_i32_0 = arith.constant 0 : i32
    %c0_i32_1 = arith.constant 0 : i32
    return %c0_i32, %c0_i32_0 : i32, i32
  }
  func.func @transform_2(%arg0: i32, %arg1: i32) -> (i32, i32) {
    %c0_i32 = arith.constant 0 : i32
    %c0_i32_0 = arith.constant 0 : i32
    %c0_i32_1 = arith.constant 0 : i32
    return %c0_i32, %c0_i32_0 : i32, i32
  }
  func.func @transform_3(%arg0: i32, %arg1: i32) -> (i32, i32) {
    %c0_i32 = arith.constant 0 : i32
    %c0_i32_0 = arith.constant 0 : i32
    return %c0_i32, %arg1 : i32, i32
  }
  func.func @transform_4(%arg0: i32, %arg1: i32) -> (i32, i32) {
    %c0_i32 = arith.constant 0 : i32
    %c0_i32_0 = arith.constant 0 : i32
    return %c0_i32, %arg1 : i32, i32
  }
  func.func @transform_5(%arg0: i32, %arg1: i32) -> (i32, i32) {
    %c0_i32 = arith.constant 0 : i32
    return %arg0, %arg1 : i32, i32
  }
}

module attributes {stable_mosaic.version = 11 : i64} {
  func.func @_ln_matmul_kernel(%arg0: i32, %arg1: i32, %arg2: memref<16x128xbf16, #tpu.memory_space<vmem>>, %arg3: memref<1x128xf32, #tpu.memory_space<vmem>>, %arg4: memref<1x128xf32, #tpu.memory_space<vmem>>, %arg5: memref<128x128xbf16, #tpu.memory_space<vmem>>, %arg6: memref<1x128xf32, #tpu.memory_space<vmem>>, %arg7: memref<16x128xbf16, #tpu.memory_space<vmem>>, %arg8: memref<16x128xbf16, #tpu.memory_space<vmem>>) attributes {dimension_semantics = [#tpu.dimension_semantics<parallel>, #tpu.dimension_semantics<arbitrary>], iteration_bounds = array<i64: 1, 1>, scalar_prefetch = 0 : i64, scratch_operands = 1 : i64, tpu.core_type = #tpu.core_type<tc>, window_params = [{transform_indices = @transform_0, window_bounds = array<i64: 16, 128>}, {pipeline_mode = #tpu.pipeline_mode<synchronous>, transform_indices = @transform_1, window_bounds = array<i64: 1, 128>}, {pipeline_mode = #tpu.pipeline_mode<synchronous>, transform_indices = @transform_2, window_bounds = array<i64: 1, 128>}, {transform_indices = @transform_3, window_bounds = array<i64: 128, 128>}, {transform_indices = @transform_4, window_bounds = array<i64: 1, 128>}, {transform_indices = @transform_5, window_bounds = array<i64: 16, 128>}]} {
    %c0_i32 = arith.constant 0 : i32
    %0 = arith.cmpi eq, %arg1, %c0_i32 : i32
    %1 = arith.extui %0 : i1 to i32
    %c0_i32_0 = arith.constant 0 : i32
    %2 = arith.cmpi ne, %1, %c0_i32_0 : i32
    scf.if %2 {
      %c0_8 = arith.constant 0 : index
      %c0_9 = arith.constant 0 : index
      %11 = vector.load %arg2[%c0_8, %c0_9] : memref<16x128xbf16, #tpu.memory_space<vmem>>, vector<16x128xbf16>
      %12 = arith.extf %11 : vector<16x128xbf16> to vector<16x128xf32>
      %cst_10 = arith.constant dense<0.000000e+00> : vector<16xf32>
      %13 = vector.multi_reduction <add>, %12, %cst_10 [1] : vector<16x128xf32> to vector<16xf32>
      %14 = vector.shape_cast %13 : vector<16xf32> to vector<16x1xf32>
      %cst_11 = arith.constant 0.020833334 : f32
      %15 = vector.broadcast %cst_11 : f32 to vector<16x1xf32>
      %16 = arith.mulf %14, %15 : vector<16x1xf32>
      %17 = vector.broadcast %16 : vector<16x1xf32> to vector<16x128xf32>
      %18 = arith.subf %12, %17 : vector<16x128xf32>
      %19 = tpu.iota {dimensions = array<i32: 1>} : vector<16x128xi32>
      %c48_i32 = arith.constant 48 : i32
      %20 = vector.broadcast %c48_i32 : i32 to vector<16x128xi32>
      %21 = arith.cmpi slt, %19, %20 : vector<16x128xi32>
      %cst_12 = arith.constant 0.000000e+00 : f32
      %22 = vector.broadcast %cst_12 : f32 to vector<16x128xf32>
      %23 = arith.select %21, %18, %22 : vector<16x128xi1>, vector<16x128xf32>
      %24 = arith.mulf %23, %23 : vector<16x128xf32>
      %cst_13 = arith.constant dense<0.000000e+00> : vector<16xf32>
      %25 = vector.multi_reduction <add>, %24, %cst_13 [1] : vector<16x128xf32> to vector<16xf32>
      %26 = vector.shape_cast %25 : vector<16xf32> to vector<16x1xf32>
      %cst_14 = arith.constant 0.020833334 : f32
      %27 = vector.broadcast %cst_14 : f32 to vector<16x1xf32>
      %28 = arith.mulf %26, %27 : vector<16x1xf32>
      %cst_15 = arith.constant 9.99999974E-6 : f32
      %29 = vector.broadcast %cst_15 : f32 to vector<16x1xf32>
      %30 = arith.addf %28, %29 : vector<16x1xf32>
      %31 = math.rsqrt %30 : vector<16x1xf32>
      %32 = vector.broadcast %31 : vector<16x1xf32> to vector<16x128xf32>
      %33 = arith.mulf %18, %32 : vector<16x128xf32>
      %c0_16 = arith.constant 0 : index
      %c0_17 = arith.constant 0 : index
      %34 = vector.load %arg3[%c0_16, %c0_17] : memref<1x128xf32, #tpu.memory_space<vmem>>, vector<1x128xf32>
      %35 = vector.broadcast %34 : vector<1x128xf32> to vector<16x128xf32>
      %36 = arith.mulf %33, %35 : vector<16x128xf32>
      %c0_18 = arith.constant 0 : index
      %c0_19 = arith.constant 0 : index
      %37 = vector.load %arg4[%c0_18, %c0_19] : memref<1x128xf32, #tpu.memory_space<vmem>>, vector<1x128xf32>
      %38 = vector.broadcast %37 : vector<1x128xf32> to vector<16x128xf32>
      %39 = arith.addf %36, %38 : vector<16x128xf32>
      %40 = arith.truncf %39 : vector<16x128xf32> to vector<16x128xbf16>
      %c0_20 = arith.constant 0 : index
      %c0_21 = arith.constant 0 : index
      %41 = vector.load %arg8[%c0_20, %c0_21] : memref<16x128xbf16, #tpu.memory_space<vmem>>, vector<16x128xbf16>
      tpu.vector_store %arg8[%c0_20, %c0_21], %40 {strides = array<i32>} : memref<16x128xbf16, #tpu.memory_space<vmem>>, vector<16x128xbf16>,
    } else {
    }
    %c0 = arith.constant 0 : index
    %c0_1 = arith.constant 0 : index
    %3 = vector.load %arg8[%c0, %c0_1] : memref<16x128xbf16, #tpu.memory_space<vmem>>, vector<16x128xbf16>
    %c0_2 = arith.constant 0 : index
    %c0_3 = arith.constant 0 : index
    %4 = vector.load %arg5[%c0_2, %c0_3] : memref<128x128xbf16, #tpu.memory_space<vmem>>, vector<128x128xbf16>
    %cst = arith.constant dense<0.000000e+00> : vector<16x128xf32>
    %5 = tpu.matmul %3, %4, %cst {dimension_numbers = #tpu.dot_dimension_numbers<[1], [0], [0], [1], [0, 0, 1, 1], [], []>} : vector<16x128xbf16>, vector<128x128xbf16>, vector<16x128xf32> -> vector<16x128xf32>
    %c0_4 = arith.constant 0 : index
    %c0_5 = arith.constant 0 : index
    %6 = vector.load %arg6[%c0_4, %c0_5] : memref<1x128xf32, #tpu.memory_space<vmem>>, vector<1x128xf32>
    %7 = vector.broadcast %6 : vector<1x128xf32> to vector<16x128xf32>
    %8 = arith.addf %5, %7 : vector<16x128xf32>
    %9 = arith.truncf %8 : vector<16x128xf32> to vector<16x128xbf16>
    %c0_6 = arith.constant 0 : index
    %c0_7 = arith.constant 0 : index
    %10 = vector.load %arg7[%c0_6, %c0_7] : memref<16x128xbf16, #tpu.memory_space<vmem>>, vector<16x128xbf16>
    tpu.vector_store %arg7[%c0_6, %c0_7], %9 {strides = array<i32>} : memref<16x128xbf16, #tpu.memory_space<vmem>>, vector<16x128xbf16>,
    return
  }
  func.func @transform_0(%arg0: i32, %arg1: i32) -> (i32, i32) {
    %c0_i32 = arith.constant 0 : i32
    %c0_i32_0 = arith.constant 0 : i32
    return %arg0, %c0_i32 : i32, i32
  }
  func.func @transform_1(%arg0: i32, %arg1: i32) -> (i32, i32) {
    %c0_i32 = arith.constant 0 : i32
    %c0_i32_0 = arith.constant 0 : i32
    %c0_i32_1 = arith.constant 0 : i32
    return %c0_i32, %c0_i32_0 : i32, i32
  }
  func.func @transform_2(%arg0: i32, %arg1: i32) -> (i32, i32) {
    %c0_i32 = arith.constant 0 : i32
    %c0_i32_0 = arith.constant 0 : i32
    %c0_i32_1 = arith.constant 0 : i32
    return %c0_i32, %c0_i32_0 : i32, i32
  }
  func.func @transform_3(%arg0: i32, %arg1: i32) -> (i32, i32) {
    %c0_i32 = arith.constant 0 : i32
    %c0_i32_0 = arith.constant 0 : i32
    return %c0_i32, %arg1 : i32, i32
  }
  func.func @transform_4(%arg0: i32, %arg1: i32) -> (i32, i32) {
    %c0_i32 = arith.constant 0 : i32
    %c0_i32_0 = arith.constant 0 : i32
    return %c0_i32, %arg1 : i32, i32
  }
  func.func @transform_5(%arg0: i32, %arg1: i32) -> (i32, i32) {
    %c0_i32 = arith.constant 0 : i32
    return %arg0, %arg1 : i32, i32
  }
}

module attributes {stable_mosaic.version = 11 : i64} {
  func.func @_matmul_kernel(%arg0: i32, %arg1: i32, %arg2: i32, %arg3: memref<16x256xbf16, #tpu.memory_space<vmem>>, %arg4: memref<256x128xbf16, #tpu.memory_space<vmem>>, %arg5: memref<1x128xf32, #tpu.memory_space<vmem>>, %arg6: memref<16x128xbf16, #tpu.memory_space<vmem>>, %arg7: memref<16x128xbf16, #tpu.memory_space<vmem>>, %arg8: memref<16x128xf32, #tpu.memory_space<vmem>>) attributes {dimension_semantics = [#tpu.dimension_semantics<parallel>, #tpu.dimension_semantics<parallel>, #tpu.dimension_semantics<arbitrary>], iteration_bounds = array<i64: 1, 1, 1>, scalar_prefetch = 0 : i64, scratch_operands = 1 : i64, tpu.core_type = #tpu.core_type<tc>, window_params = [{transform_indices = @transform_0, window_bounds = array<i64: 16, 256>}, {transform_indices = @transform_1, window_bounds = array<i64: 256, 128>}, {transform_indices = @transform_2, window_bounds = array<i64: 1, 128>}, {transform_indices = @transform_3, window_bounds = array<i64: 16, 128>}, {transform_indices = @transform_4, window_bounds = array<i64: 16, 128>}]} {
    %c0_i32 = arith.constant 0 : i32
    %0 = arith.cmpi eq, %arg2, %c0_i32 : i32
    %1 = arith.extui %0 : i1 to i32
    %c0_i32_0 = arith.constant 0 : i32
    %2 = arith.cmpi ne, %1, %c0_i32_0 : i32
    scf.if %2 {
      %cst_10 = arith.constant 0.000000e+00 : f32
      %12 = vector.broadcast %cst_10 : f32 to vector<16x128xf32>
      %c0_11 = arith.constant 0 : index
      %c0_12 = arith.constant 0 : index
      %13 = vector.load %arg8[%c0_11, %c0_12] : memref<16x128xf32, #tpu.memory_space<vmem>>, vector<16x128xf32>
      tpu.vector_store %arg8[%c0_11, %c0_12], %12 {strides = array<i32>} : memref<16x128xf32, #tpu.memory_space<vmem>>, vector<16x128xf32>,
    } else {
    }
    %c0 = arith.constant 0 : index
    %c0_1 = arith.constant 0 : index
    %3 = vector.load %arg8[%c0, %c0_1] : memref<16x128xf32, #tpu.memory_space<vmem>>, vector<16x128xf32>
    %c0_2 = arith.constant 0 : index
    %c0_3 = arith.constant 0 : index
    %4 = vector.load %arg3[%c0_2, %c0_3] : memref<16x256xbf16, #tpu.memory_space<vmem>>, vector<16x256xbf16>
    %c0_4 = arith.constant 0 : index
    %c0_5 = arith.constant 0 : index
    %5 = vector.load %arg4[%c0_4, %c0_5] : memref<256x128xbf16, #tpu.memory_space<vmem>>, vector<256x128xbf16>
    %cst = arith.constant dense<0.000000e+00> : vector<16x128xf32>
    %6 = tpu.matmul %4, %5, %cst {dimension_numbers = #tpu.dot_dimension_numbers<[1], [0], [0], [1], [0, 0, 1, 1], [], []>} : vector<16x256xbf16>, vector<256x128xbf16>, vector<16x128xf32> -> vector<16x128xf32>
    %7 = arith.addf %3, %6 : vector<16x128xf32>
    %c0_6 = arith.constant 0 : index
    %c0_7 = arith.constant 0 : index
    %8 = vector.load %arg8[%c0_6, %c0_7] : memref<16x128xf32, #tpu.memory_space<vmem>>, vector<16x128xf32>
    tpu.vector_store %arg8[%c0_6, %c0_7], %7 {strides = array<i32>} : memref<16x128xf32, #tpu.memory_space<vmem>>, vector<16x128xf32>,
    %c0_i32_8 = arith.constant 0 : i32
    %9 = arith.cmpi eq, %arg2, %c0_i32_8 : i32
    %10 = arith.extui %9 : i1 to i32
    %c0_i32_9 = arith.constant 0 : i32
    %11 = arith.cmpi ne, %10, %c0_i32_9 : i32
    scf.if %11 {
      %c0_10 = arith.constant 0 : index
      %c0_11 = arith.constant 0 : index
      %12 = vector.load %arg8[%c0_10, %c0_11] : memref<16x128xf32, #tpu.memory_space<vmem>>, vector<16x128xf32>
      %c0_12 = arith.constant 0 : index
      %c0_13 = arith.constant 0 : index
      %13 = vector.load %arg5[%c0_12, %c0_13] : memref<1x128xf32, #tpu.memory_space<vmem>>, vector<1x128xf32>
      %14 = vector.broadcast %13 : vector<1x128xf32> to vector<16x128xf32>
      %15 = arith.addf %12, %14 : vector<16x128xf32>
      %c0_14 = arith.constant 0 : index
      %c0_15 = arith.constant 0 : index
      %16 = vector.load %arg6[%c0_14, %c0_15] : memref<16x128xbf16, #tpu.memory_space<vmem>>, vector<16x128xbf16>
      %17 = arith.extf %16 : vector<16x128xbf16> to vector<16x128xf32>
      %18 = arith.addf %15, %17 : vector<16x128xf32>
      %19 = arith.truncf %18 : vector<16x128xf32> to vector<16x128xbf16>
      %c0_16 = arith.constant 0 : index
      %c0_17 = arith.constant 0 : index
      %20 = vector.load %arg7[%c0_16, %c0_17] : memref<16x128xbf16, #tpu.memory_space<vmem>>, vector<16x128xbf16>
      tpu.vector_store %arg7[%c0_16, %c0_17], %19 {strides = array<i32>} : memref<16x128xbf16, #tpu.memory_space<vmem>>, vector<16x128xbf16>,
    } else {
    }
    return
  }
  func.func @transform_0(%arg0: i32, %arg1: i32, %arg2: i32) -> (i32, i32) {
    %c0_i32 = arith.constant 0 : i32
    return %arg0, %arg2 : i32, i32
  }
  func.func @transform_1(%arg0: i32, %arg1: i32, %arg2: i32) -> (i32, i32) {
    %c0_i32 = arith.constant 0 : i32
    return %arg2, %arg1 : i32, i32
  }
  func.func @transform_2(%arg0: i32, %arg1: i32, %arg2: i32) -> (i32, i32) {
    %c0_i32 = arith.constant 0 : i32
    %c0_i32_0 = arith.constant 0 : i32
    return %c0_i32, %arg1 : i32, i32
  }
  func.func @transform_3(%arg0: i32, %arg1: i32, %arg2: i32) -> (i32, i32) {
    %c0_i32 = arith.constant 0 : i32
    return %arg0, %arg1 : i32, i32
  }
  func.func @transform_4(%arg0: i32, %arg1: i32, %arg2: i32) -> (i32, i32) {
    %c0_i32 = arith.constant 0 : i32
    return %arg0, %arg1 : i32, i32
  }
}

module attributes {stable_mosaic.version = 11 : i64} {
  func.func @_ln_matmul_kernel(%arg0: i32, %arg1: i32, %arg2: memref<16x128xbf16, #tpu.memory_space<vmem>>, %arg3: memref<1x128xf32, #tpu.memory_space<vmem>>, %arg4: memref<1x128xf32, #tpu.memory_space<vmem>>, %arg5: memref<128x256xbf16, #tpu.memory_space<vmem>>, %arg6: memref<1x256xf32, #tpu.memory_space<vmem>>, %arg7: memref<16x256xbf16, #tpu.memory_space<vmem>>, %arg8: memref<16x128xbf16, #tpu.memory_space<vmem>>) attributes {dimension_semantics = [#tpu.dimension_semantics<parallel>, #tpu.dimension_semantics<arbitrary>], iteration_bounds = array<i64: 1, 1>, scalar_prefetch = 0 : i64, scratch_operands = 1 : i64, tpu.core_type = #tpu.core_type<tc>, window_params = [{transform_indices = @transform_0, window_bounds = array<i64: 16, 128>}, {pipeline_mode = #tpu.pipeline_mode<synchronous>, transform_indices = @transform_1, window_bounds = array<i64: 1, 128>}, {pipeline_mode = #tpu.pipeline_mode<synchronous>, transform_indices = @transform_2, window_bounds = array<i64: 1, 128>}, {transform_indices = @transform_3, window_bounds = array<i64: 128, 256>}, {transform_indices = @transform_4, window_bounds = array<i64: 1, 256>}, {transform_indices = @transform_5, window_bounds = array<i64: 16, 256>}]} {
    %c0_i32 = arith.constant 0 : i32
    %0 = arith.cmpi eq, %arg1, %c0_i32 : i32
    %1 = arith.extui %0 : i1 to i32
    %c0_i32_0 = arith.constant 0 : i32
    %2 = arith.cmpi ne, %1, %c0_i32_0 : i32
    scf.if %2 {
      %c0_10 = arith.constant 0 : index
      %c0_11 = arith.constant 0 : index
      %19 = vector.load %arg2[%c0_10, %c0_11] : memref<16x128xbf16, #tpu.memory_space<vmem>>, vector<16x128xbf16>
      %20 = arith.extf %19 : vector<16x128xbf16> to vector<16x128xf32>
      %cst_12 = arith.constant dense<0.000000e+00> : vector<16xf32>
      %21 = vector.multi_reduction <add>, %20, %cst_12 [1] : vector<16x128xf32> to vector<16xf32>
      %22 = vector.shape_cast %21 : vector<16xf32> to vector<16x1xf32>
      %cst_13 = arith.constant 0.020833334 : f32
      %23 = vector.broadcast %cst_13 : f32 to vector<16x1xf32>
      %24 = arith.mulf %22, %23 : vector<16x1xf32>
      %25 = vector.broadcast %24 : vector<16x1xf32> to vector<16x128xf32>
      %26 = arith.subf %20, %25 : vector<16x128xf32>
      %27 = tpu.iota {dimensions = array<i32: 1>} : vector<16x128xi32>
      %c48_i32 = arith.constant 48 : i32
      %28 = vector.broadcast %c48_i32 : i32 to vector<16x128xi32>
      %29 = arith.cmpi slt, %27, %28 : vector<16x128xi32>
      %cst_14 = arith.constant 0.000000e+00 : f32
      %30 = vector.broadcast %cst_14 : f32 to vector<16x128xf32>
      %31 = arith.select %29, %26, %30 : vector<16x128xi1>, vector<16x128xf32>
      %32 = arith.mulf %31, %31 : vector<16x128xf32>
      %cst_15 = arith.constant dense<0.000000e+00> : vector<16xf32>
      %33 = vector.multi_reduction <add>, %32, %cst_15 [1] : vector<16x128xf32> to vector<16xf32>
      %34 = vector.shape_cast %33 : vector<16xf32> to vector<16x1xf32>
      %cst_16 = arith.constant 0.020833334 : f32
      %35 = vector.broadcast %cst_16 : f32 to vector<16x1xf32>
      %36 = arith.mulf %34, %35 : vector<16x1xf32>
      %cst_17 = arith.constant 9.99999974E-6 : f32
      %37 = vector.broadcast %cst_17 : f32 to vector<16x1xf32>
      %38 = arith.addf %36, %37 : vector<16x1xf32>
      %39 = math.rsqrt %38 : vector<16x1xf32>
      %40 = vector.broadcast %39 : vector<16x1xf32> to vector<16x128xf32>
      %41 = arith.mulf %26, %40 : vector<16x128xf32>
      %c0_18 = arith.constant 0 : index
      %c0_19 = arith.constant 0 : index
      %42 = vector.load %arg3[%c0_18, %c0_19] : memref<1x128xf32, #tpu.memory_space<vmem>>, vector<1x128xf32>
      %43 = vector.broadcast %42 : vector<1x128xf32> to vector<16x128xf32>
      %44 = arith.mulf %41, %43 : vector<16x128xf32>
      %c0_20 = arith.constant 0 : index
      %c0_21 = arith.constant 0 : index
      %45 = vector.load %arg4[%c0_20, %c0_21] : memref<1x128xf32, #tpu.memory_space<vmem>>, vector<1x128xf32>
      %46 = vector.broadcast %45 : vector<1x128xf32> to vector<16x128xf32>
      %47 = arith.addf %44, %46 : vector<16x128xf32>
      %48 = arith.truncf %47 : vector<16x128xf32> to vector<16x128xbf16>
      %c0_22 = arith.constant 0 : index
      %c0_23 = arith.constant 0 : index
      %49 = vector.load %arg8[%c0_22, %c0_23] : memref<16x128xbf16, #tpu.memory_space<vmem>>, vector<16x128xbf16>
      tpu.vector_store %arg8[%c0_22, %c0_23], %48 {strides = array<i32>} : memref<16x128xbf16, #tpu.memory_space<vmem>>, vector<16x128xbf16>,
    } else {
    }
    %c0 = arith.constant 0 : index
    %c0_1 = arith.constant 0 : index
    %3 = vector.load %arg8[%c0, %c0_1] : memref<16x128xbf16, #tpu.memory_space<vmem>>, vector<16x128xbf16>
    %c0_2 = arith.constant 0 : index
    %c0_3 = arith.constant 0 : index
    %4 = vector.load %arg5[%c0_2, %c0_3] : memref<128x256xbf16, #tpu.memory_space<vmem>>, vector<128x256xbf16>
    %cst = arith.constant dense<0.000000e+00> : vector<16x256xf32>
    %5 = tpu.matmul %3, %4, %cst {dimension_numbers = #tpu.dot_dimension_numbers<[1], [0], [0], [1], [0, 0, 1, 1], [], []>} : vector<16x128xbf16>, vector<128x256xbf16>, vector<16x256xf32> -> vector<16x256xf32>
    %c0_4 = arith.constant 0 : index
    %c0_5 = arith.constant 0 : index
    %6 = vector.load %arg6[%c0_4, %c0_5] : memref<1x256xf32, #tpu.memory_space<vmem>>, vector<1x256xf32>
    %7 = vector.broadcast %6 : vector<1x256xf32> to vector<16x256xf32>
    %8 = arith.addf %5, %7 : vector<16x256xf32>
    %cst_6 = arith.constant 1.702000e+00 : f32
    %9 = vector.broadcast %cst_6 : f32 to vector<16x256xf32>
    %10 = arith.mulf %9, %8 : vector<16x256xf32>
    %11 = arith.negf %10 : vector<16x256xf32>
    %12 = math.exp %11 : vector<16x256xf32>
    %cst_7 = arith.constant 1.000000e+00 : f32
    %13 = vector.broadcast %cst_7 : f32 to vector<16x256xf32>
    %14 = arith.addf %13, %12 : vector<16x256xf32>
    %15 = arith.divf %13, %14 : vector<16x256xf32>
    %16 = arith.mulf %8, %15 : vector<16x256xf32>
    %17 = arith.truncf %16 : vector<16x256xf32> to vector<16x256xbf16>
    %c0_8 = arith.constant 0 : index
    %c0_9 = arith.constant 0 : index
    %18 = vector.load %arg7[%c0_8, %c0_9] : memref<16x256xbf16, #tpu.memory_space<vmem>>, vector<16x256xbf16>
    tpu.vector_store %arg7[%c0_8, %c0_9], %17 {strides = array<i32>} : memref<16x256xbf16, #tpu.memory_space<vmem>>, vector<16x256xbf16>,
    return
  }
  func.func @transform_0(%arg0: i32, %arg1: i32) -> (i32, i32) {
    %c0_i32 = arith.constant 0 : i32
    %c0_i32_0 = arith.constant 0 : i32
    return %arg0, %c0_i32 : i32, i32
  }
  func.func @transform_1(%arg0: i32, %arg1: i32) -> (i32, i32) {
    %c0_i32 = arith.constant 0 : i32
    %c0_i32_0 = arith.constant 0 : i32
    %c0_i32_1 = arith.constant 0 : i32
    return %c0_i32, %c0_i32_0 : i32, i32
  }
  func.func @transform_2(%arg0: i32, %arg1: i32) -> (i32, i32) {
    %c0_i32 = arith.constant 0 : i32
    %c0_i32_0 = arith.constant 0 : i32
    %c0_i32_1 = arith.constant 0 : i32
    return %c0_i32, %c0_i32_0 : i32, i32
  }
  func.func @transform_3(%arg0: i32, %arg1: i32) -> (i32, i32) {
    %c0_i32 = arith.constant 0 : i32
    %c0_i32_0 = arith.constant 0 : i32
    return %c0_i32, %arg1 : i32, i32
  }
  func.func @transform_4(%arg0: i32, %arg1: i32) -> (i32, i32) {
    %c0_i32 = arith.constant 0 : i32
    %c0_i32_0 = arith.constant 0 : i32
    return %c0_i32, %arg1 : i32, i32
  }
  func.func @transform_5(%arg0: i32, %arg1: i32) -> (i32, i32) {
    %c0_i32 = arith.constant 0 : i32
    return %arg0, %arg1 : i32, i32
  }
}

module attributes {stable_mosaic.version = 11 : i64} {
  func.func @_matmul_kernel(%arg0: i32, %arg1: i32, %arg2: i32, %arg3: memref<16x128xbf16, #tpu.memory_space<vmem>>, %arg4: memref<128x128xbf16, #tpu.memory_space<vmem>>, %arg5: memref<1x128xf32, #tpu.memory_space<vmem>>, %arg6: memref<16x128xbf16, #tpu.memory_space<vmem>>, %arg7: memref<16x128xf32, #tpu.memory_space<vmem>>) attributes {dimension_semantics = [#tpu.dimension_semantics<parallel>, #tpu.dimension_semantics<parallel>, #tpu.dimension_semantics<arbitrary>], iteration_bounds = array<i64: 1, 1, 1>, scalar_prefetch = 0 : i64, scratch_operands = 1 : i64, tpu.core_type = #tpu.core_type<tc>, window_params = [{transform_indices = @transform_0, window_bounds = array<i64: 16, 128>}, {transform_indices = @transform_1, window_bounds = array<i64: 128, 128>}, {transform_indices = @transform_2, window_bounds = array<i64: 1, 128>}, {transform_indices = @transform_3, window_bounds = array<i64: 16, 128>}]} {
    %c0_i32 = arith.constant 0 : i32
    %0 = arith.cmpi eq, %arg2, %c0_i32 : i32
    %1 = arith.extui %0 : i1 to i32
    %c0_i32_0 = arith.constant 0 : i32
    %2 = arith.cmpi ne, %1, %c0_i32_0 : i32
    scf.if %2 {
      %cst_10 = arith.constant 0.000000e+00 : f32
      %12 = vector.broadcast %cst_10 : f32 to vector<16x128xf32>
      %c0_11 = arith.constant 0 : index
      %c0_12 = arith.constant 0 : index
      %13 = vector.load %arg7[%c0_11, %c0_12] : memref<16x128xf32, #tpu.memory_space<vmem>>, vector<16x128xf32>
      tpu.vector_store %arg7[%c0_11, %c0_12], %12 {strides = array<i32>} : memref<16x128xf32, #tpu.memory_space<vmem>>, vector<16x128xf32>,
    } else {
    }
    %c0 = arith.constant 0 : index
    %c0_1 = arith.constant 0 : index
    %3 = vector.load %arg7[%c0, %c0_1] : memref<16x128xf32, #tpu.memory_space<vmem>>, vector<16x128xf32>
    %c0_2 = arith.constant 0 : index
    %c0_3 = arith.constant 0 : index
    %4 = vector.load %arg3[%c0_2, %c0_3] : memref<16x128xbf16, #tpu.memory_space<vmem>>, vector<16x128xbf16>
    %c0_4 = arith.constant 0 : index
    %c0_5 = arith.constant 0 : index
    %5 = vector.load %arg4[%c0_4, %c0_5] : memref<128x128xbf16, #tpu.memory_space<vmem>>, vector<128x128xbf16>
    %cst = arith.constant dense<0.000000e+00> : vector<16x128xf32>
    %6 = tpu.matmul %4, %5, %cst {dimension_numbers = #tpu.dot_dimension_numbers<[1], [0], [0], [1], [0, 0, 1, 1], [], []>} : vector<16x128xbf16>, vector<128x128xbf16>, vector<16x128xf32> -> vector<16x128xf32>
    %7 = arith.addf %3, %6 : vector<16x128xf32>
    %c0_6 = arith.constant 0 : index
    %c0_7 = arith.constant 0 : index
    %8 = vector.load %arg7[%c0_6, %c0_7] : memref<16x128xf32, #tpu.memory_space<vmem>>, vector<16x128xf32>
    tpu.vector_store %arg7[%c0_6, %c0_7], %7 {strides = array<i32>} : memref<16x128xf32, #tpu.memory_space<vmem>>, vector<16x128xf32>,
    %c0_i32_8 = arith.constant 0 : i32
    %9 = arith.cmpi eq, %arg2, %c0_i32_8 : i32
    %10 = arith.extui %9 : i1 to i32
    %c0_i32_9 = arith.constant 0 : i32
    %11 = arith.cmpi ne, %10, %c0_i32_9 : i32
    scf.if %11 {
      %c0_10 = arith.constant 0 : index
      %c0_11 = arith.constant 0 : index
      %12 = vector.load %arg7[%c0_10, %c0_11] : memref<16x128xf32, #tpu.memory_space<vmem>>, vector<16x128xf32>
      %c0_12 = arith.constant 0 : index
      %c0_13 = arith.constant 0 : index
      %13 = vector.load %arg5[%c0_12, %c0_13] : memref<1x128xf32, #tpu.memory_space<vmem>>, vector<1x128xf32>
      %14 = vector.broadcast %13 : vector<1x128xf32> to vector<16x128xf32>
      %15 = arith.addf %12, %14 : vector<16x128xf32>
      %16 = arith.truncf %15 : vector<16x128xf32> to vector<16x128xbf16>
      %c0_14 = arith.constant 0 : index
      %c0_15 = arith.constant 0 : index
      %17 = vector.load %arg6[%c0_14, %c0_15] : memref<16x128xbf16, #tpu.memory_space<vmem>>, vector<16x128xbf16>
      tpu.vector_store %arg6[%c0_14, %c0_15], %16 {strides = array<i32>} : memref<16x128xbf16, #tpu.memory_space<vmem>>, vector<16x128xbf16>,
    } else {
    }
    return
  }
  func.func @transform_0(%arg0: i32, %arg1: i32, %arg2: i32) -> (i32, i32) {
    %c0_i32 = arith.constant 0 : i32
    return %arg0, %arg2 : i32, i32
  }
  func.func @transform_1(%arg0: i32, %arg1: i32, %arg2: i32) -> (i32, i32) {
    %c0_i32 = arith.constant 0 : i32
    return %arg2, %arg1 : i32, i32
  }
  func.func @transform_2(%arg0: i32, %arg1: i32, %arg2: i32) -> (i32, i32) {
    %c0_i32 = arith.constant 0 : i32
    %c0_i32_0 = arith.constant 0 : i32
    return %c0_i32, %arg1 : i32, i32
  }
  func.func @transform_3(%arg0: i32, %arg1: i32, %arg2: i32) -> (i32, i32) {
    %c0_i32 = arith.constant 0 : i32
    return %arg0, %arg1 : i32, i32
  }
}

module attributes {stable_mosaic.version = 11 : i64} {
  func.func @_ln_matmul_kernel(%arg0: i32, %arg1: i32, %arg2: memref<32x128xbf16, #tpu.memory_space<vmem>>, %arg3: memref<1x128xf32, #tpu.memory_space<vmem>>, %arg4: memref<1x128xf32, #tpu.memory_space<vmem>>, %arg5: memref<128x128xbf16, #tpu.memory_space<vmem>>, %arg6: memref<1x128xf32, #tpu.memory_space<vmem>>, %arg7: memref<32x128xbf16, #tpu.memory_space<vmem>>, %arg8: memref<32x128xbf16, #tpu.memory_space<vmem>>) attributes {dimension_semantics = [#tpu.dimension_semantics<parallel>, #tpu.dimension_semantics<arbitrary>], iteration_bounds = array<i64: 1, 3>, scalar_prefetch = 0 : i64, scratch_operands = 1 : i64, tpu.core_type = #tpu.core_type<tc>, window_params = [{transform_indices = @transform_0, window_bounds = array<i64: 32, 128>}, {pipeline_mode = #tpu.pipeline_mode<synchronous>, transform_indices = @transform_1, window_bounds = array<i64: 1, 128>}, {pipeline_mode = #tpu.pipeline_mode<synchronous>, transform_indices = @transform_2, window_bounds = array<i64: 1, 128>}, {transform_indices = @transform_3, window_bounds = array<i64: 128, 128>}, {transform_indices = @transform_4, window_bounds = array<i64: 1, 128>}, {transform_indices = @transform_5, window_bounds = array<i64: 32, 128>}]} {
    %c0_i32 = arith.constant 0 : i32
    %0 = arith.cmpi eq, %arg1, %c0_i32 : i32
    %1 = arith.extui %0 : i1 to i32
    %c0_i32_0 = arith.constant 0 : i32
    %2 = arith.cmpi ne, %1, %c0_i32_0 : i32
    scf.if %2 {
      %c0_8 = arith.constant 0 : index
      %c0_9 = arith.constant 0 : index
      %11 = vector.load %arg2[%c0_8, %c0_9] : memref<32x128xbf16, #tpu.memory_space<vmem>>, vector<32x128xbf16>
      %12 = arith.extf %11 : vector<32x128xbf16> to vector<32x128xf32>
      %cst_10 = arith.constant dense<0.000000e+00> : vector<32xf32>
      %13 = vector.multi_reduction <add>, %12, %cst_10 [1] : vector<32x128xf32> to vector<32xf32>
      %14 = vector.shape_cast %13 : vector<32xf32> to vector<32x1xf32>
      %cst_11 = arith.constant 3.125000e-02 : f32
      %15 = vector.broadcast %cst_11 : f32 to vector<32x1xf32>
      %16 = arith.mulf %14, %15 : vector<32x1xf32>
      %17 = vector.broadcast %16 : vector<32x1xf32> to vector<32x128xf32>
      %18 = arith.subf %12, %17 : vector<32x128xf32>
      %19 = tpu.iota {dimensions = array<i32: 1>} : vector<32x128xi32>
      %c32_i32 = arith.constant 32 : i32
      %20 = vector.broadcast %c32_i32 : i32 to vector<32x128xi32>
      %21 = arith.cmpi slt, %19, %20 : vector<32x128xi32>
      %cst_12 = arith.constant 0.000000e+00 : f32
      %22 = vector.broadcast %cst_12 : f32 to vector<32x128xf32>
      %23 = arith.select %21, %18, %22 : vector<32x128xi1>, vector<32x128xf32>
      %24 = arith.mulf %23, %23 : vector<32x128xf32>
      %cst_13 = arith.constant dense<0.000000e+00> : vector<32xf32>
      %25 = vector.multi_reduction <add>, %24, %cst_13 [1] : vector<32x128xf32> to vector<32xf32>
      %26 = vector.shape_cast %25 : vector<32xf32> to vector<32x1xf32>
      %cst_14 = arith.constant 3.125000e-02 : f32
      %27 = vector.broadcast %cst_14 : f32 to vector<32x1xf32>
      %28 = arith.mulf %26, %27 : vector<32x1xf32>
      %cst_15 = arith.constant 9.99999974E-6 : f32
      %29 = vector.broadcast %cst_15 : f32 to vector<32x1xf32>
      %30 = arith.addf %28, %29 : vector<32x1xf32>
      %31 = math.rsqrt %30 : vector<32x1xf32>
      %32 = vector.broadcast %31 : vector<32x1xf32> to vector<32x128xf32>
      %33 = arith.mulf %18, %32 : vector<32x128xf32>
      %c0_16 = arith.constant 0 : index
      %c0_17 = arith.constant 0 : index
      %34 = vector.load %arg3[%c0_16, %c0_17] : memref<1x128xf32, #tpu.memory_space<vmem>>, vector<1x128xf32>
      %35 = vector.broadcast %34 : vector<1x128xf32> to vector<32x128xf32>
      %36 = arith.mulf %33, %35 : vector<32x128xf32>
      %c0_18 = arith.constant 0 : index
      %c0_19 = arith.constant 0 : index
      %37 = vector.load %arg4[%c0_18, %c0_19] : memref<1x128xf32, #tpu.memory_space<vmem>>, vector<1x128xf32>
      %38 = vector.broadcast %37 : vector<1x128xf32> to vector<32x128xf32>
      %39 = arith.addf %36, %38 : vector<32x128xf32>
      %40 = arith.truncf %39 : vector<32x128xf32> to vector<32x128xbf16>
      %c0_20 = arith.constant 0 : index
      %c0_21 = arith.constant 0 : index
      %41 = vector.load %arg8[%c0_20, %c0_21] : memref<32x128xbf16, #tpu.memory_space<vmem>>, vector<32x128xbf16>
      tpu.vector_store %arg8[%c0_20, %c0_21], %40 {strides = array<i32>} : memref<32x128xbf16, #tpu.memory_space<vmem>>, vector<32x128xbf16>,
    } else {
    }
    %c0 = arith.constant 0 : index
    %c0_1 = arith.constant 0 : index
    %3 = vector.load %arg8[%c0, %c0_1] : memref<32x128xbf16, #tpu.memory_space<vmem>>, vector<32x128xbf16>
    %c0_2 = arith.constant 0 : index
    %c0_3 = arith.constant 0 : index
    %4 = vector.load %arg5[%c0_2, %c0_3] : memref<128x128xbf16, #tpu.memory_space<vmem>>, vector<128x128xbf16>
    %cst = arith.constant dense<0.000000e+00> : vector<32x128xf32>
    %5 = tpu.matmul %3, %4, %cst {dimension_numbers = #tpu.dot_dimension_numbers<[1], [0], [0], [1], [0, 0, 1, 1], [], []>} : vector<32x128xbf16>, vector<128x128xbf16>, vector<32x128xf32> -> vector<32x128xf32>
    %c0_4 = arith.constant 0 : index
    %c0_5 = arith.constant 0 : index
    %6 = vector.load %arg6[%c0_4, %c0_5] : memref<1x128xf32, #tpu.memory_space<vmem>>, vector<1x128xf32>
    %7 = vector.broadcast %6 : vector<1x128xf32> to vector<32x128xf32>
    %8 = arith.addf %5, %7 : vector<32x128xf32>
    %9 = arith.truncf %8 : vector<32x128xf32> to vector<32x128xbf16>
    %c0_6 = arith.constant 0 : index
    %c0_7 = arith.constant 0 : index
    %10 = vector.load %arg7[%c0_6, %c0_7] : memref<32x128xbf16, #tpu.memory_space<vmem>>, vector<32x128xbf16>
    tpu.vector_store %arg7[%c0_6, %c0_7], %9 {strides = array<i32>} : memref<32x128xbf16, #tpu.memory_space<vmem>>, vector<32x128xbf16>,
    return
  }
  func.func @transform_0(%arg0: i32, %arg1: i32) -> (i32, i32) {
    %c0_i32 = arith.constant 0 : i32
    %c0_i32_0 = arith.constant 0 : i32
    return %arg0, %c0_i32 : i32, i32
  }
  func.func @transform_1(%arg0: i32, %arg1: i32) -> (i32, i32) {
    %c0_i32 = arith.constant 0 : i32
    %c0_i32_0 = arith.constant 0 : i32
    %c0_i32_1 = arith.constant 0 : i32
    return %c0_i32, %c0_i32_0 : i32, i32
  }
  func.func @transform_2(%arg0: i32, %arg1: i32) -> (i32, i32) {
    %c0_i32 = arith.constant 0 : i32
    %c0_i32_0 = arith.constant 0 : i32
    %c0_i32_1 = arith.constant 0 : i32
    return %c0_i32, %c0_i32_0 : i32, i32
  }
  func.func @transform_3(%arg0: i32, %arg1: i32) -> (i32, i32) {
    %c0_i32 = arith.constant 0 : i32
    %c0_i32_0 = arith.constant 0 : i32
    return %c0_i32, %arg1 : i32, i32
  }
  func.func @transform_4(%arg0: i32, %arg1: i32) -> (i32, i32) {
    %c0_i32 = arith.constant 0 : i32
    %c0_i32_0 = arith.constant 0 : i32
    return %c0_i32, %arg1 : i32, i32
  }
  func.func @transform_5(%arg0: i32, %arg1: i32) -> (i32, i32) {
    %c0_i32 = arith.constant 0 : i32
    return %arg0, %arg1 : i32, i32
  }
}

module attributes {stable_mosaic.version = 11 : i64} {
  func.func @_mha_kernel(%arg0: i32, %arg1: memref<1x16x384xbf16, #tpu.memory_space<vmem>>, %arg2: memref<1x1x16xf32, #tpu.memory_space<vmem>>, %arg3: memref<1x16x128xbf16, #tpu.memory_space<vmem>>, %arg4: memref<1x4x16x16xbf16, #tpu.memory_space<vmem>>, %arg5: memref<16x128xf32, #tpu.memory_space<vmem>>) attributes {dimension_semantics = [#tpu.dimension_semantics<parallel>], iteration_bounds = array<i64: 2>, scalar_prefetch = 0 : i64, scratch_operands = 1 : i64, tpu.core_type = #tpu.core_type<tc>, window_params = [{transform_indices = @transform_0, window_bounds = array<i64: 1, 16, 384>}, {transform_indices = @transform_1, window_bounds = array<i64: 1, 1, 16>}, {transform_indices = @transform_2, window_bounds = array<i64: 1, 16, 128>}, {transform_indices = @transform_3, window_bounds = array<i64: 1, 4, 16, 16>}]} {
    %c0 = arith.constant 0 : index
    %c0_0 = arith.constant 0 : index
    %c0_1 = arith.constant 0 : index
    %0 = vector.load %arg1[%c0, %c0_0, %c0_1] : memref<1x16x384xbf16, #tpu.memory_space<vmem>>, vector<1x16x384xbf16>
    %1 = vector.shape_cast %0 : vector<1x16x384xbf16> to vector<16x384xbf16>
    %c0_2 = arith.constant 0 : index
    %c0_3 = arith.constant 0 : index
    %c0_4 = arith.constant 0 : index
    %2 = vector.load %arg2[%c0_2, %c0_3, %c0_4] : memref<1x1x16xf32, #tpu.memory_space<vmem>>, vector<1x1x16xf32>
    %3 = vector.shape_cast %2 : vector<1x1x16xf32> to vector<1x16xf32>
    %cst = arith.constant 5.000000e-01 : f32
    %4 = vector.broadcast %cst : f32 to vector<1x16xf32>
    %5 = arith.cmpf oge, %3, %4 : vector<1x16xf32>
    %cst_5 = arith.constant 0.000000e+00 : f32
    %6 = vector.broadcast %cst_5 : f32 to vector<16x128xf32>
    %c0_6 = arith.constant 0 : index
    %c0_7 = arith.constant 0 : index
    %7 = vector.load %arg5[%c0_6, %c0_7] : memref<16x128xf32, #tpu.memory_space<vmem>>, vector<16x128xf32>
    tpu.vector_store %arg5[%c0_6, %c0_7], %6 {strides = array<i32>} : memref<16x128xf32, #tpu.memory_space<vmem>>, vector<16x128xf32>,
    %8 = vector.extract_strided_slice %1 {offsets = [0, 0], sizes = [16, 8], strides = [1, 1]} : vector<16x384xbf16> to vector<16x8xbf16>
    %9 = vector.extract_strided_slice %1 {offsets = [0, 128], sizes = [16, 8], strides = [1, 1]} : vector<16x384xbf16> to vector<16x8xbf16>
    %10 = vector.extract_strided_slice %1 {offsets = [0, 256], sizes = [16, 8], strides = [1, 1]} : vector<16x384xbf16> to vector<16x8xbf16>
    %cst_8 = arith.constant dense<0.000000e+00> : vector<16x16xf32>
    %11 = tpu.matmul %8, %9, %cst_8 {dimension_numbers = #tpu.dot_dimension_numbers<[1], [1], [0], [0], [0, 0, 1, 0], [], []>} : vector<16x8xbf16>, vector<16x8xbf16>, vector<16x16xf32> -> vector<16x16xf32>
    %cst_9 = arith.constant 0.353553385 : f32
    %12 = vector.broadcast %cst_9 : f32 to vector<16x16xf32>
    %13 = arith.mulf %11, %12 : vector<16x16xf32>
    %cst_10 = arith.constant -1.000000e+09 : f32
    %14 = vector.shape_cast %5 : vector<1x16xi1> to vector<1x16xi1>
    %15 = vector.broadcast %14 : vector<1x16xi1> to vector<16x16xi1>
    %16 = vector.broadcast %cst_10 : f32 to vector<16x16xf32>
    %17 = arith.select %15, %13, %16 : vector<16x16xi1>, vector<16x16xf32>
    %cst_11 = arith.constant dense<0xFF800000> : vector<16xf32>
    %18 = vector.multi_reduction <maximumf>, %17, %cst_11 [1] : vector<16x16xf32> to vector<16xf32>
    %19 = vector.shape_cast %18 : vector<16xf32> to vector<16x1xf32>
    %20 = vector.broadcast %19 : vector<16x1xf32> to vector<16x16xf32>
    %21 = arith.subf %17, %20 : vector<16x16xf32>
    %22 = math.exp %21 : vector<16x16xf32>
    %cst_12 = arith.constant dense<0.000000e+00> : vector<16xf32>
    %23 = vector.multi_reduction <add>, %22, %cst_12 [1] : vector<16x16xf32> to vector<16xf32>
    %24 = vector.shape_cast %23 : vector<16xf32> to vector<16x1xf32>
    %25 = tpu.reciprocal %24 : vector<16x1xf32> -> vector<16x1xf32>
    %26 = vector.broadcast %25 : vector<16x1xf32> to vector<16x16xf32>
    %27 = arith.mulf %22, %26 : vector<16x16xf32>
    %28 = arith.truncf %27 : vector<16x16xf32> to vector<16x16xbf16>
    %c0_13 = arith.constant 0 : index
    %c0_14 = arith.constant 0 : index
    %c0_15 = arith.constant 0 : index
    %c0_16 = arith.constant 0 : index
    %29 = vector.load %arg4[%c0_13, %c0_14, %c0_15, %c0_16] : memref<1x4x16x16xbf16, #tpu.memory_space<vmem>>, vector<1x1x16x16xbf16>
    %30 = vector.shape_cast %29 : vector<1x1x16x16xbf16> to vector<16x16xbf16>
    %31 = vector.shape_cast %28 : vector<16x16xbf16> to vector<1x1x16x16xbf16>
    tpu.vector_store %arg4[%c0_13, %c0_14, %c0_15, %c0_16], %31 {strides = array<i32>} : memref<1x4x16x16xbf16, #tpu.memory_space<vmem>>, vector<1x1x16x16xbf16>,
    %32 = arith.truncf %27 : vector<16x16xf32> to vector<16x16xbf16>
    %cst_17 = arith.constant dense<0.000000e+00> : vector<16x8xf32>
    %33 = tpu.matmul %32, %10, %cst_17 {dimension_numbers = #tpu.dot_dimension_numbers<[1], [0], [0], [1], [0, 0, 1, 1], [], []>} : vector<16x16xbf16>, vector<16x8xbf16>, vector<16x8xf32> -> vector<16x8xf32>
    %c0_18 = arith.constant 0 : index
    %c0_19 = arith.constant 0 : index
    %34 = vector.load %arg5[%c0_18, %c0_19] : memref<16x128xf32, #tpu.memory_space<vmem>>, vector<16x8xf32>
    tpu.vector_store %arg5[%c0_18, %c0_19], %33 {strides = array<i32>} : memref<16x128xf32, #tpu.memory_space<vmem>>, vector<16x8xf32>,
    %35 = vector.extract_strided_slice %1 {offsets = [0, 8], sizes = [16, 8], strides = [1, 1]} : vector<16x384xbf16> to vector<16x8xbf16>
    %36 = vector.extract_strided_slice %1 {offsets = [0, 136], sizes = [16, 8], strides = [1, 1]} : vector<16x384xbf16> to vector<16x8xbf16>
    %37 = vector.extract_strided_slice %1 {offsets = [0, 264], sizes = [16, 8], strides = [1, 1]} : vector<16x384xbf16> to vector<16x8xbf16>
    %cst_20 = arith.constant dense<0.000000e+00> : vector<16x16xf32>
    %38 = tpu.matmul %35, %36, %cst_20 {dimension_numbers = #tpu.dot_dimension_numbers<[1], [1], [0], [0], [0, 0, 1, 0], [], []>} : vector<16x8xbf16>, vector<16x8xbf16>, vector<16x16xf32> -> vector<16x16xf32>
    %cst_21 = arith.constant 0.353553385 : f32
    %39 = vector.broadcast %cst_21 : f32 to vector<16x16xf32>
    %40 = arith.mulf %38, %39 : vector<16x16xf32>
    %cst_22 = arith.constant -1.000000e+09 : f32
    %41 = vector.shape_cast %5 : vector<1x16xi1> to vector<1x16xi1>
    %42 = vector.broadcast %41 : vector<1x16xi1> to vector<16x16xi1>
    %43 = vector.broadcast %cst_22 : f32 to vector<16x16xf32>
    %44 = arith.select %42, %40, %43 : vector<16x16xi1>, vector<16x16xf32>
    %cst_23 = arith.constant dense<0xFF800000> : vector<16xf32>
    %45 = vector.multi_reduction <maximumf>, %44, %cst_23 [1] : vector<16x16xf32> to vector<16xf32>
    %46 = vector.shape_cast %45 : vector<16xf32> to vector<16x1xf32>
    %47 = vector.broadcast %46 : vector<16x1xf32> to vector<16x16xf32>
    %48 = arith.subf %44, %47 : vector<16x16xf32>
    %49 = math.exp %48 : vector<16x16xf32>
    %cst_24 = arith.constant dense<0.000000e+00> : vector<16xf32>
    %50 = vector.multi_reduction <add>, %49, %cst_24 [1] : vector<16x16xf32> to vector<16xf32>
    %51 = vector.shape_cast %50 : vector<16xf32> to vector<16x1xf32>
    %52 = tpu.reciprocal %51 : vector<16x1xf32> -> vector<16x1xf32>
    %53 = vector.broadcast %52 : vector<16x1xf32> to vector<16x16xf32>
    %54 = arith.mulf %49, %53 : vector<16x16xf32>
    %55 = arith.truncf %54 : vector<16x16xf32> to vector<16x16xbf16>
    %c0_25 = arith.constant 0 : index
    %c1 = arith.constant 1 : index
    %c0_26 = arith.constant 0 : index
    %c0_27 = arith.constant 0 : index
    %56 = vector.load %arg4[%c0_25, %c1, %c0_26, %c0_27] : memref<1x4x16x16xbf16, #tpu.memory_space<vmem>>, vector<1x1x16x16xbf16>
    %57 = vector.shape_cast %56 : vector<1x1x16x16xbf16> to vector<16x16xbf16>
    %58 = vector.shape_cast %55 : vector<16x16xbf16> to vector<1x1x16x16xbf16>
    tpu.vector_store %arg4[%c0_25, %c1, %c0_26, %c0_27], %58 {strides = array<i32>} : memref<1x4x16x16xbf16, #tpu.memory_space<vmem>>, vector<1x1x16x16xbf16>,
    %59 = arith.truncf %54 : vector<16x16xf32> to vector<16x16xbf16>
    %cst_28 = arith.constant dense<0.000000e+00> : vector<16x8xf32>
    %60 = tpu.matmul %59, %37, %cst_28 {dimension_numbers = #tpu.dot_dimension_numbers<[1], [0], [0], [1], [0, 0, 1, 1], [], []>} : vector<16x16xbf16>, vector<16x8xbf16>, vector<16x8xf32> -> vector<16x8xf32>
    %c0_29 = arith.constant 0 : index
    %c8 = arith.constant 8 : index
    %61 = vector.load %arg5[%c0_29, %c8] : memref<16x128xf32, #tpu.memory_space<vmem>>, vector<16x8xf32>
    tpu.vector_store %arg5[%c0_29, %c8], %60 {strides = array<i32>} : memref<16x128xf32, #tpu.memory_space<vmem>>, vector<16x8xf32>,
    %62 = vector.extract_strided_slice %1 {offsets = [0, 16], sizes = [16, 8], strides = [1, 1]} : vector<16x384xbf16> to vector<16x8xbf16>
    %63 = vector.extract_strided_slice %1 {offsets = [0, 144], sizes = [16, 8], strides = [1, 1]} : vector<16x384xbf16> to vector<16x8xbf16>
    %64 = vector.extract_strided_slice %1 {offsets = [0, 272], sizes = [16, 8], strides = [1, 1]} : vector<16x384xbf16> to vector<16x8xbf16>
    %cst_30 = arith.constant dense<0.000000e+00> : vector<16x16xf32>
    %65 = tpu.matmul %62, %63, %cst_30 {dimension_numbers = #tpu.dot_dimension_numbers<[1], [1], [0], [0], [0, 0, 1, 0], [], []>} : vector<16x8xbf16>, vector<16x8xbf16>, vector<16x16xf32> -> vector<16x16xf32>
    %cst_31 = arith.constant 0.353553385 : f32
    %66 = vector.broadcast %cst_31 : f32 to vector<16x16xf32>
    %67 = arith.mulf %65, %66 : vector<16x16xf32>
    %cst_32 = arith.constant -1.000000e+09 : f32
    %68 = vector.shape_cast %5 : vector<1x16xi1> to vector<1x16xi1>
    %69 = vector.broadcast %68 : vector<1x16xi1> to vector<16x16xi1>
    %70 = vector.broadcast %cst_32 : f32 to vector<16x16xf32>
    %71 = arith.select %69, %67, %70 : vector<16x16xi1>, vector<16x16xf32>
    %cst_33 = arith.constant dense<0xFF800000> : vector<16xf32>
    %72 = vector.multi_reduction <maximumf>, %71, %cst_33 [1] : vector<16x16xf32> to vector<16xf32>
    %73 = vector.shape_cast %72 : vector<16xf32> to vector<16x1xf32>
    %74 = vector.broadcast %73 : vector<16x1xf32> to vector<16x16xf32>
    %75 = arith.subf %71, %74 : vector<16x16xf32>
    %76 = math.exp %75 : vector<16x16xf32>
    %cst_34 = arith.constant dense<0.000000e+00> : vector<16xf32>
    %77 = vector.multi_reduction <add>, %76, %cst_34 [1] : vector<16x16xf32> to vector<16xf32>
    %78 = vector.shape_cast %77 : vector<16xf32> to vector<16x1xf32>
    %79 = tpu.reciprocal %78 : vector<16x1xf32> -> vector<16x1xf32>
    %80 = vector.broadcast %79 : vector<16x1xf32> to vector<16x16xf32>
    %81 = arith.mulf %76, %80 : vector<16x16xf32>
    %82 = arith.truncf %81 : vector<16x16xf32> to vector<16x16xbf16>
    %c0_35 = arith.constant 0 : index
    %c2 = arith.constant 2 : index
    %c0_36 = arith.constant 0 : index
    %c0_37 = arith.constant 0 : index
    %83 = vector.load %arg4[%c0_35, %c2, %c0_36, %c0_37] : memref<1x4x16x16xbf16, #tpu.memory_space<vmem>>, vector<1x1x16x16xbf16>
    %84 = vector.shape_cast %83 : vector<1x1x16x16xbf16> to vector<16x16xbf16>
    %85 = vector.shape_cast %82 : vector<16x16xbf16> to vector<1x1x16x16xbf16>
    tpu.vector_store %arg4[%c0_35, %c2, %c0_36, %c0_37], %85 {strides = array<i32>} : memref<1x4x16x16xbf16, #tpu.memory_space<vmem>>, vector<1x1x16x16xbf16>,
    %86 = arith.truncf %81 : vector<16x16xf32> to vector<16x16xbf16>
    %cst_38 = arith.constant dense<0.000000e+00> : vector<16x8xf32>
    %87 = tpu.matmul %86, %64, %cst_38 {dimension_numbers = #tpu.dot_dimension_numbers<[1], [0], [0], [1], [0, 0, 1, 1], [], []>} : vector<16x16xbf16>, vector<16x8xbf16>, vector<16x8xf32> -> vector<16x8xf32>
    %c0_39 = arith.constant 0 : index
    %c16 = arith.constant 16 : index
    %88 = vector.load %arg5[%c0_39, %c16] : memref<16x128xf32, #tpu.memory_space<vmem>>, vector<16x8xf32>
    tpu.vector_store %arg5[%c0_39, %c16], %87 {strides = array<i32>} : memref<16x128xf32, #tpu.memory_space<vmem>>, vector<16x8xf32>,
    %89 = vector.extract_strided_slice %1 {offsets = [0, 24], sizes = [16, 8], strides = [1, 1]} : vector<16x384xbf16> to vector<16x8xbf16>
    %90 = vector.extract_strided_slice %1 {offsets = [0, 152], sizes = [16, 8], strides = [1, 1]} : vector<16x384xbf16> to vector<16x8xbf16>
    %91 = vector.extract_strided_slice %1 {offsets = [0, 280], sizes = [16, 8], strides = [1, 1]} : vector<16x384xbf16> to vector<16x8xbf16>
    %cst_40 = arith.constant dense<0.000000e+00> : vector<16x16xf32>
    %92 = tpu.matmul %89, %90, %cst_40 {dimension_numbers = #tpu.dot_dimension_numbers<[1], [1], [0], [0], [0, 0, 1, 0], [], []>} : vector<16x8xbf16>, vector<16x8xbf16>, vector<16x16xf32> -> vector<16x16xf32>
    %cst_41 = arith.constant 0.353553385 : f32
    %93 = vector.broadcast %cst_41 : f32 to vector<16x16xf32>
    %94 = arith.mulf %92, %93 : vector<16x16xf32>
    %cst_42 = arith.constant -1.000000e+09 : f32
    %95 = vector.shape_cast %5 : vector<1x16xi1> to vector<1x16xi1>
    %96 = vector.broadcast %95 : vector<1x16xi1> to vector<16x16xi1>
    %97 = vector.broadcast %cst_42 : f32 to vector<16x16xf32>
    %98 = arith.select %96, %94, %97 : vector<16x16xi1>, vector<16x16xf32>
    %cst_43 = arith.constant dense<0xFF800000> : vector<16xf32>
    %99 = vector.multi_reduction <maximumf>, %98, %cst_43 [1] : vector<16x16xf32> to vector<16xf32>
    %100 = vector.shape_cast %99 : vector<16xf32> to vector<16x1xf32>
    %101 = vector.broadcast %100 : vector<16x1xf32> to vector<16x16xf32>
    %102 = arith.subf %98, %101 : vector<16x16xf32>
    %103 = math.exp %102 : vector<16x16xf32>
    %cst_44 = arith.constant dense<0.000000e+00> : vector<16xf32>
    %104 = vector.multi_reduction <add>, %103, %cst_44 [1] : vector<16x16xf32> to vector<16xf32>
    %105 = vector.shape_cast %104 : vector<16xf32> to vector<16x1xf32>
    %106 = tpu.reciprocal %105 : vector<16x1xf32> -> vector<16x1xf32>
    %107 = vector.broadcast %106 : vector<16x1xf32> to vector<16x16xf32>
    %108 = arith.mulf %103, %107 : vector<16x16xf32>
    %109 = arith.truncf %108 : vector<16x16xf32> to vector<16x16xbf16>
    %c0_45 = arith.constant 0 : index
    %c3 = arith.constant 3 : index
    %c0_46 = arith.constant 0 : index
    %c0_47 = arith.constant 0 : index
    %110 = vector.load %arg4[%c0_45, %c3, %c0_46, %c0_47] : memref<1x4x16x16xbf16, #tpu.memory_space<vmem>>, vector<1x1x16x16xbf16>
    %111 = vector.shape_cast %110 : vector<1x1x16x16xbf16> to vector<16x16xbf16>
    %112 = vector.shape_cast %109 : vector<16x16xbf16> to vector<1x1x16x16xbf16>
    tpu.vector_store %arg4[%c0_45, %c3, %c0_46, %c0_47], %112 {strides = array<i32>} : memref<1x4x16x16xbf16, #tpu.memory_space<vmem>>, vector<1x1x16x16xbf16>,
    %113 = arith.truncf %108 : vector<16x16xf32> to vector<16x16xbf16>
    %cst_48 = arith.constant dense<0.000000e+00> : vector<16x8xf32>
    %114 = tpu.matmul %113, %91, %cst_48 {dimension_numbers = #tpu.dot_dimension_numbers<[1], [0], [0], [1], [0, 0, 1, 1], [], []>} : vector<16x16xbf16>, vector<16x8xbf16>, vector<16x8xf32> -> vector<16x8xf32>
    %c0_49 = arith.constant 0 : index
    %c24 = arith.constant 24 : index
    %115 = vector.load %arg5[%c0_49, %c24] : memref<16x128xf32, #tpu.memory_space<vmem>>, vector<16x8xf32>
    tpu.vector_store %arg5[%c0_49, %c24], %114 {strides = array<i32>} : memref<16x128xf32, #tpu.memory_space<vmem>>, vector<16x8xf32>,
    %c0_50 = arith.constant 0 : index
    %c0_51 = arith.constant 0 : index
    %116 = vector.load %arg5[%c0_50, %c0_51] : memref<16x128xf32, #tpu.memory_space<vmem>>, vector<16x128xf32>
    %117 = arith.truncf %116 : vector<16x128xf32> to vector<16x128xbf16>
    %c0_52 = arith.constant 0 : index
    %c0_53 = arith.constant 0 : index
    %c0_54 = arith.constant 0 : index
    %118 = vector.load %arg3[%c0_52, %c0_53, %c0_54] : memref<1x16x128xbf16, #tpu.memory_space<vmem>>, vector<1x16x128xbf16>
    %119 = vector.shape_cast %118 : vector<1x16x128xbf16> to vector<16x128xbf16>
    %120 = vector.shape_cast %117 : vector<16x128xbf16> to vector<1x16x128xbf16>
    tpu.vector_store %arg3[%c0_52, %c0_53, %c0_54], %120 {strides = array<i32>} : memref<1x16x128xbf16, #tpu.memory_space<vmem>>, vector<1x16x128xbf16>,
    return
  }
  func.func @transform_0(%arg0: i32) -> (i32, i32, i32) {
    %c0_i32 = arith.constant 0 : i32
    %c0_i32_0 = arith.constant 0 : i32
    %c0_i32_1 = arith.constant 0 : i32
    return %arg0, %c0_i32, %c0_i32_0 : i32, i32, i32
  }
  func.func @transform_1(%arg0: i32) -> (i32, i32, i32) {
    %c0_i32 = arith.constant 0 : i32
    %c0_i32_0 = arith.constant 0 : i32
    %c0_i32_1 = arith.constant 0 : i32
    return %arg0, %c0_i32, %c0_i32_0 : i32, i32, i32
  }
  func.func @transform_2(%arg0: i32) -> (i32, i32, i32) {
    %c0_i32 = arith.constant 0 : i32
    %c0_i32_0 = arith.constant 0 : i32
    %c0_i32_1 = arith.constant 0 : i32
    return %arg0, %c0_i32, %c0_i32_0 : i32, i32, i32
  }
  func.func @transform_3(%arg0: i32) -> (i32, i32, i32, i32) {
    %c0_i32 = arith.constant 0 : i32
    %c0_i32_0 = arith.constant 0 : i32
    %c0_i32_1 = arith.constant 0 : i32
    %c0_i32_2 = arith.constant 0 : i32
    return %arg0, %c0_i32, %c0_i32_0, %c0_i32_1 : i32, i32, i32, i32
  }
}

module attributes {stable_mosaic.version = 11 : i64} {
  func.func @_matmul_kernel(%arg0: i32, %arg1: i32, %arg2: i32, %arg3: memref<32x128xbf16, #tpu.memory_space<vmem>>, %arg4: memref<128x128xbf16, #tpu.memory_space<vmem>>, %arg5: memref<1x128xf32, #tpu.memory_space<vmem>>, %arg6: memref<32x128xbf16, #tpu.memory_space<vmem>>, %arg7: memref<32x128xbf16, #tpu.memory_space<vmem>>, %arg8: memref<32x128xf32, #tpu.memory_space<vmem>>) attributes {dimension_semantics = [#tpu.dimension_semantics<parallel>, #tpu.dimension_semantics<parallel>, #tpu.dimension_semantics<arbitrary>], iteration_bounds = array<i64: 1, 1, 1>, scalar_prefetch = 0 : i64, scratch_operands = 1 : i64, tpu.core_type = #tpu.core_type<tc>, window_params = [{transform_indices = @transform_0, window_bounds = array<i64: 32, 128>}, {transform_indices = @transform_1, window_bounds = array<i64: 128, 128>}, {transform_indices = @transform_2, window_bounds = array<i64: 1, 128>}, {transform_indices = @transform_3, window_bounds = array<i64: 32, 128>}, {transform_indices = @transform_4, window_bounds = array<i64: 32, 128>}]} {
    %c0_i32 = arith.constant 0 : i32
    %0 = arith.cmpi eq, %arg2, %c0_i32 : i32
    %1 = arith.extui %0 : i1 to i32
    %c0_i32_0 = arith.constant 0 : i32
    %2 = arith.cmpi ne, %1, %c0_i32_0 : i32
    scf.if %2 {
      %cst_10 = arith.constant 0.000000e+00 : f32
      %12 = vector.broadcast %cst_10 : f32 to vector<32x128xf32>
      %c0_11 = arith.constant 0 : index
      %c0_12 = arith.constant 0 : index
      %13 = vector.load %arg8[%c0_11, %c0_12] : memref<32x128xf32, #tpu.memory_space<vmem>>, vector<32x128xf32>
      tpu.vector_store %arg8[%c0_11, %c0_12], %12 {strides = array<i32>} : memref<32x128xf32, #tpu.memory_space<vmem>>, vector<32x128xf32>,
    } else {
    }
    %c0 = arith.constant 0 : index
    %c0_1 = arith.constant 0 : index
    %3 = vector.load %arg8[%c0, %c0_1] : memref<32x128xf32, #tpu.memory_space<vmem>>, vector<32x128xf32>
    %c0_2 = arith.constant 0 : index
    %c0_3 = arith.constant 0 : index
    %4 = vector.load %arg3[%c0_2, %c0_3] : memref<32x128xbf16, #tpu.memory_space<vmem>>, vector<32x128xbf16>
    %c0_4 = arith.constant 0 : index
    %c0_5 = arith.constant 0 : index
    %5 = vector.load %arg4[%c0_4, %c0_5] : memref<128x128xbf16, #tpu.memory_space<vmem>>, vector<128x128xbf16>
    %cst = arith.constant dense<0.000000e+00> : vector<32x128xf32>
    %6 = tpu.matmul %4, %5, %cst {dimension_numbers = #tpu.dot_dimension_numbers<[1], [0], [0], [1], [0, 0, 1, 1], [], []>} : vector<32x128xbf16>, vector<128x128xbf16>, vector<32x128xf32> -> vector<32x128xf32>
    %7 = arith.addf %3, %6 : vector<32x128xf32>
    %c0_6 = arith.constant 0 : index
    %c0_7 = arith.constant 0 : index
    %8 = vector.load %arg8[%c0_6, %c0_7] : memref<32x128xf32, #tpu.memory_space<vmem>>, vector<32x128xf32>
    tpu.vector_store %arg8[%c0_6, %c0_7], %7 {strides = array<i32>} : memref<32x128xf32, #tpu.memory_space<vmem>>, vector<32x128xf32>,
    %c0_i32_8 = arith.constant 0 : i32
    %9 = arith.cmpi eq, %arg2, %c0_i32_8 : i32
    %10 = arith.extui %9 : i1 to i32
    %c0_i32_9 = arith.constant 0 : i32
    %11 = arith.cmpi ne, %10, %c0_i32_9 : i32
    scf.if %11 {
      %c0_10 = arith.constant 0 : index
      %c0_11 = arith.constant 0 : index
      %12 = vector.load %arg8[%c0_10, %c0_11] : memref<32x128xf32, #tpu.memory_space<vmem>>, vector<32x128xf32>
      %c0_12 = arith.constant 0 : index
      %c0_13 = arith.constant 0 : index
      %13 = vector.load %arg5[%c0_12, %c0_13] : memref<1x128xf32, #tpu.memory_space<vmem>>, vector<1x128xf32>
      %14 = vector.broadcast %13 : vector<1x128xf32> to vector<32x128xf32>
      %15 = arith.addf %12, %14 : vector<32x128xf32>
      %c0_14 = arith.constant 0 : index
      %c0_15 = arith.constant 0 : index
      %16 = vector.load %arg6[%c0_14, %c0_15] : memref<32x128xbf16, #tpu.memory_space<vmem>>, vector<32x128xbf16>
      %17 = arith.extf %16 : vector<32x128xbf16> to vector<32x128xf32>
      %18 = arith.addf %15, %17 : vector<32x128xf32>
      %19 = arith.truncf %18 : vector<32x128xf32> to vector<32x128xbf16>
      %c0_16 = arith.constant 0 : index
      %c0_17 = arith.constant 0 : index
      %20 = vector.load %arg7[%c0_16, %c0_17] : memref<32x128xbf16, #tpu.memory_space<vmem>>, vector<32x128xbf16>
      tpu.vector_store %arg7[%c0_16, %c0_17], %19 {strides = array<i32>} : memref<32x128xbf16, #tpu.memory_space<vmem>>, vector<32x128xbf16>,
    } else {
    }
    return
  }
  func.func @transform_0(%arg0: i32, %arg1: i32, %arg2: i32) -> (i32, i32) {
    %c0_i32 = arith.constant 0 : i32
    return %arg0, %arg2 : i32, i32
  }
  func.func @transform_1(%arg0: i32, %arg1: i32, %arg2: i32) -> (i32, i32) {
    %c0_i32 = arith.constant 0 : i32
    return %arg2, %arg1 : i32, i32
  }
  func.func @transform_2(%arg0: i32, %arg1: i32, %arg2: i32) -> (i32, i32) {
    %c0_i32 = arith.constant 0 : i32
    %c0_i32_0 = arith.constant 0 : i32
    return %c0_i32, %arg1 : i32, i32
  }
  func.func @transform_3(%arg0: i32, %arg1: i32, %arg2: i32) -> (i32, i32) {
    %c0_i32 = arith.constant 0 : i32
    return %arg0, %arg1 : i32, i32
  }
  func.func @transform_4(%arg0: i32, %arg1: i32, %arg2: i32) -> (i32, i32) {
    %c0_i32 = arith.constant 0 : i32
    return %arg0, %arg1 : i32, i32
  }
}

module attributes {stable_mosaic.version = 11 : i64} {
  func.func @_ln_matmul_kernel(%arg0: i32, %arg1: i32, %arg2: memref<32x128xbf16, #tpu.memory_space<vmem>>, %arg3: memref<1x128xf32, #tpu.memory_space<vmem>>, %arg4: memref<1x128xf32, #tpu.memory_space<vmem>>, %arg5: memref<128x128xbf16, #tpu.memory_space<vmem>>, %arg6: memref<1x128xf32, #tpu.memory_space<vmem>>, %arg7: memref<32x128xbf16, #tpu.memory_space<vmem>>, %arg8: memref<32x128xbf16, #tpu.memory_space<vmem>>) attributes {dimension_semantics = [#tpu.dimension_semantics<parallel>, #tpu.dimension_semantics<arbitrary>], iteration_bounds = array<i64: 1, 1>, scalar_prefetch = 0 : i64, scratch_operands = 1 : i64, tpu.core_type = #tpu.core_type<tc>, window_params = [{transform_indices = @transform_0, window_bounds = array<i64: 32, 128>}, {pipeline_mode = #tpu.pipeline_mode<synchronous>, transform_indices = @transform_1, window_bounds = array<i64: 1, 128>}, {pipeline_mode = #tpu.pipeline_mode<synchronous>, transform_indices = @transform_2, window_bounds = array<i64: 1, 128>}, {transform_indices = @transform_3, window_bounds = array<i64: 128, 128>}, {transform_indices = @transform_4, window_bounds = array<i64: 1, 128>}, {transform_indices = @transform_5, window_bounds = array<i64: 32, 128>}]} {
    %c0_i32 = arith.constant 0 : i32
    %0 = arith.cmpi eq, %arg1, %c0_i32 : i32
    %1 = arith.extui %0 : i1 to i32
    %c0_i32_0 = arith.constant 0 : i32
    %2 = arith.cmpi ne, %1, %c0_i32_0 : i32
    scf.if %2 {
      %c0_9 = arith.constant 0 : index
      %c0_10 = arith.constant 0 : index
      %13 = vector.load %arg2[%c0_9, %c0_10] : memref<32x128xbf16, #tpu.memory_space<vmem>>, vector<32x128xbf16>
      %14 = arith.extf %13 : vector<32x128xbf16> to vector<32x128xf32>
      %cst_11 = arith.constant dense<0.000000e+00> : vector<32xf32>
      %15 = vector.multi_reduction <add>, %14, %cst_11 [1] : vector<32x128xf32> to vector<32xf32>
      %16 = vector.shape_cast %15 : vector<32xf32> to vector<32x1xf32>
      %cst_12 = arith.constant 3.125000e-02 : f32
      %17 = vector.broadcast %cst_12 : f32 to vector<32x1xf32>
      %18 = arith.mulf %16, %17 : vector<32x1xf32>
      %19 = vector.broadcast %18 : vector<32x1xf32> to vector<32x128xf32>
      %20 = arith.subf %14, %19 : vector<32x128xf32>
      %21 = tpu.iota {dimensions = array<i32: 1>} : vector<32x128xi32>
      %c32_i32 = arith.constant 32 : i32
      %22 = vector.broadcast %c32_i32 : i32 to vector<32x128xi32>
      %23 = arith.cmpi slt, %21, %22 : vector<32x128xi32>
      %cst_13 = arith.constant 0.000000e+00 : f32
      %24 = vector.broadcast %cst_13 : f32 to vector<32x128xf32>
      %25 = arith.select %23, %20, %24 : vector<32x128xi1>, vector<32x128xf32>
      %26 = arith.mulf %25, %25 : vector<32x128xf32>
      %cst_14 = arith.constant dense<0.000000e+00> : vector<32xf32>
      %27 = vector.multi_reduction <add>, %26, %cst_14 [1] : vector<32x128xf32> to vector<32xf32>
      %28 = vector.shape_cast %27 : vector<32xf32> to vector<32x1xf32>
      %cst_15 = arith.constant 3.125000e-02 : f32
      %29 = vector.broadcast %cst_15 : f32 to vector<32x1xf32>
      %30 = arith.mulf %28, %29 : vector<32x1xf32>
      %cst_16 = arith.constant 9.99999974E-6 : f32
      %31 = vector.broadcast %cst_16 : f32 to vector<32x1xf32>
      %32 = arith.addf %30, %31 : vector<32x1xf32>
      %33 = math.rsqrt %32 : vector<32x1xf32>
      %34 = vector.broadcast %33 : vector<32x1xf32> to vector<32x128xf32>
      %35 = arith.mulf %20, %34 : vector<32x128xf32>
      %c0_17 = arith.constant 0 : index
      %c0_18 = arith.constant 0 : index
      %36 = vector.load %arg3[%c0_17, %c0_18] : memref<1x128xf32, #tpu.memory_space<vmem>>, vector<1x128xf32>
      %37 = vector.broadcast %36 : vector<1x128xf32> to vector<32x128xf32>
      %38 = arith.mulf %35, %37 : vector<32x128xf32>
      %c0_19 = arith.constant 0 : index
      %c0_20 = arith.constant 0 : index
      %39 = vector.load %arg4[%c0_19, %c0_20] : memref<1x128xf32, #tpu.memory_space<vmem>>, vector<1x128xf32>
      %40 = vector.broadcast %39 : vector<1x128xf32> to vector<32x128xf32>
      %41 = arith.addf %38, %40 : vector<32x128xf32>
      %42 = arith.truncf %41 : vector<32x128xf32> to vector<32x128xbf16>
      %c0_21 = arith.constant 0 : index
      %c0_22 = arith.constant 0 : index
      %43 = vector.load %arg8[%c0_21, %c0_22] : memref<32x128xbf16, #tpu.memory_space<vmem>>, vector<32x128xbf16>
      tpu.vector_store %arg8[%c0_21, %c0_22], %42 {strides = array<i32>} : memref<32x128xbf16, #tpu.memory_space<vmem>>, vector<32x128xbf16>,
    } else {
    }
    %c0 = arith.constant 0 : index
    %c0_1 = arith.constant 0 : index
    %3 = vector.load %arg8[%c0, %c0_1] : memref<32x128xbf16, #tpu.memory_space<vmem>>, vector<32x128xbf16>
    %c0_2 = arith.constant 0 : index
    %c0_3 = arith.constant 0 : index
    %4 = vector.load %arg5[%c0_2, %c0_3] : memref<128x128xbf16, #tpu.memory_space<vmem>>, vector<128x128xbf16>
    %cst = arith.constant dense<0.000000e+00> : vector<32x128xf32>
    %5 = tpu.matmul %3, %4, %cst {dimension_numbers = #tpu.dot_dimension_numbers<[1], [0], [0], [1], [0, 0, 1, 1], [], []>} : vector<32x128xbf16>, vector<128x128xbf16>, vector<32x128xf32> -> vector<32x128xf32>
    %c0_4 = arith.constant 0 : index
    %c0_5 = arith.constant 0 : index
    %6 = vector.load %arg6[%c0_4, %c0_5] : memref<1x128xf32, #tpu.memory_space<vmem>>, vector<1x128xf32>
    %7 = vector.broadcast %6 : vector<1x128xf32> to vector<32x128xf32>
    %8 = arith.addf %5, %7 : vector<32x128xf32>
    %cst_6 = arith.constant 0.000000e+00 : f32
    %9 = vector.broadcast %cst_6 : f32 to vector<32x128xf32>
    %10 = arith.maximumf %8, %9 : vector<32x128xf32>
    %11 = arith.truncf %10 : vector<32x128xf32> to vector<32x128xbf16>
    %c0_7 = arith.constant 0 : index
    %c0_8 = arith.constant 0 : index
    %12 = vector.load %arg7[%c0_7, %c0_8] : memref<32x128xbf16, #tpu.memory_space<vmem>>, vector<32x128xbf16>
    tpu.vector_store %arg7[%c0_7, %c0_8], %11 {strides = array<i32>} : memref<32x128xbf16, #tpu.memory_space<vmem>>, vector<32x128xbf16>,
    return
  }
  func.func @transform_0(%arg0: i32, %arg1: i32) -> (i32, i32) {
    %c0_i32 = arith.constant 0 : i32
    %c0_i32_0 = arith.constant 0 : i32
    return %arg0, %c0_i32 : i32, i32
  }
  func.func @transform_1(%arg0: i32, %arg1: i32) -> (i32, i32) {
    %c0_i32 = arith.constant 0 : i32
    %c0_i32_0 = arith.constant 0 : i32
    %c0_i32_1 = arith.constant 0 : i32
    return %c0_i32, %c0_i32_0 : i32, i32
  }
  func.func @transform_2(%arg0: i32, %arg1: i32) -> (i32, i32) {
    %c0_i32 = arith.constant 0 : i32
    %c0_i32_0 = arith.constant 0 : i32
    %c0_i32_1 = arith.constant 0 : i32
    return %c0_i32, %c0_i32_0 : i32, i32
  }
  func.func @transform_3(%arg0: i32, %arg1: i32) -> (i32, i32) {
    %c0_i32 = arith.constant 0 : i32
    %c0_i32_0 = arith.constant 0 : i32
    return %c0_i32, %arg1 : i32, i32
  }
  func.func @transform_4(%arg0: i32, %arg1: i32) -> (i32, i32) {
    %c0_i32 = arith.constant 0 : i32
    %c0_i32_0 = arith.constant 0 : i32
    return %c0_i32, %arg1 : i32, i32
  }
  func.func @transform_5(%arg0: i32, %arg1: i32) -> (i32, i32) {
    %c0_i32 = arith.constant 0 : i32
    return %arg0, %arg1 : i32, i32
  }
}

module attributes {stable_mosaic.version = 11 : i64} {
  func.func @_head_kernel(%arg0: i32, %arg1: memref<8x128xbf16, #tpu.memory_space<vmem>>, %arg2: memref<128x128xbf16, #tpu.memory_space<vmem>>, %arg3: memref<1x128xf32, #tpu.memory_space<vmem>>, %arg4: memref<128x128xbf16, #tpu.memory_space<vmem>>, %arg5: memref<1x128xf32, #tpu.memory_space<vmem>>, %arg6: memref<128x128xbf16, #tpu.memory_space<vmem>>, %arg7: memref<1x128xf32, #tpu.memory_space<vmem>>, %arg8: memref<8x128xf32, #tpu.memory_space<vmem>>) attributes {dimension_semantics = [#tpu.dimension_semantics<arbitrary>], iteration_bounds = array<i64: 1>, scalar_prefetch = 0 : i64, scratch_operands = 0 : i64, tpu.core_type = #tpu.core_type<tc>, window_params = [{pipeline_mode = #tpu.pipeline_mode<synchronous>, transform_indices = @transform_0, window_bounds = array<i64: 8, 128>}, {pipeline_mode = #tpu.pipeline_mode<synchronous>, transform_indices = @transform_1, window_bounds = array<i64: 128, 128>}, {pipeline_mode = #tpu.pipeline_mode<synchronous>, transform_indices = @transform_2, window_bounds = array<i64: 1, 128>}, {pipeline_mode = #tpu.pipeline_mode<synchronous>, transform_indices = @transform_3, window_bounds = array<i64: 128, 128>}, {pipeline_mode = #tpu.pipeline_mode<synchronous>, transform_indices = @transform_4, window_bounds = array<i64: 1, 128>}, {pipeline_mode = #tpu.pipeline_mode<synchronous>, transform_indices = @transform_5, window_bounds = array<i64: 128, 128>}, {pipeline_mode = #tpu.pipeline_mode<synchronous>, transform_indices = @transform_6, window_bounds = array<i64: 1, 128>}, {pipeline_mode = #tpu.pipeline_mode<synchronous>, transform_indices = @transform_7, window_bounds = array<i64: 8, 128>}]} {
    %c0 = arith.constant 0 : index
    %c0_0 = arith.constant 0 : index
    %0 = vector.load %arg1[%c0, %c0_0] : memref<8x128xbf16, #tpu.memory_space<vmem>>, vector<8x128xbf16>
    %c0_1 = arith.constant 0 : index
    %c0_2 = arith.constant 0 : index
    %1 = vector.load %arg2[%c0_1, %c0_2] : memref<128x128xbf16, #tpu.memory_space<vmem>>, vector<128x128xbf16>
    %cst = arith.constant dense<0.000000e+00> : vector<8x128xf32>
    %2 = tpu.matmul %0, %1, %cst {dimension_numbers = #tpu.dot_dimension_numbers<[1], [0], [0], [1], [0, 0, 1, 1], [], []>} : vector<8x128xbf16>, vector<128x128xbf16>, vector<8x128xf32> -> vector<8x128xf32>
    %c0_3 = arith.constant 0 : index
    %c0_4 = arith.constant 0 : index
    %3 = vector.load %arg3[%c0_3, %c0_4] : memref<1x128xf32, #tpu.memory_space<vmem>>, vector<1x128xf32>
    %4 = vector.broadcast %3 : vector<1x128xf32> to vector<8x128xf32>
    %5 = arith.addf %2, %4 : vector<8x128xf32>
    %cst_5 = arith.constant 0.000000e+00 : f32
    %6 = vector.broadcast %cst_5 : f32 to vector<8x128xf32>
    %7 = arith.maximumf %5, %6 : vector<8x128xf32>
    %8 = arith.truncf %7 : vector<8x128xf32> to vector<8x128xbf16>
    %c0_6 = arith.constant 0 : index
    %c0_7 = arith.constant 0 : index
    %9 = vector.load %arg4[%c0_6, %c0_7] : memref<128x128xbf16, #tpu.memory_space<vmem>>, vector<128x128xbf16>
    %cst_8 = arith.constant dense<0.000000e+00> : vector<8x128xf32>
    %10 = tpu.matmul %8, %9, %cst_8 {dimension_numbers = #tpu.dot_dimension_numbers<[1], [0], [0], [1], [0, 0, 1, 1], [], []>} : vector<8x128xbf16>, vector<128x128xbf16>, vector<8x128xf32> -> vector<8x128xf32>
    %c0_9 = arith.constant 0 : index
    %c0_10 = arith.constant 0 : index
    %11 = vector.load %arg5[%c0_9, %c0_10] : memref<1x128xf32, #tpu.memory_space<vmem>>, vector<1x128xf32>
    %12 = vector.broadcast %11 : vector<1x128xf32> to vector<8x128xf32>
    %13 = arith.addf %10, %12 : vector<8x128xf32>
    %cst_11 = arith.constant 0.000000e+00 : f32
    %14 = vector.broadcast %cst_11 : f32 to vector<8x128xf32>
    %15 = arith.maximumf %13, %14 : vector<8x128xf32>
    %16 = arith.truncf %15 : vector<8x128xf32> to vector<8x128xbf16>
    %c0_12 = arith.constant 0 : index
    %c0_13 = arith.constant 0 : index
    %17 = vector.load %arg6[%c0_12, %c0_13] : memref<128x128xbf16, #tpu.memory_space<vmem>>, vector<128x128xbf16>
    %cst_14 = arith.constant dense<0.000000e+00> : vector<8x128xf32>
    %18 = tpu.matmul %16, %17, %cst_14 {dimension_numbers = #tpu.dot_dimension_numbers<[1], [0], [0], [1], [0, 0, 1, 1], [], []>} : vector<8x128xbf16>, vector<128x128xbf16>, vector<8x128xf32> -> vector<8x128xf32>
    %c0_15 = arith.constant 0 : index
    %c0_16 = arith.constant 0 : index
    %19 = vector.load %arg7[%c0_15, %c0_16] : memref<1x128xf32, #tpu.memory_space<vmem>>, vector<1x128xf32>
    %20 = vector.broadcast %19 : vector<1x128xf32> to vector<8x128xf32>
    %21 = arith.addf %18, %20 : vector<8x128xf32>
    %c0_17 = arith.constant 0 : index
    %c0_18 = arith.constant 0 : index
    %22 = vector.load %arg8[%c0_17, %c0_18] : memref<8x128xf32, #tpu.memory_space<vmem>>, vector<8x128xf32>
    tpu.vector_store %arg8[%c0_17, %c0_18], %21 {strides = array<i32>} : memref<8x128xf32, #tpu.memory_space<vmem>>, vector<8x128xf32>,
    return
  }
  func.func @transform_0(%arg0: i32) -> (i32, i32) {
    %c0_i32 = arith.constant 0 : i32
    %c0_i32_0 = arith.constant 0 : i32
    %c0_i32_1 = arith.constant 0 : i32
    return %c0_i32, %c0_i32_0 : i32, i32
  }
  func.func @transform_1(%arg0: i32) -> (i32, i32) {
    %c0_i32 = arith.constant 0 : i32
    %c0_i32_0 = arith.constant 0 : i32
    %c0_i32_1 = arith.constant 0 : i32
    return %c0_i32, %c0_i32_0 : i32, i32
  }
  func.func @transform_2(%arg0: i32) -> (i32, i32) {
    %c0_i32 = arith.constant 0 : i32
    %c0_i32_0 = arith.constant 0 : i32
    %c0_i32_1 = arith.constant 0 : i32
    return %c0_i32, %c0_i32_0 : i32, i32
  }
  func.func @transform_3(%arg0: i32) -> (i32, i32) {
    %c0_i32 = arith.constant 0 : i32
    %c0_i32_0 = arith.constant 0 : i32
    %c0_i32_1 = arith.constant 0 : i32
    return %c0_i32, %c0_i32_0 : i32, i32
  }
  func.func @transform_4(%arg0: i32) -> (i32, i32) {
    %c0_i32 = arith.constant 0 : i32
    %c0_i32_0 = arith.constant 0 : i32
    %c0_i32_1 = arith.constant 0 : i32
    return %c0_i32, %c0_i32_0 : i32, i32
  }
  func.func @transform_5(%arg0: i32) -> (i32, i32) {
    %c0_i32 = arith.constant 0 : i32
    %c0_i32_0 = arith.constant 0 : i32
    %c0_i32_1 = arith.constant 0 : i32
    return %c0_i32, %c0_i32_0 : i32, i32
  }
  func.func @transform_6(%arg0: i32) -> (i32, i32) {
    %c0_i32 = arith.constant 0 : i32
    %c0_i32_0 = arith.constant 0 : i32
    %c0_i32_1 = arith.constant 0 : i32
    return %c0_i32, %c0_i32_0 : i32, i32
  }
  func.func @transform_7(%arg0: i32) -> (i32, i32) {
    %c0_i32 = arith.constant 0 : i32
    %c0_i32_0 = arith.constant 0 : i32
    %c0_i32_1 = arith.constant 0 : i32
    return %c0_i32, %c0_i32_0 : i32, i32
  }
}

</mosaic_0001>

<bundles_post_ra>
// kernel: reverse
= control target key start
LH: loop header
LB: loop body
LE: loop exit
PB: predicated region body
PF: predicated region fallthrough
CT: control target
= control target key end

     0   :  { %s944_s0 = inlined_call_operand.vmem [shape: f32[3,3,64,128], index: 0, kind: input, shape index: {}]   ;;  %s945_s1 = inlined_call_operand.vmem [shape: bf16[3,3,64,128], index: 1, kind: output, shape index: {}]  }
   0x1   :  { %v360_v0 = vld [vmem:[%s944_s0 + $0x200] sm:$0xff]  ;;  %v376_v16 = vld [vmem:[%s944_s0 + $0x208] sm:$0xff]  ;;  %v394_v34 = vld [vmem:[%s944_s0 + $0x210] sm:$0xff] }
   0x2   :  { %v361_v1 = vld [vmem:[%s944_s0 + $0x140] sm:$0xff]  ;;  %v4_v3 = vpack.c.bf16 0.0, %v360_v0  ;;  %v378_v18 = vld [vmem:[%s944_s0 + $0x148] sm:$0xff]  ;;  %v48_v21 = vpack.c.bf16 0.0, %v376_v16  ;;  %v396_v36 = vld [vmem:[%s944_s0 + $0x150] sm:$0xff]  ;;  %v93_v39 = vpack.c.bf16 0.0, %v394_v34 }
   0x3   :  { %v363_v2 = vld [vmem:[%s944_s0 + $0x80] sm:$0xff]  ;;  %v9_v4 = vpack.c.bf16 0.0, %v361_v1  ;;  %v380_v20 = vld [vmem:[%s944_s0 + $0x88] sm:$0xff]  ;;  %v53_v23 = vpack.c.bf16 0.0, %v378_v18  ;;  %v398_v38 = vld [vmem:[%s944_s0 + $0x90] sm:$0xff]  ;;  %v98_v41 = vpack.c.bf16 0.0, %v396_v36 }
   0x4   :  { %v14_v5 = vpack.c.bf16 0.0, %v363_v2  ;;  %v365_v6 = vld [vmem:[%s944_s0 + $0x1c0] sm:$0xff]  ;;  %5 = vst [vmem:[%s945_s1] sm:$0xf] %v4_v3  ;;  %v382_v22 = vld [vmem:[%s944_s0 + $0x1c8] sm:$0xff]  ;;  %v58_v25 = vpack.c.bf16 0.0, %v380_v20  ;;  %v400_v40 = vld [vmem:[%s944_s0 + $0x1d0] sm:$0xff] }
   0x5   :  { %v367_v7 = vld [vmem:[%s944_s0 + $0x100] sm:$0xff]  ;;  %v19_v9 = vpack.c.bf16 0.0, %v365_v6  ;;  %362 = vst [vmem:[%s945_s1 + $0x60] sm:$0xf] %v9_v4  ;;  %v384_v24 = vld [vmem:[%s944_s0 + $0x108] sm:$0xff]  ;;  %v63_v27 = vpack.c.bf16 0.0, %v382_v22 }
   0x6   :  { %v369_v8 = vld [vmem:[%s944_s0 + $0x40] sm:$0xff]  ;;  %v24_v11 = vpack.c.bf16 0.0, %v367_v7  ;;  %364 = vst [vmem:[%s945_s1 + $0xc0] sm:$0xf] %v14_v5  ;;  %v386_v26 = vld [vmem:[%s944_s0 + $0x48] sm:$0xff]  ;;  %v68_v29 = vpack.c.bf16 0.0, %v384_v24 }
   0x7   :  { %v371_v10 = vld [vmem:[%s944_s0 + $0x180] sm:$0xff]  ;;  %v29_v13 = vpack.c.bf16 0.0, %v369_v8  ;;  %366 = vst [vmem:[%s945_s1 + $0x20] sm:$0xf] %v19_v9  ;;  %v388_v28 = vld [vmem:[%s944_s0 + $0x188] sm:$0xff]  ;;  %v73_v31 = vpack.c.bf16 0.0, %v386_v26 }
   0x8   :  { %v373_v12 = vld [vmem:[%s944_s0 + $0xc0] sm:$0xff]  ;;  %v34_v15 = vpack.c.bf16 0.0, %v371_v10  ;;  %368 = vst [vmem:[%s945_s1 + $0x80] sm:$0xf] %v24_v11  ;;  %v390_v30 = vld [vmem:[%s944_s0 + $0xc8] sm:$0xff]  ;;  %v78_v33 = vpack.c.bf16 0.0, %v388_v28 }
   0x9   :  { %v41_v14 = vld [vmem:[%s944_s0] sm:$0xff]  ;;  %v39_v17 = vpack.c.bf16 0.0, %v373_v12  ;;  %370 = vst [vmem:[%s945_s1 + $0xe0] sm:$0xf] %v29_v13  ;;  %v392_v32 = vld [vmem:[%s944_s0 + $0x8] sm:$0xff]  ;;  %v83_v35 = vpack.c.bf16 0.0, %v390_v30 }
   0xa   :  { %v43_v19 = vpack.c.bf16 0.0, %v41_v14  ;;  %372 = vst [vmem:[%s945_s1 + $0x40] sm:$0xf] %v34_v15  ;;  %v88_v37 = vpack.c.bf16 0.0, %v392_v32  ;;  %v402_v42 = vld [vmem:[%s944_s0 + $0x110] sm:$0xff]  ;;  %v103_v43 = vpack.c.bf16 0.0, %v398_v38 }
   0xb   :  { %374 = vst [vmem:[%s945_s1 + $0xa0] sm:$0xf] %v39_v17  ;;  %v404_v44 = vld [vmem:[%s944_s0 + $0x50] sm:$0xff]  ;;  %v108_v45 = vpack.c.bf16 0.0, %v400_v40  ;;  %v113_v47 = vpack.c.bf16 0.0, %v402_v42  ;;  %v412_v52 = vld [vmem:[%s944_s0 + $0x218] sm:$0xff] }
   0xc   :  { %375 = vst [vmem:[%s945_s1 + $0x100] sm:$0xf] %v43_v19  ;;  %v406_v46 = vld [vmem:[%s944_s0 + $0x190] sm:$0xff]  ;;  %v118_v49 = vpack.c.bf16 0.0, %v404_v44  ;;  %v414_v54 = vld [vmem:[%s944_s0 + $0x158] sm:$0xff]  ;;  %v138_v57 = vpack.c.bf16 0.0, %v412_v52 }
   0xd   :  { %377 = vst [vmem:[%s945_s1 + $0x4] sm:$0xf] %v48_v21  ;;  %v408_v48 = vld [vmem:[%s944_s0 + $0xd0] sm:$0xff]  ;;  %v123_v51 = vpack.c.bf16 0.0, %v406_v46  ;;  %v416_v56 = vld [vmem:[%s944_s0 + $0x98] sm:$0xff]  ;;  %v143_v59 = vpack.c.bf16 0.0, %v414_v54 }
   0xe   :  { %379 = vst [vmem:[%s945_s1 + $0x64] sm:$0xf] %v53_v23  ;;  %v410_v50 = vld [vmem:[%s944_s0 + $0x10] sm:$0xff]  ;;  %v128_v53 = vpack.c.bf16 0.0, %v408_v48  ;;  %v418_v58 = vld [vmem:[%s944_s0 + $0x1d8] sm:$0xff]  ;;  %v148_v61 = vpack.c.bf16 0.0, %v416_v56 }
   0xf   :  { %381 = vst [vmem:[%s945_s1 + $0xc4] sm:$0xf] %v58_v25  ;;  %v133_v55 = vpack.c.bf16 0.0, %v410_v50  ;;  %v420_v60 = vld [vmem:[%s944_s0 + $0x118] sm:$0xff]  ;;  %v153_v63 = vpack.c.bf16 0.0, %v418_v58  ;;  %v430_v6 = vld [vmem:[%s944_s0 + $0x220] sm:$0xff] }
  0x10   :  { %383 = vst [vmem:[%s945_s1 + $0x24] sm:$0xf] %v63_v27  ;;  %v422_v62 = vld [vmem:[%s944_s0 + $0x58] sm:$0xff]  ;;  %v158_v1 = vpack.c.bf16 0.0, %v420_v60  ;;  %v432_v8 = vld [vmem:[%s944_s0 + $0x160] sm:$0xff]  ;;  %v183_v11 = vpack.c.bf16 0.0, %v430_v6 }
  0x11   :  { %385 = vst [vmem:[%s945_s1 + $0x84] sm:$0xf] %v68_v29  ;;  %v424_v0 = vld [vmem:[%s944_s0 + $0x198] sm:$0xff]  ;;  %v163_v3 = vpack.c.bf16 0.0, %v422_v62  ;;  %v434_v10 = vld [vmem:[%s944_s0 + $0xa0] sm:$0xff]  ;;  %v188_v13 = vpack.c.bf16 0.0, %v432_v8 }
  0x12   :  { %387 = vst [vmem:[%s945_s1 + $0xe4] sm:$0xf] %v73_v31  ;;  %v426_v2 = vld [vmem:[%s944_s0 + $0xd8] sm:$0xff]  ;;  %v168_v5 = vpack.c.bf16 0.0, %v424_v0  ;;  %v436_v12 = vld [vmem:[%s944_s0 + $0x1e0] sm:$0xff]  ;;  %v193_v15 = vpack.c.bf16 0.0, %v434_v10 }
  0x13   :  { %389 = vst [vmem:[%s945_s1 + $0x44] sm:$0xf] %v78_v33  ;;  %v428_v4 = vld [vmem:[%s944_s0 + $0x18] sm:$0xff]  ;;  %v173_v7 = vpack.c.bf16 0.0, %v426_v2  ;;  %v438_v14 = vld [vmem:[%s944_s0 + $0x120] sm:$0xff]  ;;  %v198_v17 = vpack.c.bf16 0.0, %v436_v12 }
  0x14   :  { %391 = vst [vmem:[%s945_s1 + $0xa4] sm:$0xf] %v83_v35  ;;  %v178_v9 = vpack.c.bf16 0.0, %v428_v4  ;;  %v440_v16 = vld [vmem:[%s944_s0 + $0x60] sm:$0xff]  ;;  %v203_v19 = vpack.c.bf16 0.0, %v438_v14  ;;  %v448_v24 = vld [vmem:[%s944_s0 + $0x228] sm:$0xff] }
  0x15   :  { %393 = vst [vmem:[%s945_s1 + $0x104] sm:$0xf] %v88_v37  ;;  %v442_v18 = vld [vmem:[%s944_s0 + $0x1a0] sm:$0xff]  ;;  %v208_v21 = vpack.c.bf16 0.0, %v440_v16  ;;  %v450_v26 = vld [vmem:[%s944_s0 + $0x168] sm:$0xff]  ;;  %v228_v29 = vpack.c.bf16 0.0, %v448_v24 }
  0x16   :  { %395 = vst [vmem:[%s945_s1 + $0x8] sm:$0xf] %v93_v39  ;;  %v444_v20 = vld [vmem:[%s944_s0 + $0xe0] sm:$0xff]  ;;  %v213_v23 = vpack.c.bf16 0.0, %v442_v18  ;;  %v452_v28 = vld [vmem:[%s944_s0 + $0xa8] sm:$0xff]  ;;  %v233_v31 = vpack.c.bf16 0.0, %v450_v26 }
  0x17   :  { %397 = vst [vmem:[%s945_s1 + $0x68] sm:$0xf] %v98_v41  ;;  %v446_v22 = vld [vmem:[%s944_s0 + $0x20] sm:$0xff]  ;;  %v218_v25 = vpack.c.bf16 0.0, %v444_v20  ;;  %v454_v30 = vld [vmem:[%s944_s0 + $0x1e8] sm:$0xff]  ;;  %v238_v33 = vpack.c.bf16 0.0, %v452_v28 }
  0x18   :  { %399 = vst [vmem:[%s945_s1 + $0xc8] sm:$0xf] %v103_v43  ;;  %v223_v27 = vpack.c.bf16 0.0, %v446_v22  ;;  %v456_v32 = vld [vmem:[%s944_s0 + $0x128] sm:$0xff]  ;;  %v243_v35 = vpack.c.bf16 0.0, %v454_v30  ;;  %v466_v42 = vld [vmem:[%s944_s0 + $0x230] sm:$0xff] }
  0x19   :  { %401 = vst [vmem:[%s945_s1 + $0x28] sm:$0xf] %v108_v45  ;;  %v458_v34 = vld [vmem:[%s944_s0 + $0x68] sm:$0xff]  ;;  %v248_v37 = vpack.c.bf16 0.0, %v456_v32  ;;  %v468_v44 = vld [vmem:[%s944_s0 + $0x170] sm:$0xff]  ;;  %v484_v60 = vld [vmem:[%s944_s0 + $0x238] sm:$0xff] }
  0x1a   :  { %403 = vst [vmem:[%s945_s1 + $0x88] sm:$0xf] %v113_v47  ;;  %v460_v36 = vld [vmem:[%s944_s0 + $0x1a8] sm:$0xff]  ;;  %v253_v39 = vpack.c.bf16 0.0, %v458_v34  ;;  %v470_v46 = vld [vmem:[%s944_s0 + $0xb0] sm:$0xff]  ;;  %v273_v47 = vpack.c.bf16 0.0, %v466_v42 }
  0x1b   :  { %405 = vst [vmem:[%s945_s1 + $0xe8] sm:$0xf] %v118_v49  ;;  %v462_v38 = vld [vmem:[%s944_s0 + $0xe8] sm:$0xff]  ;;  %v258_v41 = vpack.c.bf16 0.0, %v460_v36  ;;  %v472_v48 = vld [vmem:[%s944_s0 + $0x1f0] sm:$0xff]  ;;  %v278_v49 = vpack.c.bf16 0.0, %v468_v44 }
  0x1c   :  { %407 = vst [vmem:[%s945_s1 + $0x48] sm:$0xf] %v123_v51  ;;  %v464_v40 = vld [vmem:[%s944_s0 + $0x28] sm:$0xff]  ;;  %v263_v43 = vpack.c.bf16 0.0, %v462_v38  ;;  %v474_v50 = vld [vmem:[%s944_s0 + $0x130] sm:$0xff]  ;;  %v283_v51 = vpack.c.bf16 0.0, %v470_v46 }
  0x1d   :  { %409 = vst [vmem:[%s945_s1 + $0xa8] sm:$0xf] %v128_v53  ;;  %v268_v45 = vpack.c.bf16 0.0, %v464_v40  ;;  %v476_v52 = vld [vmem:[%s944_s0 + $0x70] sm:$0xff]  ;;  %v288_v53 = vpack.c.bf16 0.0, %v472_v48  ;;  %v486_v62 = vld [vmem:[%s944_s0 + $0x178] sm:$0xff] }
  0x1e   :  { %411 = vst [vmem:[%s945_s1 + $0x108] sm:$0xf] %v133_v55  ;;  %v478_v54 = vld [vmem:[%s944_s0 + $0x1b0] sm:$0xff]  ;;  %v293_v55 = vpack.c.bf16 0.0, %v474_v50  ;;  %v488_v0 = vld [vmem:[%s944_s0 + $0xb8] sm:$0xff] }
  0x1f   :  { %413 = vst [vmem:[%s945_s1 + $0xc] sm:$0xf] %v138_v57  ;;  %v480_v56 = vld [vmem:[%s944_s0 + $0xf0] sm:$0xff]  ;;  %v298_v57 = vpack.c.bf16 0.0, %v476_v52  ;;  %v490_v2 = vld [vmem:[%s944_s0 + $0x1f8] sm:$0xff] }
  0x20   :  { %415 = vst [vmem:[%s945_s1 + $0x6c] sm:$0xf] %v143_v59  ;;  %v482_v58 = vld [vmem:[%s944_s0 + $0x30] sm:$0xff]  ;;  %v303_v59 = vpack.c.bf16 0.0, %v478_v54  ;;  %v492_v4 = vld [vmem:[%s944_s0 + $0x138] sm:$0xff] }
  0x21   :  { %417 = vst [vmem:[%s945_s1 + $0xcc] sm:$0xf] %v148_v61  ;;  %v308_v61 = vpack.c.bf16 0.0, %v480_v56  ;;  %v494_v6 = vld [vmem:[%s944_s0 + $0x78] sm:$0xff] }
  0x22   :  { %419 = vst [vmem:[%s945_s1 + $0x2c] sm:$0xf] %v153_v63  ;;  %v313_v63 = vpack.c.bf16 0.0, %v482_v58  ;;  %v496_v8 = vld [vmem:[%s944_s0 + $0x1b8] sm:$0xff] }
  0x23   :  { %421 = vst [vmem:[%s945_s1 + $0x8c] sm:$0xf] %v158_v1  ;;  %v318_v1 = vpack.c.bf16 0.0, %v484_v60  ;;  %v498_v10 = vld [vmem:[%s944_s0 + $0xf8] sm:$0xff] }
  0x24   :  { %423 = vst [vmem:[%s945_s1 + $0xec] sm:$0xf] %v163_v3  ;;  %v323_v3 = vpack.c.bf16 0.0, %v486_v62  ;;  %v500_v12 = vld [vmem:[%s944_s0 + $0x38] sm:$0xff]  ;;  %v353_v14 = vpack.c.bf16 0.0, %v498_v10 }
  0x25   :  { %425 = vst [vmem:[%s945_s1 + $0x4c] sm:$0xf] %v168_v5  ;;  %v328_v5 = vpack.c.bf16 0.0, %v488_v0 }
  0x26   :  { %427 = vst [vmem:[%s945_s1 + $0xac] sm:$0xf] %v173_v7  ;;  %v333_v7 = vpack.c.bf16 0.0, %v490_v2 }
  0x27   :  { %429 = vst [vmem:[%s945_s1 + $0x10c] sm:$0xf] %v178_v9  ;;  %v338_v9 = vpack.c.bf16 0.0, %v492_v4 }
  0x28   :  { %431 = vst [vmem:[%s945_s1 + $0x10] sm:$0xf] %v183_v11  ;;  %v343_v11 = vpack.c.bf16 0.0, %v494_v6 }
  0x29   :  { %433 = vst [vmem:[%s945_s1 + $0x70] sm:$0xf] %v188_v13  ;;  %v348_v13 = vpack.c.bf16 0.0, %v496_v8 }
  0x2a   :  { %435 = vst [vmem:[%s945_s1 + $0xd0] sm:$0xf] %v193_v15  ;;  %v358_v15 = vpack.c.bf16 0.0, %v500_v12 }
  0x2b   :  { %437 = vst [vmem:[%s945_s1 + $0x30] sm:$0xf] %v198_v17 }
  0x2c   :  { %439 = vst [vmem:[%s945_s1 + $0x90] sm:$0xf] %v203_v19 }
  0x2d   :  { %441 = vst [vmem:[%s945_s1 + $0xf0] sm:$0xf] %v208_v21 }
  0x2e   :  { %443 = vst [vmem:[%s945_s1 + $0x50] sm:$0xf] %v213_v23 }
  0x2f   :  { %445 = vst [vmem:[%s945_s1 + $0xb0] sm:$0xf] %v218_v25 }
  0x30   :  { %447 = vst [vmem:[%s945_s1 + $0x110] sm:$0xf] %v223_v27 }
  0x31   :  { %449 = vst [vmem:[%s945_s1 + $0x14] sm:$0xf] %v228_v29 }
  0x32   :  { %451 = vst [vmem:[%s945_s1 + $0x74] sm:$0xf] %v233_v31 }
  0x33   :  { %453 = vst [vmem:[%s945_s1 + $0xd4] sm:$0xf] %v238_v33 }
  0x34   :  { %455 = vst [vmem:[%s945_s1 + $0x34] sm:$0xf] %v243_v35 }
  0x35   :  { %457 = vst [vmem:[%s945_s1 + $0x94] sm:$0xf] %v248_v37 }
  0x36   :  { %459 = vst [vmem:[%s945_s1 + $0xf4] sm:$0xf] %v253_v39 }
  0x37   :  { %461 = vst [vmem:[%s945_s1 + $0x54] sm:$0xf] %v258_v41 }
  0x38   :  { %463 = vst [vmem:[%s945_s1 + $0xb4] sm:$0xf] %v263_v43 }
  0x39   :  { %465 = vst [vmem:[%s945_s1 + $0x114] sm:$0xf] %v268_v45 }
  0x3a   :  { %467 = vst [vmem:[%s945_s1 + $0x18] sm:$0xf] %v273_v47 }
  0x3b   :  { %469 = vst [vmem:[%s945_s1 + $0x78] sm:$0xf] %v278_v49 }
  0x3c   :  { %471 = vst [vmem:[%s945_s1 + $0xd8] sm:$0xf] %v283_v51 }
  0x3d   :  { %473 = vst [vmem:[%s945_s1 + $0x38] sm:$0xf] %v288_v53 }
  0x3e   :  { %475 = vst [vmem:[%s945_s1 + $0x98] sm:$0xf] %v293_v55 }
  0x3f   :  { %477 = vst [vmem:[%s945_s1 + $0xf8] sm:$0xf] %v298_v57 }
  0x40   :  { %479 = vst [vmem:[%s945_s1 + $0x58] sm:$0xf] %v303_v59 }
  0x41   :  { %481 = vst [vmem:[%s945_s1 + $0xb8] sm:$0xf] %v308_v61 }
  0x42   :  { %483 = vst [vmem:[%s945_s1 + $0x118] sm:$0xf] %v313_v63 }
  0x43   :  { %485 = vst [vmem:[%s945_s1 + $0x1c] sm:$0xf] %v318_v1 }
  0x44   :  { %487 = vst [vmem:[%s945_s1 + $0x7c] sm:$0xf] %v323_v3 }
  0x45   :  { %489 = vst [vmem:[%s945_s1 + $0xdc] sm:$0xf] %v328_v5 }
  0x46   :  { %491 = vst [vmem:[%s945_s1 + $0x3c] sm:$0xf] %v333_v7 }
  0x47   :  { %493 = vst [vmem:[%s945_s1 + $0x9c] sm:$0xf] %v338_v9 }
  0x48   :  { %495 = vst [vmem:[%s945_s1 + $0xfc] sm:$0xf] %v343_v11 }
  0x49   :  { %497 = vst [vmem:[%s945_s1 + $0x5c] sm:$0xf] %v348_v13 }
  0x4a   :  { %499 = vst [vmem:[%s945_s1 + $0xbc] sm:$0xf] %v353_v14 }
  0x4b   :  { %501 = vst [vmem:[%s945_s1 + $0x11c] sm:$0xf] %v358_v15 }

// kernel: vlt_forward.25
= control target key start
LH: loop header
LB: loop body
LE: loop exit
PB: predicated region body
PF: predicated region fallthrough
CT: control target
= control target key end

     0   :  { %s510_s6 = smov 0   ;;  %s587_s0 = inlined_call_operand.vmem [shape: bf16[2,8,384], index: 0, kind: input, shape index: {}]   ;;  %s588_s1 = inlined_call_operand.vmem [shape: bf16[2,8,128], index: 1, kind: output, shape index: {}]  }
   0x1 LB: > { %s436_s7 = sadd.s32 4294967295, %s491_s6   ;;  %p440_p0 = scmp.ge.s32.totalorder %s491_s6, 1  ;;  %s491_s6 = sphi %s510_s6, %s11_s6  }
   0x2   : > { %p87_p1 = scmp.lt.s32.totalorder %s491_s6, 3 }
   0x4   : > { %p88_p2 = pnand %p440_p0, %p87_p1 }
   0x5   : > { %p106_p3 = scmp.lt.s32.totalorder (!%p88_p2), %s436_s7, 1  ;;  %s493_s12 = smov (!%p88_p2), 104  }
   0x6   : > { %91 = sbr.rel (%p88_p2) target bundleno = 1095 (0x447), region = 24  ;;  %s494_s13 = smov (!%p88_p2), 92  }
   0x7   : > { %s495_s14 = smov (!%p88_p2), 116   ;;  %s497_s15 = smov (!%p88_p2), 12  }
   0x8   : > { %s498_s16 = smov (!%p88_p2), 24   ;;  %s499_s17 = smov (!%p88_p2), 36  }
   0xb   : > { %s590_s7 = smov (!%p106_p3, %s436_s7), 1  ;;  %vm127_vm0 = vcmask 97280   ;;  %v118_v6 = vlaneseq  ;;  %vm149_vm2 = vcmask 64512   ;;  %vm165_vm3 = vcmask 1043456  }
   0xc   : > { %s453_s8 = smul.u32 12, %s590_s7  ;;  %v496_v29 = vmov 0.0   ;;  %vm250_vm4 = vcmask 195680   ;;  %vm314_vm5 = vcmask 294080   ;;  %vm378_vm6 = vcmask 392480   ;;  %s442_s18 = sshll.u32 %s590_s7, 2 }
   0xd   : > { %v533_v7 = vshrl.u32 %v118_v6, 7  ;;  %v535_v8 = vand.u32 127, %v118_v6  ;;  %123 = vst [vmem:[#allocation2] sm:$0xff] %v496_v29  ;;  %s114_s21 = scalar_lea.vmem %s588_s1, %s442_s18 }
   0xe   : > { %s524_s11 = scalar_lea.vmem %s587_s0, %s453_s8 }
   0xf   : > { %v116_v0 = vld [vmem:[%s524_s11] sm:$0xff]  ;;  %vm122_vm1 = vcmp.ge.s32.totalorder %v533_v7, %v535_v8  ;;  %v117_v24 = vld [vmem:[%s524_s11 + $0x8] sm:$0xf] }
  0x10   : > { %v125_v1 = vunpack.c.h.b16 %v116_v0  ;;  %v183_v4 = vunpack.c.l.b16 %v116_v0  ;;  %v167_v25 = vsel %vm165_vm3, %v117_v24, 0  ;;  %v223_v52 = vunpack.c.l.b16 %v117_v24 }
  0x11   : > { %176 = vmatpush.bf16.msra.mxu1 %v167_v25 }
  0x12   : > { %v126_v2 = vpack.c.b16 %v125_v1, %v125_v1  ;;  %v184_v5 = vpack.c.b16 %v183_v4, %v183_v4  ;;  %v224_v53 = vpack.c.b16 %v223_v52, %v223_v52 }
  0x14   : > { %v132_v3 = vsel %vm127_vm0, %v126_v2, 0  ;;  %254 = vrot.lane.b32.xlu2 %v126_v2, %s493_s12 }
  0x15   : > { %141 = vmatpush.bf16.xpose.msra.mxu0 %v132_v3 }
  0x1c   : > { %443 = vmatmul.msk.bf16.vlgmr.msra.gmra.mxu0 %vm127_vm0, %v116_v0  ;;  %318 = vrot.lane.b32.xlu2 %v126_v2, %s494_s13 }
  0x24   : > { %252 = vrot.lane.b32.xlu2 %v184_v5, %s493_s12 }
  0x2c   : > { %316 = vrot.lane.b32.xlu2 %v184_v5, %s494_s13 }
  0x6e   : > { %v255_v14 = vpop.permute.xlu2 %254 }
  0x6f   : > { %v260_v26 = vsel %vm127_vm0, %v255_v14, 0 }
  0x70   : > { %269 = vmatpush.bf16.xpose.msrb.mxu1 %v260_v26 }
  0x76   : > { %v319_v15 = vpop.permute.xlu2 %318 }
  0x77   : > { %v324_v20 = vsel %vm127_vm0, %v319_v15, 0 }
  0x78   : > { %333 = vmatpush.bf16.xpose.msrb.mxu0 %v324_v20 }
  0x7e   : > { %v253_v19 = vpop.permute.xlu2 %252 }
  0x86   : > { %v317_v23 = vpop.permute.xlu2 %316 }
  0x87   : > { %449 = vmatmul.msk.bf16.vlgmr.msrb.gmra.mxu0 %vm127_vm0, %v317_v23 }
  0x99   : > { %v143_v9 = vpop.f32.mrf.mxu0 }
  0x9a   : > { %v147_v10 = vmul.f32 0.28867513, %v143_v9 }
  0x9c   : > { %v148_v11 = vsel %vm122_vm1, %v147_v10, -1e+09 }
  0x9d   : > { %v150_v12 = vsel %vm149_vm2, %v148_v11, -inf }
  0x9e   : > { %151 = vmax.xlane.f32.xlu0 %v150_v12 }
  0xa1   : > { %v145_v13 = vpop.f32.mrf.mxu0 }
  0xb2   : > { %187 = vrot.lane.b32.xlu0 %v126_v2, %s495_s14 }
 0x104   : > { %v335_v34 = vpop.f32.mrf.mxu0 }
 0x105   : > { %v339_v35 = vmul.f32 0.28867513, %v335_v34 }
 0x107   : > { %v340_v36 = vsel %vm122_vm1, %v339_v35, -1e+09 }
 0x108   : > { %v341_v37 = vsel %vm149_vm2, %v340_v36, -inf }
 0x10c   : > { %v337_v38 = vpop.f32.mrf.mxu0 }
 0x111   : > { %v152_v16 = vpop.xlane.xlu0 %151 }
 0x112   : > { %v153_v17 = vsub.f32 %v148_v11, %v152_v16 }
 0x114   : > { %v154_v18 = vmul.f32 1.442695, %v153_v17 }
 0x116   : > { %469 = vpow2.f32 %v154_v18 }
 0x11c   : > { %v470_v21 = vpop.eup %469 }
 0x11d   : > { %v156_v22 = vsel %vm149_vm2, %v470_v21, 0.0 }
 0x11e   : > { %157 = vadd.xlane.f32.xlu1 %v156_v22 }
 0x124   : > { %v188_v27 = vpop.permute.xlu0 %187 }
 0x125   : > { %v193_v28 = vsel %vm127_vm0, %v188_v27, 0 }
 0x126   : > { %202 = vmatpush.bf16.xpose.msra.mxu2 %v193_v28 }
 0x137   : > { %185 = vrot.lane.b32.xlu1 %v184_v5, %s495_s14 }
 0x161   : > { %342 = vmax.xlane.f32.xlu1 %v341_v37 }
 0x191   : > { %v158_v30 = vpop.xlane.xlu1 %157 }
 0x192   : > { %471 = vrcp.f32 %v158_v30 }
 0x198   : > { %v472_v31 = vpop.eup %471 }
 0x199   : > { %v160_v32 = vmul.f32 %v472_v31, %v470_v21 }
 0x19b   : > { %v161_v33 = vpack.c.bf16 %v160_v32, %v160_v32 }
 0x19d   : > { %444 = vmatmul.msk.bf16.vlgmr.msra.gmra.mxu1 %vm149_vm2, %v161_v33 }
 0x1a9   : > { %v186_v39 = vpop.permute.xlu1 %185 }
 0x1aa   : > { %445 = vmatmul.msk.bf16.vlgmr.msra.gmra.mxu2 %vm127_vm0, %v186_v39 }
 0x1ad   : > { %447 = vmatmul.msk.bf16.vlgmr.msrb.gmra.mxu1 %vm127_vm0, %v253_v19 }
 0x1d4   : > { %v343_v56 = vpop.xlane.xlu1 %342 }
 0x1d5   : > { %v344_v60 = vsub.f32 %v340_v36, %v343_v56 }
 0x1d7   : > { %v345_v62 = vmul.f32 1.442695, %v344_v60 }
 0x21a   : > { %v178_v40 = vpop.f32.mrf.mxu1 }
 0x21b   : > { %182 = vst.msk [vmem:[#allocation2] sm:$0xff] %vm127_vm0, %v178_v40 }
 0x222   : > { %v180_v41 = vpop.f32.mrf.mxu1 }
 0x22a   : > { %v271_v42 = vpop.f32.mrf.mxu1 }
 0x22b   : > { %v275_v43 = vmul.f32 0.28867513, %v271_v42 }
 0x22d   : > { %v204_v44 = vpop.f32.mrf.mxu2  ;;  %v276_v45 = vsel %vm122_vm1, %v275_v43, -1e+09 }
 0x22e   : > { %v208_v46 = vmul.f32 0.28867513, %v204_v44  ;;  %v277_v47 = vsel %vm149_vm2, %v276_v45, -inf }
 0x22f   : > { %278 = vmax.xlane.f32.xlu2 %v277_v47 }
 0x230   : > { %v209_v48 = vsel %vm122_vm1, %v208_v46, -1e+09 }
 0x231   : > { %v210_v49 = vsel %vm149_vm2, %v209_v48, -inf }
 0x232   : > { %v273_v50 = vpop.f32.mrf.mxu1  ;;  %211 = vmax.xlane.f32.xlu0 %v210_v49 }
 0x235   : > { %v206_v51 = vpop.f32.mrf.mxu2 }
 0x247   : > { %225 = vrot.lane.b32.xlu2 %v224_v53, %s495_s14 }
 0x2a2   : > { %v279_v54 = vpop.xlane.xlu2 %278 }
 0x2a3   : > { %v280_v55 = vsub.f32 %v276_v45, %v279_v54 }
 0x2a5   : > { %v281_v57 = vmul.f32 1.442695, %v280_v55  ;;  %v212_v58 = vpop.xlane.xlu0 %211 }
 0x2a6   : > { %v213_v59 = vsub.f32 %v209_v48, %v212_v58 }
 0x2a7   : > { %473 = vpow2.f32 %v281_v57 }
 0x2a8   : > { %v214_v61 = vmul.f32 1.442695, %v213_v59 }
 0x2aa   : > { %475 = vpow2.f32 %v214_v61  ;;  %v226_v5 = vpop.permute.xlu2 %225 }
 0x2ab   : > { %477 = vpow2.f32 %v345_v62  ;;  %v231_v6 = vsel %vm165_vm3, %v226_v5, 0 }
 0x2ac   : > { %240 = vmatpush.bf16.msra.mxu3 %v231_v6 }
 0x2ad   : > { %v474_v63 = vpop.eup %473 }
 0x2ae   : > { %v283_v0 = vsel %vm149_vm2, %v474_v63, 0.0 }
 0x2af   : > { %284 = vadd.xlane.f32.xlu1 %v283_v0 }
 0x2b0   : > { %v476_v1 = vpop.eup %475 }
 0x2b1   : > { %v216_v2 = vsel %vm149_vm2, %v476_v1, 0.0  ;;  %v478_v3 = vpop.eup %477 }
 0x2b2   : > { %217 = vadd.xlane.f32.xlu0 %v216_v2  ;;  %v347_v4 = vsel %vm149_vm2, %v478_v3, 0.0 }
 0x2ba   : > { %348 = vadd.xlane.f32.xlu0 %v347_v4 }
 0x2c8   : > { %289 = vrot.lane.b32.xlu1 %v224_v53, %s493_s12 }
 0x2ce   : > { %353 = vrot.lane.b32.xlu0 %v224_v53, %s494_s13 }
 0x322   : > { %v285_v10 = vpop.xlane.xlu1 %284 }
 0x325   : > { %v218_v7 = vpop.xlane.xlu0 %217 }
 0x326   : > { %479 = vrcp.f32 %v218_v7 }
 0x327   : > { %481 = vrcp.f32 %v285_v10 }
 0x32c   : > { %v480_v8 = vpop.eup %479 }
 0x32d   : > { %v220_v9 = vmul.f32 %v480_v8, %v476_v1  ;;  %v349_v12 = vpop.xlane.xlu0 %348  ;;  %v482_v13 = vpop.eup %481 }
 0x32e   : > { %483 = vrcp.f32 %v349_v12  ;;  %v287_v15 = vmul.f32 %v482_v13, %v474_v63 }
 0x32f   : > { %v221_v11 = vpack.c.bf16 %v220_v9, %v220_v9 }
 0x330   : > { %v288_v19 = vpack.c.bf16 %v287_v15, %v287_v15 }
 0x331   : > { %446 = vmatmul.msk.bf16.vlgmr.msra.gmra.mxu3 %vm149_vm2, %v221_v11 }
 0x334   : > { %v484_v17 = vpop.eup %483 }
 0x335   : > { %v351_v18 = vmul.f32 %v484_v17, %v478_v3 }
 0x337   : > { %v352_v22 = vpack.c.bf16 %v351_v18, %v351_v18 }
 0x33a   : > { %v290_v14 = vpop.permute.xlu1 %289 }
 0x33b   : > { %v295_v16 = vsel %vm165_vm3, %v290_v14, 0 }
 0x33c   : > { %304 = vmatpush.bf16.msrb.mxu3 %v295_v16 }
 0x340   : > { %v354_v20 = vpop.permute.xlu0 %353 }
 0x341   : > { %448 = vmatmul.msk.bf16.vlgmr.msrb.gmra.mxu3 %vm149_vm2, %v288_v19  ;;  %v359_v21 = vsel %vm165_vm3, %v354_v20, 0 }
 0x342   : > { %368 = vmatpush.bf16.msrb.mxu2 %v359_v21 }
 0x345   : > { %450 = vmatmul.msk.bf16.vlgmr.msrb.gmra.mxu2 %vm149_vm2, %v352_v22 }
 0x3b4   : > { %v242_v23 = vpop.f32.mrf.mxu3 }
 0x3b5   : > { %247 = vrot.lane.b32.xlu2 %v242_v23, %s497_s15 }
 0x3bc   : > { %v244_v24 = vpop.f32.mrf.mxu3 }
 0x3c4   : > { %v306_v25 = vpop.f32.mrf.mxu3 }
 0x3c5   : > { %311 = vrot.lane.b32.xlu2 %v306_v25, %s498_s16 }
 0x3c8   : > { %v370_v26 = vpop.f32.mrf.mxu2 }
 0x3c9   : > { %375 = vrot.lane.b32.xlu0 %v370_v26, %s499_s17 }
 0x3cc   : > { %v308_v27 = vpop.f32.mrf.mxu3 }
 0x3d0   : > { %v372_v28 = vpop.f32.mrf.mxu2 }
 0x40f   : > { %v248_v29 = vpop.permute.xlu2 %247 }
 0x410   : > { %251 = vst.msk [vmem:[#allocation2] sm:$0xff] %vm250_vm4, %v248_v29 }
 0x41f   : > { %v312_v30 = vpop.permute.xlu2 %311 }
 0x420   : > { %315 = vst.msk [vmem:[#allocation2] sm:$0xff] %vm314_vm5, %v312_v30 }
 0x43b   : > { %v376_v31 = vpop.permute.xlu0 %375 }
 0x43c   : > { %379 = vst.msk [vmem:[#allocation2] sm:$0xff] %vm378_vm6, %v376_v31 }
 0x443   : > { %v380_v32 = vld [vmem:[#allocation2] sm:$0xff] }
 0x444   : > { %v381_v33 = vpack.c.bf16 %v380_v32, %v380_v32 }
 0x446   : > { %382 = vst [vmem:[%s114_s21] sm:$0xf] %v381_v33 }
 0x447 PF: > { %s11_s6 = sadd.s32 1, %s491_s6  }
 0x448   : > { %p8_p4 = scmp.ge.s32.totalorder %s11_s6, 4  }
 0x44a   :  { %10 = sbr.rel (!%p8_p4) target bundleno = 1 (0x1), region = 54 }

// kernel: vlt_forward.24
= control target key start
LH: loop header
LB: loop body
LE: loop exit
PB: predicated region body
PF: predicated region fallthrough
CT: control target
= control target key end

     0   :  { %s875_s18 = smov 0   ;;  %s877_s19 = smov 0   ;;  %s1003_s0 = inlined_call_operand.vmem [shape: bf16[16,128], index: 0, kind: input, shape index: {}]   ;;  %s1004_s1 = inlined_call_operand.vmem [shape: f32[1,128], index: 1, kind: input, shape index: {}]   ;;  %s1005_s2 = inlined_call_operand.vmem [shape: f32[1,128], index: 2, kind: input, shape index: {}]   ;;  %s1006_s3 = inlined_call_operand.vmem [shape: bf16[128,384], index: 3, kind: input, shape index: {}]   ;;  %s1007_s4 = inlined_call_operand.vmem [shape: f32[1,384], index: 4, kind: input, shape index: {}]   ;;  %s1008_s5 = inlined_call_operand.vmem [shape: bf16[16,384], index: 5, kind: output, shape index: {}]  }
   0x1   :  { %s879_s20 = smov 0   ;;  %s881_s21 = smov 0  }
   0x2   :  { %s883_s22 = smov 0  }
   0x3 LB: > { %s24_s23 = sadd.s32 1, %s839_s21  ;;  %s684_s24 = sadd.s32 4294967295, %s843_s22   ;;  %s843_s22 = sphi %s883_s22, %s15_s22   ;;  %s839_s21 = sphi %s881_s21, %s1013_s21   ;;  %s835_s20 = sphi %s879_s20, %s1012_s20   ;;  %s831_s19 = sphi %s877_s19, %s1011_s19   ;;  %s827_s18 = sphi %s875_s18, %s1010_s18  }
   0x4   : > { %p25_p0 = scmp.ge.s32.totalorder %s24_s23, 3  ;;  %p109_p1 = scmp.ne.s32.totalorder %s831_s19, %s827_s18 }
   0x5   : > { %p110_p2 = scmp.eq.s32.totalorder %s843_s22, 0  ;;  %p167_p4 = scmp.eq.s32.totalorder %s684_s24, 2 }
   0x6   : > { %s1015_s23 = smov (%p25_p0, %s24_s23), 0  ;;  %s102_s26 = sadd.s32 1, %s831_s19 }
   0x7   : > { %p111_p3 = por %p110_p2, %p109_p1  ;;  %s99_s25 = ssub.s32 %s839_s21, %s1015_s23 }
   0x8   : > { %p100_p5 = scmp.eq.s32.totalorder %s99_s25, 0  ;;  %p910_p6 = por %p167_p4, %p109_p1 }
   0x9   : > { %p688_p7 = scmp.ge.s32.totalorder %s843_s22, 3 }
   0xa   : > { %s915_s28 = scalar_select %p100_p5, %s831_s19, %s102_s26  }
   0xb   : > { %204 = sbr.rel (%p688_p7) target bundleno = 36 (0x24), region = 28 }
  0x10   : > { %207 = sbr.rel (!%p111_p3) target bundleno = 36 (0x24), region = 32  ;;  %s209_s29 = sand.u32 (%p111_p3), 1, %s831_s19  }
  0x11   : > { %s690_s30 = sshll.u32 (%p111_p3), %s839_s21, 2  ;;  %s689_s6 = sshll.u32 (%p111_p3), %s209_s29, 6 }
  0x12   : > { %s923_s9 = scalar_lea.vmem (%p111_p3), %s1006_s3, %s690_s30  ;;  %s211_s10 = scalar_lea.vmem (%p111_p3), [#allocation3], %s689_s6 }
  0x13   : > { %v230_v0 = vld [vmem:[%s923_s9] sm:$0xf] (%p111_p3)  ;;  %v232_v1 = vld [vmem:[%s923_s9 + $0xc] sm:$0xf] (%p111_p3)  ;;  %v234_v2 = vld [vmem:[%s923_s9 + $0x18] sm:$0xf] (%p111_p3) }
  0x14   : > { %231 = vst [vmem:[%s211_s10] sm:$0xf] (%p111_p3), %v230_v0  ;;  %v236_v3 = vld [vmem:[%s923_s9 + $0x24] sm:$0xf] (%p111_p3)  ;;  %v238_v4 = vld [vmem:[%s923_s9 + $0x30] sm:$0xf] (%p111_p3) }
  0x15   : > { %233 = vst [vmem:[%s211_s10 + $0x4] sm:$0xf] %v232_v1  ;;  %v240_v5 = vld [vmem:[%s923_s9 + $0x3c] sm:$0xf]  ;;  %v242_v6 = vld [vmem:[%s923_s9 + $0x48] sm:$0xf] }
  0x16   : > { %235 = vst [vmem:[%s211_s10 + $0x8] sm:$0xf] %v234_v2  ;;  %v244_v7 = vld [vmem:[%s923_s9 + $0x54] sm:$0xf]  ;;  %v246_v8 = vld [vmem:[%s923_s9 + $0x60] sm:$0xf] }
  0x17   : > { %237 = vst [vmem:[%s211_s10 + $0xc] sm:$0xf] %v236_v3  ;;  %v248_v9 = vld [vmem:[%s923_s9 + $0x6c] sm:$0xf]  ;;  %v250_v10 = vld [vmem:[%s923_s9 + $0x78] sm:$0xf] }
  0x18   : > { %239 = vst [vmem:[%s211_s10 + $0x10] sm:$0xf] %v238_v4  ;;  %v252_v11 = vld [vmem:[%s923_s9 + $0x84] sm:$0xf]  ;;  %v254_v12 = vld [vmem:[%s923_s9 + $0x90] sm:$0xf] }
  0x19   : > { %241 = vst [vmem:[%s211_s10 + $0x14] sm:$0xf] %v240_v5  ;;  %v256_v13 = vld [vmem:[%s923_s9 + $0x9c] sm:$0xf]  ;;  %v258_v14 = vld [vmem:[%s923_s9 + $0xa8] sm:$0xf] }
  0x1a   : > { %243 = vst [vmem:[%s211_s10 + $0x18] sm:$0xf] %v242_v6  ;;  %v260_v15 = vld [vmem:[%s923_s9 + $0xb4] sm:$0xf] }
  0x1b   : > { %245 = vst [vmem:[%s211_s10 + $0x1c] sm:$0xf] %v244_v7 }
  0x1c   : > { %247 = vst [vmem:[%s211_s10 + $0x20] sm:$0xf] %v246_v8 }
  0x1d   : > { %249 = vst [vmem:[%s211_s10 + $0x24] sm:$0xf] %v248_v9 }
  0x1e   : > { %251 = vst [vmem:[%s211_s10 + $0x28] sm:$0xf] %v250_v10 }
  0x1f   : > { %253 = vst [vmem:[%s211_s10 + $0x2c] sm:$0xf] %v252_v11 }
  0x20   : > { %255 = vst [vmem:[%s211_s10 + $0x30] sm:$0xf] %v254_v12 }
  0x21   : > { %257 = vst [vmem:[%s211_s10 + $0x34] sm:$0xf] %v256_v13 }
  0x22   : > { %259 = vst [vmem:[%s211_s10 + $0x38] sm:$0xf] %v258_v14 }
  0x23   : > { %261 = vst [vmem:[%s211_s10 + $0x3c] sm:$0xf] %v260_v15 }
  0x24 PF: > { %p691_p8 = scmp.ge.s32.totalorder %s843_s22, 1  ;;  %p322_p9 = scmp.lt.s32.totalorder %s843_s22, 4 }
  0x26   : > { %p323_p10 = pnand %p691_p8, %p322_p9 }
  0x27   : > { %s329_s11 = sand.u32 (!%p323_p10), 1, %s827_s18   ;;  %p369_p11 = scmp.lt.s32.totalorder (!%p323_p10), %s835_s20, 2 }
  0x28   : > { %326 = sbr.rel (%p323_p10) target bundleno = 512 (0x200), region = 77  ;;  %s692_s12 = sshll.u32 (!%p323_p10), %s329_s11, 6 }
  0x29   : > { %s693_s13 = sshll.u32 (!%p323_p10), %s329_s11, 3  ;;  %s952_s24 = scalar_lea.vmem (!%p323_p10), [#allocation3], %s692_s12 }
  0x2a   : > { %s954_s25 = scalar_lea.vmem (!%p323_p10), [#allocation4], %s693_s13  ;;  %p694_p12 = scmp.ne.s32.totalorder (!%p323_p10), %s835_s20, 0 }
  0x2d   : > { %s946_s14 = scalar_select %p369_p11, %s835_s20, 2 }
  0x2e   : > { %376 = sbr.rel (%p694_p12) target bundleno = 332 (0x14c), region = 85 }
  0x2f   : > { %s371_s17 = scalar_lea.vmem %s1007_s4, %s946_s14 }
  0x33   : > { %v745_v16 = vld [vmem:[%s1003_s0] sm:$0xff]   ;;  %v389_v19 = vlaneseq }
  0x34   : > { %v746_v17 = vunpack.c.l.bf16 %v745_v16  ;;  %v747_v18 = vunpack.c.h.bf16 %v745_v16  ;;  %v798_v49 = vld [vmem:[%s1004_s1] ss:$0 sm:$0xff] }
  0x35   : > { %v390_v20 = vand.u32 127, %v389_v19  ;;  %v799_v53 = vld [vmem:[%s1005_s2] ss:$0 sm:$0xff] }
  0x36   : > { %381 = vadd.xlane.f32.xlu0 %v746_v17 }
  0x37   : > { %vm391_vm0 = vcmp.lt.s32.totalorder %v390_v20, 48 }
  0x3e   : > { %383 = vadd.xlane.f32.xlu0 %v747_v18 }
  0xa9   : > { %v382_v21 = vpop.xlane.xlu0 %381 }
  0xaa   : > { %v385_v22 = vmul.f32 0.020833334, %v382_v21 }
  0xac   : > { %v387_v23 = vsub.f32 %v746_v17, %v385_v22 }
  0xae   : > { %v392_v24 = vsel %vm391_vm0, %v387_v23, 0.0 }
  0xaf   : > { %v394_v25 = vmul.f32 %v392_v24, %v392_v24 }
  0xb1   : > { %396 = vadd.xlane.f32.xlu1 %v394_v25  ;;  %v384_v26 = vpop.xlane.xlu0 %383 }
  0xb2   : > { %v386_v27 = vmul.f32 0.020833334, %v384_v26 }
  0xb4   : > { %v388_v28 = vsub.f32 %v747_v18, %v386_v27 }
  0xb6   : > { %v393_v29 = vsel %vm391_vm0, %v388_v28, 0.0 }
  0xb7   : > { %v395_v30 = vmul.f32 %v393_v29, %v393_v29 }
  0xb9   : > { %398 = vadd.xlane.f32.xlu1 %v395_v30 }
 0x124   : > { %v397_v31 = vpop.xlane.xlu1 %396 }
 0x125   : > { %v400_v32 = vmul.f32 0.020833334, %v397_v31 }
 0x127   : > { %v402_v33 = vadd.f32 1e-05, %v400_v32 }
 0x129   : > { %800 = vrsqrt.f32 %v402_v33  ;;  %vm410_vm2 = vweird.f32 %v402_v33 }
 0x12c   : > { %v399_v34 = vpop.xlane.xlu1 %398 }
 0x12d   : > { %v401_v35 = vmul.f32 0.020833334, %v399_v34 }
 0x12f   : > { %v801_v36 = vpop.eup %800  ;;  %v403_v37 = vadd.f32 1e-05, %v401_v35 }
 0x130   : > { %v405_v38 = vmul.f32 %v801_v36, %v402_v33  ;;  %vm411_vm1 = vweird.f32 %v801_v36 }
 0x131   : > { %802 = vrsqrt.f32 %v403_v37  ;;  %vm412_vm3 = vmor %vm410_vm2, %vm411_vm1  ;;  %vm420_vm5 = vweird.f32 %v403_v37 }
 0x132   : > { %v406_v39 = vmul.f32 %v801_v36, %v405_v38 }
 0x134   : > { %v407_v40 = vmul.f32 0.5, %v406_v39 }
 0x136   : > { %v408_v41 = vsub.f32 1.5, %v407_v40 }
 0x137   : > { %v803_v42 = vpop.eup %802 }
 0x138   : > { %v409_v43 = vmul.f32 %v801_v36, %v408_v41  ;;  %v415_v44 = vmul.f32 %v803_v42, %v403_v37  ;;  %vm421_vm4 = vweird.f32 %v803_v42 }
 0x139   : > { %vm422_vm6 = vmor %vm420_vm5, %vm421_vm4 }
 0x13a   : > { %v416_v45 = vmul.f32 %v803_v42, %v415_v44  ;;  %v413_v46 = vsel %vm412_vm3, %v801_v36, %v409_v43 }
 0x13b   : > { %v424_v50 = vmul.f32 %v413_v46, %v387_v23 }
 0x13c   : > { %v417_v47 = vmul.f32 0.5, %v416_v45 }
 0x13d   : > { %v430_v54 = vmul.f32 %v798_v49, %v424_v50 }
 0x13e   : > { %v418_v48 = vsub.f32 1.5, %v417_v47 }
 0x13f   : > { %v436_v57 = vadd.f32 %v799_v53, %v430_v54 }
 0x140   : > { %v419_v51 = vmul.f32 %v803_v42, %v418_v48 }
 0x142   : > { %v423_v52 = vsel %vm422_vm6, %v803_v42, %v419_v51 }
 0x143   : > { %v425_v55 = vmul.f32 %v423_v52, %v388_v28 }
 0x145   : > { %v431_v56 = vmul.f32 %v798_v49, %v425_v55 }
 0x147   : > { %v437_v58 = vadd.f32 %v799_v53, %v431_v56 }
 0x149   : > { %v751_v59 = vpack.c.bf16 %v437_v58, %v436_v57 }
 0x14b   : > { %752 = vst [vmem:[#allocation2] sm:$0xff] %v751_v59  }
 0x14c PF: > { %v743_v60 = vld [vmem:[%s952_s24 + $0x38] sm:$0xff]  ;;  %v742_v61 = vld [vmem:[%s952_s24 + $0x30] sm:$0xff]  ;;  %v741_v62 = vld [vmem:[%s952_s24 + $0x28] sm:$0xff]  ;;  %s732_s10 = sshll.u32 (%p910_p6), %s835_s20, 2 }
 0x14d   : > { %518 = vmatpush.bf16.msra.mxu0 %v743_v60  ;;  %v740_v63 = vld [vmem:[%s952_s24 + $0x20] sm:$0xff]  ;;  %v739_v0 = vld [vmem:[%s952_s24 + $0x18] sm:$0xff]  ;;  %v738_v1 = vld [vmem:[%s952_s24 + $0x10] sm:$0xff]  ;;  %s547_s13 = scalar_lea.vmem (%p910_p6), %s1008_s5, %s732_s10 }
 0x14e   : > { %v737_v2 = vld [vmem:[%s952_s24 + $0x8] sm:$0xff]  ;;  %v736_v3 = vld [vmem:[%s952_s24] sm:$0xff]  ;;  %v804_v6 = vld [vmem:[%s371_s17] ss:$0 sm:$0xff] }
 0x151   : > { %519 = vmatpush.bf16.msra.mxu0 %v742_v61 }
 0x152   : > { %v735_v4 = vld [vmem:[#allocation2] sm:$0xff] }
 0x155   : > { %520 = vmatpush.bf16.msra.mxu0 %v741_v62 }
 0x159   : > { %521 = vmatpush.bf16.msra.mxu0 %v740_v63 }
 0x15d   : > { %522 = vmatpush.bf16.msra.mxu0 %v739_v0 }
 0x161   : > { %523 = vmatpush.bf16.msra.mxu0 %v738_v1 }
 0x165   : > { %524 = vmatpush.bf16.msra.mxu0 %v737_v2 }
 0x169   : > { %525 = vmatpush.bf16.msra.mxu0 %v736_v3 }
 0x16c   : > { %526 = vmatmul.bf16.vlgmr.msra.gmra.mxu0 %v735_v4 }
 0x1e9   : > { %v527_v5 = vpop.f32.mrf.mxu0 }
 0x1ea   : > { %v528_v8 = vadd.f32 %v804_v6, %v527_v5 }
 0x1f1   : > { %v529_v7 = vpop.f32.mrf.mxu0 }
 0x1f2   : > { %v530_v9 = vadd.f32 %v804_v6, %v529_v7  ;;  %542 = sbr.rel (!%p910_p6) target bundleno = 512 (0x200), region = 89 }
 0x1f4   : > { %v756_v10 = vpack.c.bf16 %v530_v9, %v528_v8 }
 0x1f6   : > { %757 = vst [vmem:[%s954_s25] sm:$0xff] %v756_v10  }
 0x1fd   : > { %v564_v11 = vld [vmem:[%s954_s25] sm:$0xf]  ;;  %v566_v12 = vld [vmem:[%s954_s25 + $0x4] sm:$0xf] }
 0x1fe   : > { %565 = vst [vmem:[%s547_s13] sm:$0xf] %v564_v11 }
 0x1ff   : > { %567 = vst [vmem:[%s547_s13 + $0xc] sm:$0xf] %v566_v12 }
 0x200 PF: > { %s15_s22 = sadd.s32 1, %s843_s22   ;;  %s1010_s18 = smov %s831_s19 }
 0x201   : > { %p12_p13 = scmp.ge.s32.totalorder %s15_s22, 5   ;;  %s1011_s19 = smov %s915_s28 }
 0x202   : > { %s1012_s20 = smov %s839_s21  ;;  %s1013_s21 = smov %s1015_s23 }
 0x203   :  { %14 = sbr.rel (!%p12_p13) target bundleno = 3 (0x3), region = 167 }

// kernel: vlt_forward.26
= control target key start
LH: loop header
LB: loop body
LE: loop exit
PB: predicated region body
PF: predicated region fallthrough
CT: control target
= control target key end

     0   :  { %s256_s1 = inlined_call_operand.vmem [shape: bf16[128,128], index: 1, kind: input, shape index: {}]   ;;  %s257_s2 = inlined_call_operand.vmem [shape: f32[1,128], index: 2, kind: input, shape index: {}]   ;;  %s258_s0 = inlined_call_operand.vmem [shape: bf16[16,128], index: 0, kind: input, shape index: {}]   ;;  %s259_s3 = inlined_call_operand.vmem [shape: bf16[16,128], index: 3, kind: input, shape index: {}]   ;;  %s260_s4 = inlined_call_operand.vmem [shape: bf16[16,128], index: 4, kind: output, shape index: {}]  }
   0x1   :  { %v184_v0 = vld [vmem:[%s256_s1 + $0x38] sm:$0xff]  ;;  %v183_v1 = vld [vmem:[%s256_s1 + $0x30] sm:$0xff]  ;;  %v182_v2 = vld [vmem:[%s256_s1 + $0x28] sm:$0xff] }
   0x2   :  { %97 = vmatpush.bf16.msra.mxu0 %v184_v0  ;;  %v181_v3 = vld [vmem:[%s256_s1 + $0x20] sm:$0xff]  ;;  %v180_v4 = vld [vmem:[%s256_s1 + $0x18] sm:$0xff]  ;;  %v179_v5 = vld [vmem:[%s256_s1 + $0x10] sm:$0xff] }
   0x3   :  { %v178_v6 = vld [vmem:[%s256_s1 + $0x8] sm:$0xff]  ;;  %v177_v7 = vld [vmem:[%s256_s1] sm:$0xff] }
   0x4   :  { %v176_v8 = vld [vmem:[%s258_s0] sm:$0xff] }
   0x5   :  { %v194_v10 = vld [vmem:[%s257_s2] ss:$0 sm:$0xff] }
   0x6   :  { %98 = vmatpush.bf16.msra.mxu0 %v183_v1  ;;  %v186_v11 = vld [vmem:[%s259_s3] sm:$0xff]  }
   0x7   :  { %v187_v13 = vunpack.c.l.bf16 %v186_v11  ;;  %v188_v14 = vunpack.c.h.bf16 %v186_v11 }
   0xa   :  { %99 = vmatpush.bf16.msra.mxu0 %v182_v2 }
   0xe   :  { %100 = vmatpush.bf16.msra.mxu0 %v181_v3 }
  0x12   :  { %101 = vmatpush.bf16.msra.mxu0 %v180_v4 }
  0x16   :  { %102 = vmatpush.bf16.msra.mxu0 %v179_v5 }
  0x1a   :  { %103 = vmatpush.bf16.msra.mxu0 %v178_v6 }
  0x1e   :  { %104 = vmatpush.bf16.msra.mxu0 %v177_v7 }
  0x21   :  { %105 = vmatmul.bf16.vlgmr.msra.gmra.mxu0 %v176_v8 }
  0x9e   :  { %v106_v9 = vpop.f32.mrf.mxu0 }
  0x9f   :  { %v124_v12 = vadd.f32 %v194_v10, %v106_v9 }
  0xa1   :  { %v130_v17 = vadd.f32 %v187_v13, %v124_v12 }
  0xa6   :  { %v108_v15 = vpop.f32.mrf.mxu0 }
  0xa7   :  { %v125_v16 = vadd.f32 %v194_v10, %v108_v15 }
  0xa9   :  { %v131_v18 = vadd.f32 %v188_v14, %v125_v16 }
  0xab   :  { %v192_v19 = vpack.c.bf16 %v131_v18, %v130_v17 }
  0xad   :  { %193 = vst [vmem:[%s260_s4] sm:$0xff] %v192_v19  }

// kernel: vlt_forward.35
= control target key start
LH: loop header
LB: loop body
LE: loop exit
PB: predicated region body
PF: predicated region fallthrough
CT: control target
= control target key end

     0   :  { %s357_s1 = inlined_call_operand.vmem [shape: bf16[256,128], index: 1, kind: input, shape index: {}]   ;;  %s358_s0 = inlined_call_operand.vmem [shape: bf16[8,256], index: 0, kind: input, shape index: {}]   ;;  %s359_s2 = inlined_call_operand.vmem [shape: f32[1,128], index: 2, kind: input, shape index: {}]   ;;  %s360_s3 = inlined_call_operand.vmem [shape: bf16[8,128], index: 3, kind: output, shape index: {}]  }
   0x1   :  { %v270_v0 = vld [vmem:[%s357_s1 + $0x38] sm:$0xff]  ;;  %v269_v2 = vld [vmem:[%s357_s1 + $0x30] sm:$0xff]  ;;  %v268_v4 = vld [vmem:[%s357_s1 + $0x28] sm:$0xff] }
   0x2   :  { %v278_v1 = vld [vmem:[%s357_s1 + $0x78] sm:$0xff]  ;;  %156 = vmatpush.bf16.msra.mxu0 %v270_v0  ;;  %v277_v3 = vld [vmem:[%s357_s1 + $0x70] sm:$0xff]  ;;  %v276_v5 = vld [vmem:[%s357_s1 + $0x68] sm:$0xff] }
   0x3   :  { %169 = vmatpush.bf16.msra.mxu1 %v278_v1  ;;  %v267_v6 = vld [vmem:[%s357_s1 + $0x20] sm:$0xff]  ;;  %v266_v8 = vld [vmem:[%s357_s1 + $0x18] sm:$0xff]  ;;  %v265_v10 = vld [vmem:[%s357_s1 + $0x10] sm:$0xff] }
   0x4   :  { %v275_v7 = vld [vmem:[%s357_s1 + $0x60] sm:$0xff]  ;;  %v274_v9 = vld [vmem:[%s357_s1 + $0x58] sm:$0xff]  ;;  %v273_v11 = vld [vmem:[%s357_s1 + $0x50] sm:$0xff] }
   0x5   :  { %v264_v12 = vld [vmem:[%s357_s1 + $0x8] sm:$0xff]  ;;  %v20_v14 = vld [vmem:[%s358_s0] sm:$0xff] }
   0x6   :  { %157 = vmatpush.bf16.msra.mxu0 %v269_v2  ;;  %v272_v13 = vld [vmem:[%s357_s1 + $0x48] sm:$0xff]  ;;  %v54_v15 = vunpack.c.l.b16 %v20_v14  ;;  %v55_v16 = vunpack.c.h.b16 %v20_v14  ;;  %v263_v17 = vld [vmem:[%s357_s1] sm:$0xff] }
   0x7   :  { %170 = vmatpush.bf16.msra.mxu1 %v277_v3  ;;  %v271_v18 = vld [vmem:[%s357_s1 + $0x40] sm:$0xff] }
   0x8   :  { %v56_v19 = vpack.c.b16 %v54_v15, %v54_v15  ;;  %v57_v20 = vpack.c.b16 %v55_v16, %v55_v16  ;;  %v279_v21 = vld [vmem:[%s359_s2] ss:$0 sm:$0xff] }
   0xa   :  { %158 = vmatpush.bf16.msra.mxu0 %v268_v4 }
   0xb   :  { %171 = vmatpush.bf16.msra.mxu1 %v276_v5 }
   0xe   :  { %159 = vmatpush.bf16.msra.mxu0 %v267_v6 }
   0xf   :  { %172 = vmatpush.bf16.msra.mxu1 %v275_v7 }
  0x12   :  { %160 = vmatpush.bf16.msra.mxu0 %v266_v8 }
  0x13   :  { %173 = vmatpush.bf16.msra.mxu1 %v274_v9 }
  0x16   :  { %161 = vmatpush.bf16.msra.mxu0 %v265_v10 }
  0x17   :  { %174 = vmatpush.bf16.msra.mxu1 %v273_v11 }
  0x1a   :  { %162 = vmatpush.bf16.msra.mxu0 %v264_v12 }
  0x1b   :  { %175 = vmatpush.bf16.msra.mxu1 %v272_v13 }
  0x1e   :  { %163 = vmatpush.bf16.msra.mxu0 %v263_v17 }
  0x1f   :  { %176 = vmatpush.bf16.msra.mxu1 %v271_v18 }
  0x21   :  { %164 = vmatmul.bf16.vlgmr.msra.gmra.mxu0 %v56_v19 }
  0x22   :  { %177 = vmatmul.bf16.vlgmr.msra.gmra.mxu1 %v57_v20 }
  0x9e   :  { %v165_v22 = vpop.f32.mrf.mxu0 }
  0x9f   :  { %v178_v23 = vpop.f32.mrf.mxu1 }
  0xa0   :  { %v179_v24 = vadd.f32 %v178_v23, %v165_v22 }
  0xa2   :  { %v192_v25 = vadd.f32 %v279_v21, %v179_v24 }
  0xa4   :  { %v193_v26 = vpack.c.bf16 %v192_v25, %v192_v25 }
  0xa6   :  { %194 = vst [vmem:[%s360_s3] sm:$0xf] %v193_v26  ;;  %v167_v27 = vpop.f32.mrf.mxu0 }
  0xa7   :  { %v180_v28 = vpop.f32.mrf.mxu1 }

// kernel: vlt_forward.34
= control target key start
LH: loop header
LB: loop body
LE: loop exit
PB: predicated region body
PF: predicated region fallthrough
CT: control target
= control target key end

     0   :  { %v36_v3 = vlaneseq  ;;  %s322_s0 = inlined_call_operand.vmem [shape: bf16[16,128], index: 0, kind: input, shape index: {}]   ;;  %s323_s1 = inlined_call_operand.vmem [shape: f32[1,128], index: 1, kind: input, shape index: {}]   ;;  %s324_s2 = inlined_call_operand.vmem [shape: f32[1,128], index: 2, kind: input, shape index: {}]   ;;  %s325_s4 = inlined_call_operand.vmem [shape: f32[1,128], index: 4, kind: input, shape index: {}]   ;;  %s326_s3 = inlined_call_operand.vmem [shape: bf16[128,128], index: 3, kind: input, shape index: {}]   ;;  %s327_s5 = inlined_call_operand.vmem [shape: bf16[16,128], index: 5, kind: output, shape index: {}]  }
   0x1   :  { %v233_v0 = vld [vmem:[%s322_s0] sm:$0xff]   ;;  %v231_v15 = vld [vmem:[%s326_s3 + $0x38] sm:$0xff]  ;;  %v230_v16 = vld [vmem:[%s326_s3 + $0x30] sm:$0xff] }
   0x2   :  { %v234_v1 = vunpack.c.l.bf16 %v233_v0  ;;  %v235_v2 = vunpack.c.h.bf16 %v233_v0  ;;  %v37_v4 = vand.u32 127, %v36_v3  ;;  %165 = vmatpush.bf16.msra.mxu0 %v231_v15  ;;  %v229_v17 = vld [vmem:[%s326_s3 + $0x28] sm:$0xff]  ;;  %v228_v18 = vld [vmem:[%s326_s3 + $0x20] sm:$0xff]  ;;  %v227_v19 = vld [vmem:[%s326_s3 + $0x18] sm:$0xff] }
   0x3   :  { %v226_v23 = vld [vmem:[%s326_s3 + $0x10] sm:$0xff]  ;;  %v225_v24 = vld [vmem:[%s326_s3 + $0x8] sm:$0xff]  ;;  %v224_v27 = vld [vmem:[%s326_s3] sm:$0xff] }
   0x4   :  { %28 = vadd.xlane.f32.xlu0 %v234_v1  ;;  %vm38_vm0 = vcmp.lt.s32.totalorder %v37_v4, 48  ;;  %v246_v41 = vld [vmem:[%s323_s1] ss:$0 sm:$0xff] }
   0x5   :  { %v247_v45 = vld [vmem:[%s324_s2] ss:$0 sm:$0xff] }
   0x6   :  { %166 = vmatpush.bf16.msra.mxu0 %v230_v16  ;;  %v248_v54 = vld [vmem:[%s325_s4] ss:$0 sm:$0xff] }
   0xa   :  { %167 = vmatpush.bf16.msra.mxu0 %v229_v17 }
   0xc   :  { %30 = vadd.xlane.f32.xlu0 %v235_v2 }
   0xe   :  { %168 = vmatpush.bf16.msra.mxu0 %v228_v18 }
  0x12   :  { %169 = vmatpush.bf16.msra.mxu0 %v227_v19 }
  0x16   :  { %170 = vmatpush.bf16.msra.mxu0 %v226_v23 }
  0x1a   :  { %171 = vmatpush.bf16.msra.mxu0 %v225_v24 }
  0x1e   :  { %172 = vmatpush.bf16.msra.mxu0 %v224_v27 }
  0x77   :  { %v29_v5 = vpop.xlane.xlu0 %28 }
  0x78   :  { %v32_v6 = vmul.f32 0.020833334, %v29_v5 }
  0x7a   :  { %v34_v7 = vsub.f32 %v234_v1, %v32_v6 }
  0x7c   :  { %v39_v8 = vsel %vm38_vm0, %v34_v7, 0.0 }
  0x7d   :  { %v41_v9 = vmul.f32 %v39_v8, %v39_v8 }
  0x7f   :  { %43 = vadd.xlane.f32.xlu1 %v41_v9  ;;  %v31_v10 = vpop.xlane.xlu0 %30 }
  0x80   :  { %v33_v11 = vmul.f32 0.020833334, %v31_v10 }
  0x82   :  { %v35_v12 = vsub.f32 %v235_v2, %v33_v11 }
  0x84   :  { %v40_v13 = vsel %vm38_vm0, %v35_v12, 0.0 }
  0x85   :  { %v42_v14 = vmul.f32 %v40_v13, %v40_v13 }
  0x87   :  { %45 = vadd.xlane.f32.xlu1 %v42_v14 }
  0xf2   :  { %v44_v20 = vpop.xlane.xlu1 %43 }
  0xf3   :  { %v47_v21 = vmul.f32 0.020833334, %v44_v20 }
  0xf5   :  { %v49_v22 = vadd.f32 1e-05, %v47_v21 }
  0xf7   :  { %249 = vrsqrt.f32 %v49_v22  ;;  %vm57_vm2 = vweird.f32 %v49_v22 }
  0xfa   :  { %v46_v25 = vpop.xlane.xlu1 %45 }
  0xfb   :  { %v48_v26 = vmul.f32 0.020833334, %v46_v25 }
  0xfd   :  { %v250_v28 = vpop.eup %249  ;;  %v50_v29 = vadd.f32 1e-05, %v48_v26 }
  0xfe   :  { %v52_v30 = vmul.f32 %v250_v28, %v49_v22  ;;  %vm58_vm1 = vweird.f32 %v250_v28 }
  0xff   :  { %251 = vrsqrt.f32 %v50_v29  ;;  %vm59_vm3 = vmor %vm57_vm2, %vm58_vm1  ;;  %vm67_vm5 = vweird.f32 %v50_v29 }
 0x100   :  { %v53_v31 = vmul.f32 %v250_v28, %v52_v30 }
 0x102   :  { %v54_v32 = vmul.f32 0.5, %v53_v31 }
 0x104   :  { %v55_v33 = vsub.f32 1.5, %v54_v32 }
 0x105   :  { %v252_v34 = vpop.eup %251 }
 0x106   :  { %v56_v35 = vmul.f32 %v250_v28, %v55_v33  ;;  %v62_v36 = vmul.f32 %v252_v34, %v50_v29  ;;  %vm68_vm4 = vweird.f32 %v252_v34 }
 0x107   :  { %vm69_vm6 = vmor %vm67_vm5, %vm68_vm4 }
 0x108   :  { %v63_v37 = vmul.f32 %v252_v34, %v62_v36  ;;  %v60_v38 = vsel %vm59_vm3, %v250_v28, %v56_v35 }
 0x109   :  { %v71_v42 = vmul.f32 %v60_v38, %v34_v7 }
 0x10a   :  { %v64_v39 = vmul.f32 0.5, %v63_v37 }
 0x10b   :  { %v77_v46 = vmul.f32 %v246_v41, %v71_v42 }
 0x10c   :  { %v65_v40 = vsub.f32 1.5, %v64_v39 }
 0x10d   :  { %v83_v49 = vadd.f32 %v247_v45, %v77_v46 }
 0x10e   :  { %v66_v43 = vmul.f32 %v252_v34, %v65_v40 }
 0x110   :  { %v70_v44 = vsel %vm69_vm6, %v252_v34, %v66_v43 }
 0x111   :  { %v72_v47 = vmul.f32 %v70_v44, %v35_v12 }
 0x113   :  { %v78_v48 = vmul.f32 %v246_v41, %v72_v47 }
 0x115   :  { %v84_v50 = vadd.f32 %v247_v45, %v78_v48 }
 0x117   :  { %v239_v51 = vpack.c.bf16 %v84_v50, %v83_v49 }
 0x119   :  { %240 = vst [vmem:[#allocation2] sm:$0xff] %v239_v51  }
 0x120   :  { %v223_v52 = vld [vmem:[#allocation2] sm:$0xff] }
 0x121   :  { %173 = vmatmul.bf16.vlgmr.msra.gmra.mxu0 %v223_v52 }
 0x19e   :  { %v174_v53 = vpop.f32.mrf.mxu0 }
 0x19f   :  { %v175_v56 = vadd.f32 %v248_v54, %v174_v53 }
 0x1a6   :  { %v176_v55 = vpop.f32.mrf.mxu0 }
 0x1a7   :  { %v177_v57 = vadd.f32 %v248_v54, %v176_v55 }
 0x1a9   :  { %v244_v58 = vpack.c.bf16 %v177_v57, %v175_v56 }
 0x1ab   :  { %245 = vst [vmem:[%s327_s5] sm:$0xff] %v244_v58  }

// kernel: vlt_forward.27
= control target key start
LH: loop header
LB: loop body
LE: loop exit
PB: predicated region body
PF: predicated region fallthrough
CT: control target
= control target key end

     0   :  { %v36_v3 = vlaneseq  ;;  %s599_s0 = inlined_call_operand.vmem [shape: bf16[16,128], index: 0, kind: input, shape index: {}]   ;;  %s600_s1 = inlined_call_operand.vmem [shape: f32[1,128], index: 1, kind: input, shape index: {}]   ;;  %s601_s2 = inlined_call_operand.vmem [shape: f32[1,128], index: 2, kind: input, shape index: {}]   ;;  %s602_s3 = inlined_call_operand.vmem [shape: bf16[128,256], index: 3, kind: input, shape index: {}]   ;;  %s603_s4 = inlined_call_operand.vmem [shape: f32[1,256], index: 4, kind: input, shape index: {}]   ;;  %s604_s5 = inlined_call_operand.vmem [shape: bf16[16,256], index: 5, kind: output, shape index: {}]  }
   0x1   :  { %v409_v0 = vld [vmem:[%s599_s0] sm:$0xff]   ;;  %v381_v15 = vld [vmem:[%s602_s3 + $0x70] sm:$0xf]  ;;  %v407_v16 = vld [vmem:[%s602_s3 + $0x74] sm:$0xf0] }
   0x2   :  { %v410_v1 = vunpack.c.l.bf16 %v409_v0  ;;  %v411_v2 = vunpack.c.h.bf16 %v409_v0  ;;  %v37_v4 = vand.u32 127, %v36_v3  ;;  %v406_v17 = vld [vmem:[%s602_s3 + $0x74] sm:$0xf]  ;;  %v382_v18 = vor.u32 %v407_v16, %v381_v15  ;;  %v383_v19 = vld [vmem:[%s602_s3 + $0x78] sm:$0xf0] }
   0x3   :  { %v386_v20 = vor.u32 %v406_v17, %v383_v19  ;;  %v373_v21 = vld [vmem:[%s602_s3 + $0x60] sm:$0xf]  ;;  %v405_v22 = vld [vmem:[%s602_s3 + $0x64] sm:$0xf0]  ;;  %v404_v23 = vld [vmem:[%s602_s3 + $0x64] sm:$0xf] }
   0x4   :  { %28 = vadd.xlane.f32.xlu0 %v410_v1  ;;  %vm38_vm0 = vcmp.lt.s32.totalorder %v37_v4, 48  ;;  %199 = vmatpush.bf16.msra.mxu0 %v382_v18  ;;  %v374_v24 = vor.u32 %v405_v22, %v373_v21  ;;  %v375_v25 = vld [vmem:[%s602_s3 + $0x68] sm:$0xf0]  ;;  %v365_v27 = vld [vmem:[%s602_s3 + $0x50] sm:$0xf] }
   0x5   :  { %213 = vmatpush.bf16.msra.mxu1 %v386_v20  ;;  %v378_v26 = vor.u32 %v404_v23, %v375_v25  ;;  %v403_v28 = vld [vmem:[%s602_s3 + $0x54] sm:$0xf0]  ;;  %v402_v29 = vld [vmem:[%s602_s3 + $0x54] sm:$0xf]  ;;  %v367_v31 = vld [vmem:[%s602_s3 + $0x58] sm:$0xf0] }
   0x6   :  { %v366_v30 = vor.u32 %v403_v28, %v365_v27  ;;  %v370_v32 = vor.u32 %v402_v29, %v367_v31  ;;  %v357_v33 = vld [vmem:[%s602_s3 + $0x40] sm:$0xf]  ;;  %v401_v34 = vld [vmem:[%s602_s3 + $0x44] sm:$0xf0]  ;;  %v400_v35 = vld [vmem:[%s602_s3 + $0x44] sm:$0xf] }
   0x7   :  { %v358_v36 = vor.u32 %v401_v34, %v357_v33  ;;  %v359_v37 = vld [vmem:[%s602_s3 + $0x48] sm:$0xf0]  ;;  %v349_v39 = vld [vmem:[%s602_s3 + $0x30] sm:$0xf]  ;;  %v399_v40 = vld [vmem:[%s602_s3 + $0x34] sm:$0xf0] }
   0x8   :  { %200 = vmatpush.bf16.msra.mxu0 %v374_v24  ;;  %v362_v38 = vor.u32 %v400_v35, %v359_v37  ;;  %v398_v41 = vld [vmem:[%s602_s3 + $0x34] sm:$0xf]  ;;  %v350_v42 = vor.u32 %v399_v40, %v349_v39  ;;  %v351_v43 = vld [vmem:[%s602_s3 + $0x38] sm:$0xf0]  ;;  %v341_v47 = vld [vmem:[%s602_s3 + $0x20] sm:$0xf] }
   0x9   :  { %214 = vmatpush.bf16.msra.mxu1 %v378_v26  ;;  %v354_v45 = vor.u32 %v398_v41, %v351_v43  ;;  %v397_v48 = vld [vmem:[%s602_s3 + $0x24] sm:$0xf0]  ;;  %v396_v49 = vld [vmem:[%s602_s3 + $0x24] sm:$0xf]  ;;  %v343_v52 = vld [vmem:[%s602_s3 + $0x28] sm:$0xf0] }
   0xa   :  { %v342_v51 = vor.u32 %v397_v48, %v341_v47  ;;  %v346_v53 = vor.u32 %v396_v49, %v343_v52  ;;  %v333_v54 = vld [vmem:[%s602_s3 + $0x10] sm:$0xf]  ;;  %v395_v55 = vld [vmem:[%s602_s3 + $0x14] sm:$0xf0]  ;;  %v394_v56 = vld [vmem:[%s602_s3 + $0x14] sm:$0xf] }
   0xb   :  { %v334_v57 = vor.u32 %v395_v55, %v333_v54  ;;  %v335_v58 = vld [vmem:[%s602_s3 + $0x18] sm:$0xf0]  ;;  %v325_v59 = vld [vmem:[%s602_s3] sm:$0xf]  ;;  %v393_v60 = vld [vmem:[%s602_s3 + $0x4] sm:$0xf0] }
   0xc   :  { %30 = vadd.xlane.f32.xlu0 %v411_v2  ;;  %201 = vmatpush.bf16.msra.mxu0 %v366_v30  ;;  %v338_v62 = vor.u32 %v394_v56, %v335_v58  ;;  %v392_v63 = vld [vmem:[%s602_s3 + $0x4] sm:$0xf]  ;;  %v327_v0 = vld [vmem:[%s602_s3 + $0x8] sm:$0xf0]  ;;  %v417_v19 = vld [vmem:[%s600_s1] ss:$0 sm:$0xff] }
   0xd   :  { %215 = vmatpush.bf16.msra.mxu1 %v370_v32  ;;  %v330_v3 = vor.u32 %v392_v63, %v327_v0  ;;  %v418_v23 = vld [vmem:[%s601_s2] ss:$0 sm:$0xff] }
  0x10   :  { %202 = vmatpush.bf16.msra.mxu0 %v358_v36 }
  0x11   :  { %216 = vmatpush.bf16.msra.mxu1 %v362_v38 }
  0x14   :  { %203 = vmatpush.bf16.msra.mxu0 %v350_v42 }
  0x15   :  { %217 = vmatpush.bf16.msra.mxu1 %v354_v45 }
  0x18   :  { %204 = vmatpush.bf16.msra.mxu0 %v342_v51 }
  0x19   :  { %218 = vmatpush.bf16.msra.mxu1 %v346_v53 }
  0x1c   :  { %205 = vmatpush.bf16.msra.mxu0 %v334_v57 }
  0x1d   :  { %219 = vmatpush.bf16.msra.mxu1 %v338_v62 }
  0x21   :  { %220 = vmatpush.bf16.msra.mxu1 %v330_v3 }
  0x77   :  { %v29_v5 = vpop.xlane.xlu0 %28 }
  0x78   :  { %v32_v6 = vmul.f32 0.020833334, %v29_v5 }
  0x7a   :  { %v472_v7 = vsub.f32 %v410_v1, %v32_v6 }
  0x7c   :  { %v39_v8 = vsel %vm38_vm0, %v472_v7, 0.0 }
  0x7d   :  { %v41_v9 = vmul.f32 %v39_v8, %v39_v8 }
  0x7f   :  { %43 = vadd.xlane.f32.xlu1 %v41_v9  ;;  %v31_v10 = vpop.xlane.xlu0 %30 }
  0x80   :  { %v33_v11 = vmul.f32 0.020833334, %v31_v10 }
  0x82   :  { %v475_v12 = vsub.f32 %v411_v2, %v33_v11  ;;  %v326_v2 = vor.u32 %v393_v60, %v325_v59 }
  0x84   :  { %v40_v13 = vsel %vm38_vm0, %v475_v12, 0.0  ;;  %206 = vmatpush.bf16.msra.mxu0 %v326_v2 }
  0x85   :  { %v42_v14 = vmul.f32 %v40_v13, %v40_v13 }
  0x87   :  { %45 = vadd.xlane.f32.xlu1 %v42_v14 }
  0xf2   :  { %v44_v44 = vpop.xlane.xlu1 %43 }
  0xf3   :  { %v47_v46 = vmul.f32 0.020833334, %v44_v44 }
  0xf5   :  { %v49_v50 = vadd.f32 1e-05, %v47_v46 }
  0xf7   :  { %419 = vrsqrt.f32 %v49_v50  ;;  %vm57_vm2 = vweird.f32 %v49_v50 }
  0xfa   :  { %v46_v61 = vpop.xlane.xlu1 %45 }
  0xfb   :  { %v48_v1 = vmul.f32 0.020833334, %v46_v61 }
  0xfd   :  { %v420_v4 = vpop.eup %419  ;;  %v50_v5 = vadd.f32 1e-05, %v48_v1 }
  0xfe   :  { %v52_v6 = vmul.f32 %v420_v4, %v49_v50  ;;  %vm58_vm1 = vweird.f32 %v420_v4 }
  0xff   :  { %421 = vrsqrt.f32 %v50_v5  ;;  %vm59_vm3 = vmor %vm57_vm2, %vm58_vm1  ;;  %vm67_vm5 = vweird.f32 %v50_v5 }
 0x100   :  { %v53_v8 = vmul.f32 %v420_v4, %v52_v6 }
 0x102   :  { %v54_v9 = vmul.f32 0.5, %v53_v8 }
 0x104   :  { %v55_v10 = vsub.f32 1.5, %v54_v9 }
 0x105   :  { %v422_v11 = vpop.eup %421 }
 0x106   :  { %v56_v13 = vmul.f32 %v420_v4, %v55_v10  ;;  %v62_v14 = vmul.f32 %v422_v11, %v50_v5  ;;  %vm68_vm4 = vweird.f32 %v422_v11 }
 0x107   :  { %vm69_vm6 = vmor %vm67_vm5, %vm68_vm4 }
 0x108   :  { %v63_v15 = vmul.f32 %v422_v11, %v62_v14  ;;  %v60_v16 = vsel %vm59_vm3, %v420_v4, %v56_v13 }
 0x109   :  { %v71_v20 = vmul.f32 %v60_v16, %v472_v7  ;;  %v107_v7 = vld [vmem:[%s603_s4] sm:$0x3] }
 0x10a   :  { %v64_v17 = vmul.f32 0.5, %v63_v15  ;;  %v109_v31 = vperm.slane %v107_v7, 0  ;;  %v110_v32 = vperm.slane %v107_v7, 1 }
 0x10b   :  { %v77_v24 = vmul.f32 %v417_v19, %v71_v20 }
 0x10c   :  { %v65_v18 = vsub.f32 1.5, %v64_v17 }
 0x10d   :  { %v83_v27 = vadd.f32 %v418_v23, %v77_v24 }
 0x10e   :  { %v66_v21 = vmul.f32 %v422_v11, %v65_v18 }
 0x110   :  { %v70_v22 = vsel %vm69_vm6, %v422_v11, %v66_v21 }
 0x111   :  { %v72_v25 = vmul.f32 %v70_v22, %v475_v12 }
 0x113   :  { %v78_v26 = vmul.f32 %v417_v19, %v72_v25 }
 0x115   :  { %v84_v28 = vadd.f32 %v418_v23, %v78_v26 }
 0x117   :  { %v415_v29 = vpack.c.bf16 %v84_v28, %v83_v27 }
 0x119   :  { %416 = vst [vmem:[#allocation2] sm:$0xff] %v415_v29  }
 0x120   :  { %v391_v30 = vld [vmem:[#allocation2] sm:$0xff] }
 0x121   :  { %207 = vmatmul.bf16.vlgmr.msra.gmra.mxu0 %v391_v30  ;;  %221 = vmatmul.bf16.vlgmr.msra.gmra.mxu1 %v391_v30 }
 0x19e   :  { %v208_v33 = vpop.f32.mrf.mxu0  ;;  %v222_v34 = vpop.f32.mrf.mxu1 }
 0x19f   :  { %v209_v35 = vadd.f32 %v208_v33, %v109_v31  ;;  %v223_v36 = vadd.f32 %v222_v34, %v110_v32 }
 0x1a1   :  { %v387_v37 = vmul.f32 -1.702, %v209_v35  ;;  %v388_v12 = vmul.f32 -1.702, %v223_v36 }
 0x1a3   :  { %v235_v38 = vmul.f32 1.442695, %v387_v37  ;;  %v237_v39 = vmul.f32 1.442695, %v388_v12 }
 0x1a5   :  { %423 = vpow2.f32 %v235_v38 }
 0x1a6   :  { %425 = vpow2.f32 %v237_v39  ;;  %v210_v40 = vpop.f32.mrf.mxu0  ;;  %v224_v41 = vpop.f32.mrf.mxu1 }
 0x1a7   :  { %v585_v42 = vadd.f32 %v210_v40, %v109_v31  ;;  %v587_v43 = vadd.f32 %v224_v41, %v110_v32 }
 0x1a9   :  { %v389_v44 = vmul.f32 -1.702, %v585_v42  ;;  %v390_v45 = vmul.f32 -1.702, %v587_v43 }
 0x1ab   :  { %v424_v46 = vpop.eup %423  ;;  %v239_v47 = vmul.f32 1.442695, %v389_v44  ;;  %v241_v50 = vmul.f32 1.442695, %v390_v45 }
 0x1ac   :  { %v426_v48 = vpop.eup %425  ;;  %v243_v49 = vadd.f32 1.0, %v424_v46 }
 0x1ad   :  { %v244_v51 = vadd.f32 1.0, %v426_v48  ;;  %427 = vpow2.f32 %v239_v47 }
 0x1ae   :  { %429 = vrcp.f32 %v243_v49  ;;  %v256_v61 = vand.u32 2147483647, %v243_v49  ;;  %v258_v62 = vand.u32 2147483648, %v243_v49  ;;  %vm252_vm9 = vweird.f32 %v243_v49 }
 0x1af   :  { %431 = vrcp.f32 %v244_v51  ;;  %v273_v1 = vand.u32 2147483648, %v244_v51  ;;  %v271_v3 = vand.u32 2147483647, %v244_v51  ;;  %vm267_vm11 = vweird.f32 %v244_v51 }
 0x1b0   :  { %433 = vpow2.f32 %v241_v50  ;;  %v259_v6 = vor.u32 1.1754944e-38, %v258_v62  ;;  %vm257_vm12 = vcmp.eq.f32.partialorder %v256_v61, 8.507059e+37 }
 0x1b1   :  { %v274_v10 = vor.u32 1.1754944e-38, %v273_v1  ;;  %vm272_vm14 = vcmp.eq.f32.partialorder %v271_v3, 8.507059e+37 }
 0x1b3   :  { %v428_v52 = vpop.eup %427 }
 0x1b4   :  { %v430_v53 = vpop.eup %429  ;;  %v245_v54 = vadd.f32 1.0, %v428_v52 }
 0x1b5   :  { %v432_v55 = vpop.eup %431  ;;  %v248_v56 = vmul.f32 %v430_v53, %v243_v49  ;;  %vm253_vm7 = vweird.f32 %v430_v53 }
 0x1b6   :  { %v434_v57 = vpop.eup %433  ;;  %v263_v58 = vmul.f32 %v432_v55, %v244_v51  ;;  %435 = vrcp.f32 %v245_v54  ;;  %vm268_vm8 = vweird.f32 %v432_v55  ;;  %vm254_vm10 = vmor %vm252_vm9, %vm253_vm7  ;;  %v288_v20 = vand.u32 2147483648, %v245_v54 }
 0x1b7   :  { %v249_v59 = vsub.f32 1.0, %v248_v56  ;;  %v246_v60 = vadd.f32 1.0, %v434_v57  ;;  %vm269_vm13 = vmor %vm267_vm11, %vm268_vm8  ;;  %v286_v23 = vand.u32 2147483647, %v245_v54  ;;  %vm282_vm0 = vweird.f32 %v245_v54 }
 0x1b8   :  { %v264_v63 = vsub.f32 1.0, %v263_v58  ;;  %v289_v28 = vor.u32 1.1754944e-38, %v288_v20 }
 0x1b9   :  { %v250_v0 = vmul.f32 %v430_v53, %v249_v59  ;;  %437 = vrcp.f32 %v246_v60  ;;  %v303_v27 = vand.u32 2147483648, %v246_v60  ;;  %v301_v30 = vand.u32 2147483647, %v246_v60 }
 0x1ba   :  { %v265_v2 = vmul.f32 %v432_v55, %v264_v63  ;;  %vm287_vm3 = vcmp.eq.f32.partialorder %v286_v23, 8.507059e+37  ;;  %vm297_vm4 = vweird.f32 %v246_v60 }
 0x1bb   :  { %v251_v4 = vadd.f32 %v430_v53, %v250_v0  ;;  %v304_v33 = vor.u32 1.1754944e-38, %v303_v27  ;;  %vm302_vm6 = vcmp.eq.f32.partialorder %v301_v30, 8.507059e+37 }
 0x1bc   :  { %v436_v5 = vpop.eup %435  ;;  %v266_v8 = vadd.f32 %v432_v55, %v265_v2 }
 0x1bd   :  { %v255_v9 = vsel %vm254_vm10, %v430_v53, %v251_v4  ;;  %v278_v11 = vmul.f32 %v436_v5, %v245_v54  ;;  %vm283_vm15 = vweird.f32 %v436_v5 }
 0x1be   :  { %v260_v13 = vsel %vm257_vm12, %v259_v6, %v255_v9  ;;  %v270_v14 = vsel %vm269_vm13, %v432_v55, %v266_v8  ;;  %vm284_vm1 = vmor %vm282_vm0, %vm283_vm15 }
 0x1bf   :  { %v438_v15 = vpop.eup %437  ;;  %v307_v16 = vmul.f32 %v260_v13, %v209_v35  ;;  %v275_v17 = vsel %vm272_vm14, %v274_v10, %v270_v14  ;;  %v279_v18 = vsub.f32 1.0, %v278_v11 }
 0x1c0   :  { %v308_v19 = vmul.f32 %v275_v17, %v223_v36  ;;  %v293_v21 = vmul.f32 %v438_v15, %v246_v60  ;;  %vm298_vm2 = vweird.f32 %v438_v15 }
 0x1c1   :  { %v280_v22 = vmul.f32 %v436_v5, %v279_v18  ;;  %vm299_vm5 = vmor %vm297_vm4, %vm298_vm2 }
 0x1c2   :  { %v311_v24 = vpack.c.bf16 %v308_v19, %v307_v16  ;;  %v294_v25 = vsub.f32 1.0, %v293_v21 }
 0x1c3   :  { %v281_v26 = vadd.f32 %v436_v5, %v280_v22 }
 0x1c4   :  { %313 = vst [vmem:[%s604_s5] sm:$0xff] %v311_v24  ;;  %v295_v29 = vmul.f32 %v438_v15, %v294_v25 }
 0x1c5   :  { %v285_v7 = vsel %vm284_vm1, %v436_v5, %v281_v26 }
 0x1c6   :  { %v290_v31 = vsel %vm287_vm3, %v289_v28, %v285_v7  ;;  %v296_v32 = vadd.f32 %v438_v15, %v295_v29 }
 0x1c7   :  { %v309_v34 = vmul.f32 %v290_v31, %v585_v42 }
 0x1c8   :  { %v300_v35 = vsel %vm299_vm5, %v438_v15, %v296_v32 }
 0x1c9   :  { %v305_v36 = vsel %vm302_vm6, %v304_v33, %v300_v35 }
 0x1ca   :  { %v310_v37 = vmul.f32 %v305_v36, %v587_v43 }
 0x1cc   :  { %v312_v12 = vpack.c.bf16 %v310_v37, %v309_v34 }
 0x1ce   :  { %314 = vst [vmem:[%s604_s5 + $0x8] sm:$0xff] %v312_v12 }

// kernel: vlt_forward.28
= control target key start
LH: loop header
LB: loop body
LE: loop exit
PB: predicated region body
PF: predicated region fallthrough
CT: control target
= control target key end

     0   :  { %s416_s1 = inlined_call_operand.vmem [shape: bf16[256,128], index: 1, kind: input, shape index: {}]   ;;  %s417_s0 = inlined_call_operand.vmem [shape: bf16[16,256], index: 0, kind: input, shape index: {}]   ;;  %s418_s2 = inlined_call_operand.vmem [shape: f32[1,128], index: 2, kind: input, shape index: {}]   ;;  %s419_s3 = inlined_call_operand.vmem [shape: bf16[16,128], index: 3, kind: input, shape index: {}]   ;;  %s420_s4 = inlined_call_operand.vmem [shape: bf16[16,128], index: 4, kind: output, shape index: {}]  }
   0x1   :  { %v303_v0 = vld [vmem:[%s416_s1 + $0x38] sm:$0xff]  ;;  %v302_v2 = vld [vmem:[%s416_s1 + $0x30] sm:$0xff]  ;;  %v301_v4 = vld [vmem:[%s416_s1 + $0x28] sm:$0xff] }
   0x2   :  { %v311_v1 = vld [vmem:[%s416_s1 + $0x78] sm:$0xff]  ;;  %165 = vmatpush.bf16.msra.mxu0 %v303_v0  ;;  %v310_v3 = vld [vmem:[%s416_s1 + $0x70] sm:$0xff]  ;;  %v309_v5 = vld [vmem:[%s416_s1 + $0x68] sm:$0xff] }
   0x3   :  { %179 = vmatpush.bf16.msra.mxu1 %v311_v1  ;;  %v300_v6 = vld [vmem:[%s416_s1 + $0x20] sm:$0xff]  ;;  %v299_v8 = vld [vmem:[%s416_s1 + $0x18] sm:$0xff]  ;;  %v298_v10 = vld [vmem:[%s416_s1 + $0x10] sm:$0xff] }
   0x4   :  { %v308_v7 = vld [vmem:[%s416_s1 + $0x60] sm:$0xff]  ;;  %v307_v9 = vld [vmem:[%s416_s1 + $0x58] sm:$0xff]  ;;  %v306_v11 = vld [vmem:[%s416_s1 + $0x50] sm:$0xff] }
   0x5   :  { %v297_v12 = vld [vmem:[%s416_s1 + $0x8] sm:$0xff]  ;;  %v296_v14 = vld [vmem:[%s416_s1] sm:$0xff] }
   0x6   :  { %166 = vmatpush.bf16.msra.mxu0 %v302_v2  ;;  %v305_v13 = vld [vmem:[%s416_s1 + $0x48] sm:$0xff]  ;;  %v304_v15 = vld [vmem:[%s416_s1 + $0x40] sm:$0xff] }
   0x7   :  { %180 = vmatpush.bf16.msra.mxu1 %v310_v3  ;;  %v224_v16 = vld [vmem:[%s417_s0] sm:$0xf]  ;;  %v295_v17 = vld [vmem:[%s417_s0 + $0x4] sm:$0xf0]  ;;  %v294_v18 = vld [vmem:[%s417_s0 + $0x4] sm:$0xf] }
   0x8   :  { %v226_v19 = vld [vmem:[%s417_s0 + $0x8] sm:$0xf0]  ;;  %v225_v20 = vor.u32 %v295_v17, %v224_v16  ;;  %v321_v25 = vld [vmem:[%s418_s2] ss:$0 sm:$0xff] }
   0x9   :  { %v229_v21 = vor.u32 %v294_v18, %v226_v19  ;;  %v313_v26 = vld [vmem:[%s419_s3] sm:$0xff]  }
   0xa   :  { %167 = vmatpush.bf16.msra.mxu0 %v301_v4  ;;  %v314_v30 = vunpack.c.l.bf16 %v313_v26  ;;  %v315_v32 = vunpack.c.h.bf16 %v313_v26 }
   0xb   :  { %181 = vmatpush.bf16.msra.mxu1 %v309_v5 }
   0xe   :  { %168 = vmatpush.bf16.msra.mxu0 %v300_v6 }
   0xf   :  { %182 = vmatpush.bf16.msra.mxu1 %v308_v7 }
  0x12   :  { %169 = vmatpush.bf16.msra.mxu0 %v299_v8 }
  0x13   :  { %183 = vmatpush.bf16.msra.mxu1 %v307_v9 }
  0x16   :  { %170 = vmatpush.bf16.msra.mxu0 %v298_v10 }
  0x17   :  { %184 = vmatpush.bf16.msra.mxu1 %v306_v11 }
  0x1a   :  { %171 = vmatpush.bf16.msra.mxu0 %v297_v12 }
  0x1b   :  { %185 = vmatpush.bf16.msra.mxu1 %v305_v13 }
  0x1e   :  { %172 = vmatpush.bf16.msra.mxu0 %v296_v14 }
  0x1f   :  { %186 = vmatpush.bf16.msra.mxu1 %v304_v15 }
  0x21   :  { %173 = vmatmul.bf16.vlgmr.msra.gmra.mxu0 %v225_v20 }
  0x22   :  { %187 = vmatmul.bf16.vlgmr.msra.gmra.mxu1 %v229_v21 }
  0x9e   :  { %v174_v22 = vpop.f32.mrf.mxu0 }
  0x9f   :  { %v188_v23 = vpop.f32.mrf.mxu1 }
  0xa0   :  { %v189_v24 = vadd.f32 %v188_v23, %v174_v22 }
  0xa2   :  { %v206_v29 = vadd.f32 %v321_v25, %v189_v24 }
  0xa4   :  { %v212_v34 = vadd.f32 %v314_v30, %v206_v29 }
  0xa6   :  { %v176_v27 = vpop.f32.mrf.mxu0 }
  0xa7   :  { %v190_v28 = vpop.f32.mrf.mxu1 }
  0xa8   :  { %v191_v31 = vadd.f32 %v190_v28, %v176_v27 }
  0xaa   :  { %v207_v33 = vadd.f32 %v321_v25, %v191_v31 }
  0xac   :  { %v213_v35 = vadd.f32 %v315_v32, %v207_v33 }
  0xae   :  { %v319_v36 = vpack.c.bf16 %v213_v35, %v212_v34 }
  0xb0   :  { %320 = vst [vmem:[%s420_s4] sm:$0xff] %v319_v36  }

// kernel: vlt_forward.36
= control target key start
LH: loop header
LB: loop body
LE: loop exit
PB: predicated region body
PF: predicated region fallthrough
CT: control target
= control target key end

     0   :  { %s235_s1 = inlined_call_operand.vmem [shape: bf16[128,128], index: 1, kind: input, shape index: {}]   ;;  %s236_s2 = inlined_call_operand.vmem [shape: f32[1,128], index: 2, kind: input, shape index: {}]   ;;  %s237_s0 = inlined_call_operand.vmem [shape: bf16[16,128], index: 0, kind: input, shape index: {}]   ;;  %s238_s3 = inlined_call_operand.vmem [shape: bf16[16,128], index: 3, kind: output, shape index: {}]  }
   0x1   :  { %v175_v0 = vld [vmem:[%s235_s1 + $0x38] sm:$0xff]  ;;  %v174_v1 = vld [vmem:[%s235_s1 + $0x30] sm:$0xff]  ;;  %v173_v2 = vld [vmem:[%s235_s1 + $0x28] sm:$0xff] }
   0x2   :  { %94 = vmatpush.bf16.msra.mxu0 %v175_v0  ;;  %v172_v3 = vld [vmem:[%s235_s1 + $0x20] sm:$0xff]  ;;  %v171_v4 = vld [vmem:[%s235_s1 + $0x18] sm:$0xff]  ;;  %v170_v5 = vld [vmem:[%s235_s1 + $0x10] sm:$0xff] }
   0x3   :  { %v169_v6 = vld [vmem:[%s235_s1 + $0x8] sm:$0xff]  ;;  %v168_v7 = vld [vmem:[%s235_s1] sm:$0xff] }
   0x4   :  { %v167_v8 = vld [vmem:[%s237_s0] sm:$0xff] }
   0x5   :  { %v181_v10 = vld [vmem:[%s236_s2] ss:$0 sm:$0xff] }
   0x6   :  { %95 = vmatpush.bf16.msra.mxu0 %v174_v1 }
   0xa   :  { %96 = vmatpush.bf16.msra.mxu0 %v173_v2 }
   0xe   :  { %97 = vmatpush.bf16.msra.mxu0 %v172_v3 }
  0x12   :  { %98 = vmatpush.bf16.msra.mxu0 %v171_v4 }
  0x16   :  { %99 = vmatpush.bf16.msra.mxu0 %v170_v5 }
  0x1a   :  { %100 = vmatpush.bf16.msra.mxu0 %v169_v6 }
  0x1e   :  { %101 = vmatpush.bf16.msra.mxu0 %v168_v7 }
  0x21   :  { %102 = vmatmul.bf16.vlgmr.msra.gmra.mxu0 %v167_v8 }
  0x9e   :  { %v103_v9 = vpop.f32.mrf.mxu0 }
  0x9f   :  { %v121_v12 = vadd.f32 %v181_v10, %v103_v9 }
  0xa6   :  { %v105_v11 = vpop.f32.mrf.mxu0 }
  0xa7   :  { %v122_v13 = vadd.f32 %v181_v10, %v105_v11 }
  0xa9   :  { %v179_v14 = vpack.c.bf16 %v122_v13, %v121_v12 }
  0xab   :  { %180 = vst [vmem:[%s238_s3] sm:$0xff] %v179_v14  }

// kernel: vlt_forward.37
= control target key start
LH: loop header
LB: loop body
LE: loop exit
PB: predicated region body
PF: predicated region fallthrough
CT: control target
= control target key end

     0   :  { %s988_s18 = smov 0   ;;  %s990_s19 = smov 0   ;;  %s1142_s0 = inlined_call_operand.vmem [shape: bf16[32,128], index: 0, kind: input, shape index: {}]   ;;  %s1143_s1 = inlined_call_operand.vmem [shape: f32[1,128], index: 1, kind: input, shape index: {}]   ;;  %s1144_s2 = inlined_call_operand.vmem [shape: f32[1,128], index: 2, kind: input, shape index: {}]   ;;  %s1145_s3 = inlined_call_operand.vmem [shape: bf16[128,384], index: 3, kind: input, shape index: {}]   ;;  %s1146_s4 = inlined_call_operand.vmem [shape: f32[1,384], index: 4, kind: input, shape index: {}]   ;;  %s1147_s5 = inlined_call_operand.vmem [shape: bf16[32,384], index: 5, kind: output, shape index: {}]  }
   0x1   :  { %s992_s20 = smov 0   ;;  %s994_s21 = smov 0  }
   0x2   :  { %s996_s22 = smov 0  }
   0x3 LB: > { %s24_s23 = sadd.s32 1, %s952_s21  ;;  %s763_s24 = sadd.s32 4294967295, %s956_s22   ;;  %s956_s22 = sphi %s996_s22, %s15_s22   ;;  %s952_s21 = sphi %s994_s21, %s1152_s21   ;;  %s948_s20 = sphi %s992_s20, %s1151_s20   ;;  %s944_s19 = sphi %s990_s19, %s1150_s19   ;;  %s940_s18 = sphi %s988_s18, %s1149_s18  }
   0x4   : > { %p25_p0 = scmp.ge.s32.totalorder %s24_s23, 3  ;;  %p109_p1 = scmp.ne.s32.totalorder %s944_s19, %s940_s18 }
   0x5   : > { %p110_p2 = scmp.eq.s32.totalorder %s956_s22, 0  ;;  %p167_p4 = scmp.eq.s32.totalorder %s763_s24, 2 }
   0x6   : > { %s1154_s23 = smov (%p25_p0, %s24_s23), 0  ;;  %s102_s26 = sadd.s32 1, %s944_s19 }
   0x7   : > { %p111_p3 = por %p110_p2, %p109_p1  ;;  %s99_s25 = ssub.s32 %s952_s21, %s1154_s23 }
   0x8   : > { %p100_p5 = scmp.eq.s32.totalorder %s99_s25, 0  ;;  %p1023_p6 = por %p167_p4, %p109_p1 }
   0x9   : > { %p767_p7 = scmp.ge.s32.totalorder %s956_s22, 3 }
   0xa   : > { %s1028_s28 = scalar_select %p100_p5, %s944_s19, %s102_s26  }
   0xb   : > { %204 = sbr.rel (%p767_p7) target bundleno = 36 (0x24), region = 28 }
  0x10   : > { %207 = sbr.rel (!%p111_p3) target bundleno = 36 (0x24), region = 32  ;;  %s209_s29 = sand.u32 (%p111_p3), 1, %s944_s19  }
  0x11   : > { %s769_s30 = sshll.u32 (%p111_p3), %s952_s21, 2  ;;  %s768_s6 = sshll.u32 (%p111_p3), %s209_s29, 6 }
  0x12   : > { %s1036_s9 = scalar_lea.vmem (%p111_p3), %s1145_s3, %s769_s30  ;;  %s211_s10 = scalar_lea.vmem (%p111_p3), [#allocation3], %s768_s6 }
  0x13   : > { %v230_v0 = vld [vmem:[%s1036_s9] sm:$0xf] (%p111_p3)  ;;  %v232_v1 = vld [vmem:[%s1036_s9 + $0xc] sm:$0xf] (%p111_p3)  ;;  %v234_v2 = vld [vmem:[%s1036_s9 + $0x18] sm:$0xf] (%p111_p3) }
  0x14   : > { %231 = vst [vmem:[%s211_s10] sm:$0xf] (%p111_p3), %v230_v0  ;;  %v236_v3 = vld [vmem:[%s1036_s9 + $0x24] sm:$0xf] (%p111_p3)  ;;  %v238_v4 = vld [vmem:[%s1036_s9 + $0x30] sm:$0xf] (%p111_p3) }
  0x15   : > { %233 = vst [vmem:[%s211_s10 + $0x4] sm:$0xf] %v232_v1  ;;  %v240_v5 = vld [vmem:[%s1036_s9 + $0x3c] sm:$0xf]  ;;  %v242_v6 = vld [vmem:[%s1036_s9 + $0x48] sm:$0xf] }
  0x16   : > { %235 = vst [vmem:[%s211_s10 + $0x8] sm:$0xf] %v234_v2  ;;  %v244_v7 = vld [vmem:[%s1036_s9 + $0x54] sm:$0xf]  ;;  %v246_v8 = vld [vmem:[%s1036_s9 + $0x60] sm:$0xf] }
  0x17   : > { %237 = vst [vmem:[%s211_s10 + $0xc] sm:$0xf] %v236_v3  ;;  %v248_v9 = vld [vmem:[%s1036_s9 + $0x6c] sm:$0xf]  ;;  %v250_v10 = vld [vmem:[%s1036_s9 + $0x78] sm:$0xf] }
  0x18   : > { %239 = vst [vmem:[%s211_s10 + $0x10] sm:$0xf] %v238_v4  ;;  %v252_v11 = vld [vmem:[%s1036_s9 + $0x84] sm:$0xf]  ;;  %v254_v12 = vld [vmem:[%s1036_s9 + $0x90] sm:$0xf] }
  0x19   : > { %241 = vst [vmem:[%s211_s10 + $0x14] sm:$0xf] %v240_v5  ;;  %v256_v13 = vld [vmem:[%s1036_s9 + $0x9c] sm:$0xf]  ;;  %v258_v14 = vld [vmem:[%s1036_s9 + $0xa8] sm:$0xf] }
  0x1a   : > { %243 = vst [vmem:[%s211_s10 + $0x18] sm:$0xf] %v242_v6  ;;  %v260_v15 = vld [vmem:[%s1036_s9 + $0xb4] sm:$0xf] }
  0x1b   : > { %245 = vst [vmem:[%s211_s10 + $0x1c] sm:$0xf] %v244_v7 }
  0x1c   : > { %247 = vst [vmem:[%s211_s10 + $0x20] sm:$0xf] %v246_v8 }
  0x1d   : > { %249 = vst [vmem:[%s211_s10 + $0x24] sm:$0xf] %v248_v9 }
  0x1e   : > { %251 = vst [vmem:[%s211_s10 + $0x28] sm:$0xf] %v250_v10 }
  0x1f   : > { %253 = vst [vmem:[%s211_s10 + $0x2c] sm:$0xf] %v252_v11 }
  0x20   : > { %255 = vst [vmem:[%s211_s10 + $0x30] sm:$0xf] %v254_v12 }
  0x21   : > { %257 = vst [vmem:[%s211_s10 + $0x34] sm:$0xf] %v256_v13 }
  0x22   : > { %259 = vst [vmem:[%s211_s10 + $0x38] sm:$0xf] %v258_v14 }
  0x23   : > { %261 = vst [vmem:[%s211_s10 + $0x3c] sm:$0xf] %v260_v15 }
  0x24 PF: > { %p770_p8 = scmp.ge.s32.totalorder %s956_s22, 1  ;;  %p322_p9 = scmp.lt.s32.totalorder %s956_s22, 4 }
  0x26   : > { %p323_p10 = pnand %p770_p8, %p322_p9 }
  0x27   : > { %s329_s11 = sand.u32 (!%p323_p10), 1, %s940_s18   ;;  %p369_p11 = scmp.lt.s32.totalorder (!%p323_p10), %s948_s20, 2 }
  0x28   : > { %326 = sbr.rel (%p323_p10) target bundleno = 515 (0x203), region = 77  ;;  %s771_s12 = sshll.u32 (!%p323_p10), %s329_s11, 6 }
  0x29   : > { %s772_s13 = sshll.u32 (!%p323_p10), %s329_s11, 4  ;;  %s1065_s24 = scalar_lea.vmem (!%p323_p10), [#allocation3], %s771_s12 }
  0x2a   : > { %s1067_s25 = scalar_lea.vmem (!%p323_p10), [#allocation4], %s772_s13  ;;  %p773_p12 = scmp.ne.s32.totalorder (!%p323_p10), %s948_s20, 0 }
  0x2d   : > { %s1059_s14 = scalar_select %p369_p11, %s948_s20, 2 }
  0x2e   : > { %376 = sbr.rel (%p773_p12) target bundleno = 333 (0x14d), region = 85 }
  0x2f   : > { %s371_s17 = scalar_lea.vmem %s1146_s4, %s1059_s14 }
  0x33   : > { %v856_v16 = vld [vmem:[%s1142_s0 + $0x8] sm:$0xff]   ;;  %v829_v17 = vld [vmem:[%s1142_s0] sm:$0xff]   ;;  %v401_v22 = vlaneseq }
  0x34   : > { %v834_v18 = vunpack.c.l.bf16 %v856_v16  ;;  %v830_v19 = vunpack.c.l.bf16 %v829_v17  ;;  %v835_v20 = vunpack.c.h.bf16 %v856_v16  ;;  %v831_v21 = vunpack.c.h.bf16 %v829_v17  ;;  %v907_v15 = vld [vmem:[%s1143_s1] ss:$0 sm:$0xff] }
  0x35   : > { %v402_v23 = vand.u32 127, %v401_v22  ;;  %v908_v22 = vld [vmem:[%s1144_s2] ss:$0 sm:$0xff] }
  0x36   : > { %389 = vadd.xlane.f32.xlu1 %v834_v18  ;;  %385 = vadd.xlane.f32.xlu0 %v830_v19 }
  0x37   : > { %vm403_vm0 = vcmp.lt.s32.totalorder %v402_v23, 32 }
  0x3e   : > { %391 = vadd.xlane.f32.xlu1 %v835_v20  ;;  %387 = vadd.xlane.f32.xlu0 %v831_v21 }
  0xa9   : > { %v390_v24 = vpop.xlane.xlu1 %389  ;;  %v386_v25 = vpop.xlane.xlu0 %385 }
  0xaa   : > { %v395_v26 = vmul.f32 0.03125, %v390_v24  ;;  %v393_v27 = vmul.f32 0.03125, %v386_v25 }
  0xac   : > { %v1076_v28 = vsub.f32 %v834_v18, %v395_v26  ;;  %v1078_v29 = vsub.f32 %v830_v19, %v393_v27 }
  0xae   : > { %v406_v30 = vsel %vm403_vm0, %v1076_v28, 0.0  ;;  %v404_v31 = vsel %vm403_vm0, %v1078_v29, 0.0 }
  0xaf   : > { %v410_v32 = vmul.f32 %v406_v30, %v406_v30  ;;  %v408_v33 = vmul.f32 %v404_v31, %v404_v31 }
  0xb1   : > { %v392_v34 = vpop.xlane.xlu1 %391  ;;  %416 = vadd.xlane.f32.xlu0 %v410_v32  ;;  %412 = vadd.xlane.f32.xlu2 %v408_v33  ;;  %v388_v35 = vpop.xlane.xlu0 %387 }
  0xb2   : > { %v396_v36 = vmul.f32 0.03125, %v392_v34  ;;  %v394_v37 = vmul.f32 0.03125, %v388_v35 }
  0xb4   : > { %v1084_v38 = vsub.f32 %v835_v20, %v396_v36  ;;  %v1086_v39 = vsub.f32 %v831_v21, %v394_v37 }
  0xb6   : > { %v407_v40 = vsel %vm403_vm0, %v1084_v38, 0.0  ;;  %v405_v41 = vsel %vm403_vm0, %v1086_v39, 0.0 }
  0xb7   : > { %v411_v42 = vmul.f32 %v407_v40, %v407_v40  ;;  %v409_v43 = vmul.f32 %v405_v41, %v405_v41 }
  0xb9   : > { %418 = vadd.xlane.f32.xlu1 %v411_v42  ;;  %414 = vadd.xlane.f32.xlu2 %v409_v43 }
 0x124   : > { %v413_v44 = vpop.xlane.xlu2 %412  ;;  %v417_v45 = vpop.xlane.xlu0 %416 }
 0x125   : > { %v420_v46 = vmul.f32 0.03125, %v413_v44  ;;  %v422_v47 = vmul.f32 0.03125, %v417_v45 }
 0x127   : > { %v424_v48 = vadd.f32 1e-05, %v420_v46  ;;  %v426_v49 = vadd.f32 1e-05, %v422_v47 }
 0x129   : > { %909 = vrsqrt.f32 %v424_v48  ;;  %vm454_vm3 = vweird.f32 %v426_v49  ;;  %vm434_vm4 = vweird.f32 %v424_v48 }
 0x12a   : > { %911 = vrsqrt.f32 %v426_v49 }
 0x12c   : > { %v419_v50 = vpop.xlane.xlu1 %418  ;;  %v415_v51 = vpop.xlane.xlu2 %414 }
 0x12d   : > { %v423_v52 = vmul.f32 0.03125, %v419_v50  ;;  %v421_v53 = vmul.f32 0.03125, %v415_v51 }
 0x12f   : > { %v910_v54 = vpop.eup %909  ;;  %v427_v55 = vadd.f32 1e-05, %v423_v52  ;;  %v425_v56 = vadd.f32 1e-05, %v421_v53 }
 0x130   : > { %v912_v57 = vpop.eup %911  ;;  %v429_v58 = vmul.f32 %v910_v54, %v424_v48  ;;  %vm435_vm2 = vweird.f32 %v910_v54 }
 0x131   : > { %v449_v59 = vmul.f32 %v912_v57, %v426_v49  ;;  %913 = vrsqrt.f32 %v427_v55  ;;  %vm455_vm1 = vweird.f32 %v912_v57  ;;  %vm436_vm6 = vmor %vm434_vm4, %vm435_vm2  ;;  %vm464_vm9 = vweird.f32 %v427_v55 }
 0x132   : > { %v430_v60 = vmul.f32 %v910_v54, %v429_v58  ;;  %915 = vrsqrt.f32 %v425_v56  ;;  %vm456_vm5 = vmor %vm454_vm3, %vm455_vm1  ;;  %vm444_vm11 = vweird.f32 %v425_v56 }
 0x133   : > { %v450_v61 = vmul.f32 %v912_v57, %v449_v59 }
 0x134   : > { %v431_v62 = vmul.f32 0.5, %v430_v60 }
 0x135   : > { %v451_v63 = vmul.f32 0.5, %v450_v61 }
 0x136   : > { %v432_v0 = vsub.f32 1.5, %v431_v62 }
 0x137   : > { %v914_v1 = vpop.eup %913  ;;  %v452_v2 = vsub.f32 1.5, %v451_v63 }
 0x138   : > { %v916_v3 = vpop.eup %915  ;;  %v459_v4 = vmul.f32 %v914_v1, %v427_v55  ;;  %v433_v5 = vmul.f32 %v910_v54, %v432_v0  ;;  %vm465_vm7 = vweird.f32 %v914_v1 }
 0x139   : > { %v453_v6 = vmul.f32 %v912_v57, %v452_v2  ;;  %v439_v7 = vmul.f32 %v916_v3, %v425_v56  ;;  %vm445_vm8 = vweird.f32 %v916_v3  ;;  %vm466_vm10 = vmor %vm464_vm9, %vm465_vm7 }
 0x13a   : > { %v460_v8 = vmul.f32 %v914_v1, %v459_v4  ;;  %v437_v12 = vsel %vm436_vm6, %v910_v54, %v433_v5  ;;  %vm446_vm12 = vmor %vm444_vm11, %vm445_vm8 }
 0x13b   : > { %v440_v9 = vmul.f32 %v916_v3, %v439_v7  ;;  %v457_v10 = vsel %vm456_vm5, %v912_v57, %v453_v6  ;;  %v468_v18 = vmul.f32 %v437_v12, %v1078_v29 }
 0x13c   : > { %v461_v11 = vmul.f32 0.5, %v460_v8  ;;  %v470_v16 = vmul.f32 %v457_v10, %v1076_v28 }
 0x13d   : > { %v441_v13 = vmul.f32 0.5, %v440_v9  ;;  %v476_v26 = vmul.f32 %v907_v15, %v468_v18 }
 0x13e   : > { %v462_v14 = vsub.f32 1.5, %v461_v11  ;;  %v478_v23 = vmul.f32 %v907_v15, %v470_v16 }
 0x13f   : > { %v442_v17 = vsub.f32 1.5, %v441_v13  ;;  %v484_v32 = vadd.f32 %v908_v22, %v476_v26 }
 0x140   : > { %v463_v19 = vmul.f32 %v914_v1, %v462_v14  ;;  %v486_v30 = vadd.f32 %v908_v22, %v478_v23 }
 0x141   : > { %v443_v20 = vmul.f32 %v916_v3, %v442_v17 }
 0x142   : > { %v467_v21 = vsel %vm466_vm10, %v914_v1, %v463_v19 }
 0x143   : > { %v471_v24 = vmul.f32 %v467_v21, %v1084_v38  ;;  %v447_v25 = vsel %vm446_vm12, %v916_v3, %v443_v20 }
 0x144   : > { %v469_v27 = vmul.f32 %v447_v25, %v1086_v39 }
 0x145   : > { %v479_v28 = vmul.f32 %v907_v15, %v471_v24 }
 0x146   : > { %v477_v29 = vmul.f32 %v907_v15, %v469_v27 }
 0x147   : > { %v487_v31 = vadd.f32 %v908_v22, %v479_v28 }
 0x148   : > { %v485_v33 = vadd.f32 %v908_v22, %v477_v29 }
 0x149   : > { %v844_v34 = vpack.c.bf16 %v487_v31, %v486_v30 }
 0x14a   : > { %v839_v35 = vpack.c.bf16 %v485_v33, %v484_v32 }
 0x14b   : > { %857 = vst [vmem:[#allocation2 + $0x8] sm:$0xff] %v844_v34  }
 0x14c   : > { %840 = vst [vmem:[#allocation2] sm:$0xff] %v839_v35  }
 0x14d PF: > { %v827_v36 = vld [vmem:[%s1065_s24 + $0x38] sm:$0xff]  ;;  %v826_v37 = vld [vmem:[%s1065_s24 + $0x30] sm:$0xff]  ;;  %v825_v38 = vld [vmem:[%s1065_s24 + $0x28] sm:$0xff]  ;;  %s815_s12 = sshll.u32 (%p1023_p6), %s948_s20, 2 }
 0x14e   : > { %580 = vmatpush.bf16.msra.mxu0 %v827_v36  ;;  %859 = vmatpush.bf16.msra.mxu1 %v827_v36  ;;  %v824_v39 = vld [vmem:[%s1065_s24 + $0x20] sm:$0xff]  ;;  %v823_v40 = vld [vmem:[%s1065_s24 + $0x18] sm:$0xff]  ;;  %v822_v41 = vld [vmem:[%s1065_s24 + $0x10] sm:$0xff]  ;;  %s618_s15 = scalar_lea.vmem (%p1023_p6), %s1147_s5, %s815_s12 }
 0x14f   : > { %v821_v42 = vld [vmem:[%s1065_s24 + $0x8] sm:$0xff]  ;;  %v820_v43 = vld [vmem:[%s1065_s24] sm:$0xff]  ;;  %v917_v48 = vld [vmem:[%s371_s17] ss:$0 sm:$0xff] }
 0x152   : > { %581 = vmatpush.bf16.msra.mxu0 %v826_v37  ;;  %860 = vmatpush.bf16.msra.mxu1 %v826_v37  ;;  %v819_v45 = vld [vmem:[#allocation2 + $0x8] sm:$0xff] }
 0x153   : > { %v818_v44 = vld [vmem:[#allocation2] sm:$0xff] }
 0x156   : > { %582 = vmatpush.bf16.msra.mxu0 %v825_v38  ;;  %861 = vmatpush.bf16.msra.mxu1 %v825_v38 }
 0x15a   : > { %583 = vmatpush.bf16.msra.mxu0 %v824_v39  ;;  %862 = vmatpush.bf16.msra.mxu1 %v824_v39 }
 0x15e   : > { %584 = vmatpush.bf16.msra.mxu0 %v823_v40  ;;  %863 = vmatpush.bf16.msra.mxu1 %v823_v40 }
 0x162   : > { %585 = vmatpush.bf16.msra.mxu0 %v822_v41  ;;  %864 = vmatpush.bf16.msra.mxu1 %v822_v41 }
 0x166   : > { %586 = vmatpush.bf16.msra.mxu0 %v821_v42  ;;  %865 = vmatpush.bf16.msra.mxu1 %v821_v42 }
 0x16a   : > { %587 = vmatpush.bf16.msra.mxu0 %v820_v43  ;;  %866 = vmatpush.bf16.msra.mxu1 %v820_v43 }
 0x16d   : > { %588 = vmatmul.bf16.vlgmr.msra.gmra.mxu0 %v818_v44  ;;  %593 = vmatmul.bf16.vlgmr.msra.gmra.mxu1 %v819_v45 }
 0x1ea   : > { %v589_v46 = vpop.f32.mrf.mxu0  ;;  %v594_v47 = vpop.f32.mrf.mxu1 }
 0x1eb   : > { %v590_v51 = vadd.f32 %v917_v48, %v589_v46  ;;  %v595_v52 = vadd.f32 %v917_v48, %v594_v47 }
 0x1f2   : > { %v591_v49 = vpop.f32.mrf.mxu0  ;;  %v596_v50 = vpop.f32.mrf.mxu1 }
 0x1f3   : > { %v592_v53 = vadd.f32 %v917_v48, %v591_v49  ;;  %v597_v54 = vadd.f32 %v917_v48, %v596_v50 }
 0x1f4   : > { %613 = sbr.rel (!%p1023_p6) target bundleno = 515 (0x203), region = 89 }
 0x1f5   : > { %v849_v55 = vpack.c.bf16 %v592_v53, %v590_v51  ;;  %v854_v56 = vpack.c.bf16 %v597_v54, %v595_v52 }
 0x1f7   : > { %850 = vst [vmem:[%s1067_s25] sm:$0xff] %v849_v55  }
 0x1f8   : > { %858 = vst [vmem:[%s1067_s25 + $0x8] sm:$0xff] %v854_v56  }
 0x1fe   : > { %v635_v57 = vld [vmem:[%s1067_s25] sm:$0xf]  ;;  %v637_v58 = vld [vmem:[%s1067_s25 + $0x4] sm:$0xf] }
 0x1ff   : > { %v639_v59 = vld [vmem:[%s1067_s25 + $0x8] sm:$0xf]  ;;  %636 = vst [vmem:[%s618_s15] sm:$0xf] %v635_v57  ;;  %v641_v60 = vld [vmem:[%s1067_s25 + $0xc] sm:$0xf] }
 0x200   : > { %638 = vst [vmem:[%s618_s15 + $0xc] sm:$0xf] %v637_v58 }
 0x201   : > { %640 = vst [vmem:[%s618_s15 + $0x18] sm:$0xf] %v639_v59 }
 0x202   : > { %642 = vst [vmem:[%s618_s15 + $0x24] sm:$0xf] %v641_v60 }
 0x203 PF: > { %s15_s22 = sadd.s32 1, %s956_s22   ;;  %s1149_s18 = smov %s944_s19 }
 0x204   : > { %p12_p13 = scmp.ge.s32.totalorder %s15_s22, 5   ;;  %s1150_s19 = smov %s1028_s28 }
 0x205   : > { %s1151_s20 = smov %s952_s21  ;;  %s1152_s21 = smov %s1154_s23 }
 0x206   :  { %14 = sbr.rel (!%p12_p13) target bundleno = 3 (0x3), region = 167 }

// kernel: vlt_forward.39
= control target key start
LH: loop header
LB: loop body
LE: loop exit
PB: predicated region body
PF: predicated region fallthrough
CT: control target
= control target key end

     0   :  { %s324_s1 = inlined_call_operand.vmem [shape: bf16[128,128], index: 1, kind: input, shape index: {}]   ;;  %s325_s2 = inlined_call_operand.vmem [shape: f32[1,128], index: 2, kind: input, shape index: {}]   ;;  %s326_s0 = inlined_call_operand.vmem [shape: bf16[32,128], index: 0, kind: input, shape index: {}]   ;;  %s327_s3 = inlined_call_operand.vmem [shape: bf16[32,128], index: 3, kind: input, shape index: {}]   ;;  %s328_s4 = inlined_call_operand.vmem [shape: bf16[32,128], index: 4, kind: output, shape index: {}]  }
   0x1   :  { %v224_v0 = vld [vmem:[%s324_s1 + $0x38] sm:$0xff]  ;;  %v223_v1 = vld [vmem:[%s324_s1 + $0x30] sm:$0xff]  ;;  %v222_v2 = vld [vmem:[%s324_s1 + $0x28] sm:$0xff] }
   0x2   :  { %109 = vmatpush.bf16.msra.mxu0 %v224_v0  ;;  %245 = vmatpush.bf16.msra.mxu1 %v224_v0  ;;  %v221_v3 = vld [vmem:[%s324_s1 + $0x20] sm:$0xff]  ;;  %v220_v4 = vld [vmem:[%s324_s1 + $0x18] sm:$0xff]  ;;  %v219_v5 = vld [vmem:[%s324_s1 + $0x10] sm:$0xff] }
   0x3   :  { %v218_v6 = vld [vmem:[%s324_s1 + $0x8] sm:$0xff]  ;;  %v217_v7 = vld [vmem:[%s324_s1] sm:$0xff] }
   0x4   :  { %v215_v8 = vld [vmem:[%s326_s0] sm:$0xff]  ;;  %v216_v9 = vld [vmem:[%s326_s0 + $0x8] sm:$0xff] }
   0x5   :  { %v253_v12 = vld [vmem:[%s325_s2] ss:$0 sm:$0xff]  ;;  %v243_v14 = vld [vmem:[%s327_s3 + $0x8] sm:$0xff]  }
   0x6   :  { %110 = vmatpush.bf16.msra.mxu0 %v223_v1  ;;  %246 = vmatpush.bf16.msra.mxu1 %v223_v1  ;;  %v226_v13 = vld [vmem:[%s327_s3] sm:$0xff]   ;;  %v231_v16 = vunpack.c.l.bf16 %v243_v14  ;;  %v232_v20 = vunpack.c.h.bf16 %v243_v14 }
   0x7   :  { %v227_v15 = vunpack.c.l.bf16 %v226_v13  ;;  %v228_v19 = vunpack.c.h.bf16 %v226_v13 }
   0xa   :  { %111 = vmatpush.bf16.msra.mxu0 %v222_v2  ;;  %247 = vmatpush.bf16.msra.mxu1 %v222_v2 }
   0xe   :  { %112 = vmatpush.bf16.msra.mxu0 %v221_v3  ;;  %248 = vmatpush.bf16.msra.mxu1 %v221_v3 }
  0x12   :  { %113 = vmatpush.bf16.msra.mxu0 %v220_v4  ;;  %249 = vmatpush.bf16.msra.mxu1 %v220_v4 }
  0x16   :  { %114 = vmatpush.bf16.msra.mxu0 %v219_v5  ;;  %250 = vmatpush.bf16.msra.mxu1 %v219_v5 }
  0x1a   :  { %115 = vmatpush.bf16.msra.mxu0 %v218_v6  ;;  %251 = vmatpush.bf16.msra.mxu1 %v218_v6 }
  0x1e   :  { %116 = vmatpush.bf16.msra.mxu0 %v217_v7  ;;  %252 = vmatpush.bf16.msra.mxu1 %v217_v7 }
  0x21   :  { %117 = vmatmul.bf16.vlgmr.msra.gmra.mxu0 %v215_v8  ;;  %122 = vmatmul.bf16.vlgmr.msra.gmra.mxu1 %v216_v9 }
  0x9e   :  { %v118_v10 = vpop.f32.mrf.mxu0  ;;  %v123_v11 = vpop.f32.mrf.mxu1 }
  0x9f   :  { %v147_v17 = vadd.f32 %v253_v12, %v118_v10  ;;  %v149_v18 = vadd.f32 %v253_v12, %v123_v11 }
  0xa1   :  { %v159_v25 = vadd.f32 %v227_v15, %v147_v17  ;;  %v161_v26 = vadd.f32 %v231_v16, %v149_v18 }
  0xa6   :  { %v120_v21 = vpop.f32.mrf.mxu0  ;;  %v125_v22 = vpop.f32.mrf.mxu1 }
  0xa7   :  { %v148_v23 = vadd.f32 %v253_v12, %v120_v21  ;;  %v150_v24 = vadd.f32 %v253_v12, %v125_v22 }
  0xa9   :  { %v160_v27 = vadd.f32 %v228_v19, %v148_v23  ;;  %v162_v28 = vadd.f32 %v232_v20, %v150_v24 }
  0xab   :  { %v236_v29 = vpack.c.bf16 %v160_v27, %v159_v25  ;;  %v241_v30 = vpack.c.bf16 %v162_v28, %v161_v26 }
  0xad   :  { %237 = vst [vmem:[%s328_s4] sm:$0xff] %v236_v29  }
  0xae   :  { %244 = vst [vmem:[%s328_s4 + $0x8] sm:$0xff] %v241_v30  }

// kernel: vlt_forward.38
= control target key start
LH: loop header
LB: loop body
LE: loop exit
PB: predicated region body
PF: predicated region fallthrough
CT: control target
= control target key end

     0   :  { %s914_s12 = smov 0   ;;  %s1069_s0 = inlined_call_operand.vmem [shape: bf16[2,16,384], index: 0, kind: input, shape index: {}]   ;;  %s1070_s1 = inlined_call_operand.vmem [shape: f32[2,1,16], index: 1, kind: input, shape index: {}]   ;;  %s1071_s2 = inlined_call_operand.vmem [shape: bf16[2,16,128], index: 2, kind: output, shape index: {0}]   ;;  %s1072_s3 = inlined_call_operand.vmem [shape: bf16[2,4,16,16], index: 3, kind: output, shape index: {1}]  }
   0x1 LB: > { %s781_s13 = sadd.s32 4294967295, %s884_s12   ;;  %p785_p0 = scmp.ge.s32.totalorder %s884_s12, 1  ;;  %s884_s12 = sphi %s914_s12, %s14_s12  }
   0x2   : > { %p148_p1 = scmp.lt.s32.totalorder %s884_s12, 3 }
   0x4   : > { %p149_p2 = pnand %p785_p0, %p148_p1 }
   0x5   : > { %p180_p3 = scmp.lt.s32.totalorder (!%p149_p2), %s781_s13, 1  ;;  %s886_s18 = smov (!%p149_p2), 120  }
   0x6   : > { %152 = sbr.rel (%p149_p2) target bundleno = 1141 (0x475), region = 28  ;;  %s888_s22 = smov (!%p149_p2), 112  }
   0x7   : > { %s889_s23 = smov (!%p149_p2), 104   ;;  %s891_s28 = smov (!%p149_p2), 8  }
   0x8   : > { %s892_s29 = smov (!%p149_p2), 24   ;;  %s893_s30 = smov (!%p149_p2), 16  }
   0xb   : > { %s1076_s13 = smov (!%p180_p3, %s781_s13), 1  ;;  %vm215_vm0 = vcmask 64512   ;;  %v887_v8 = vmov 0   ;;  %vm243_vm3 = vcmask 130048   ;;  %vm294_vm8 = vcmask 125952  }
   0xc   : > { %s829_s14 = smul.u32 24, %s1076_s13  ;;  %s187_s21 = scalar_lea.vmem %s1070_s1, %s1076_s13 }
   0xd   : > { %v203_v7 = vld [vmem:[%s187_s21] sm:$0x1]  ;;  %s820_s24 = sshll.u32 %s1076_s13, 5  ;;  %s819_s4 = sshll.u32 %s1076_s13, 3 }
   0xe   : > { %s928_s17 = scalar_lea.vmem %s1069_s0, %s829_s14  ;;  %vm204_vm1 = vcmp.ge.f32.partialorder %v203_v7, 0.5  ;;  %s978_s27 = scalar_lea.vmem %s1072_s3, %s820_s24 }
   0xf   : > { %v821_v0 = vld [vmem:[%s928_s17 + $0x4] sm:$0xf]  ;;  %v795_v1 = vld [vmem:[%s928_s17 + $0xc] sm:$0xf0]  ;;  %v793_v4 = vld [vmem:[%s928_s17] sm:$0xf]  ;;  %s192_s7 = scalar_lea.vmem %s1071_s2, %s819_s4 }
  0x10   : > { %v798_v2 = vor.u32 %v821_v0, %v795_v1  ;;  %v822_v5 = vld [vmem:[%s928_s17 + $0x8] sm:$0xf0]  ;;  %v238_v9 = vsel %vm204_vm1, 1, %v887_v8  ;;  %v802_v33 = vld [vmem:[%s928_s17 + $0x8] sm:$0xf] }
  0x11   : > { %v794_v6 = vor.u32 %v822_v5, %v793_v4  ;;  %v239_v10 = vperm.slane %v238_v9, 0  ;;  %v823_v34 = vld [vmem:[%s928_s17 + $0x10] sm:$0xf0] }
  0x12   : > { %v220_v3 = vsel %vm215_vm0, %v798_v2, 0  ;;  %329 = vrot.lane.b32.xlu2 %v798_v2, %s886_s18  ;;  %v965_v35 = vor.u32 %v823_v34, %v802_v33 }
  0x13   : > { %229 = vmatpush.bf16.xpose.msra.mxu0 %v220_v3  ;;  %vm942_vm2 = vcmp.eq.s32.totalorder %v239_v10, 1 }
  0x14   : > { %318 = vmatpush.bf16.msra.mxu1 %v965_v35 }
  0x1a   : > { %799 = vmatmul.msk.bf16.vlgmr.msra.gmra.mxu0 %vm215_vm0, %v794_v6  ;;  %327 = vrot.lane.b32.xlu2 %v794_v6, %s886_s18 }
  0x22   : > { %444 = vrot.lane.b32.xlu2 %v794_v6, %s888_s22 }
  0x2a   : > { %561 = vrot.lane.b32.xlu2 %v794_v6, %s889_s23 }
  0x6c   : > { %v330_v20 = vpop.permute.xlu2 %329 }
  0x6d   : > { %v335_v21 = vsel %vm215_vm0, %v330_v20, 0 }
  0x6e   : > { %344 = vmatpush.bf16.xpose.msra.mxu2 %v335_v21 }
  0x74   : > { %v328_v22 = vpop.permute.xlu2 %327 }
  0x75   : > { %805 = vmatmul.msk.bf16.vlgmr.msra.gmra.mxu2 %vm215_vm0, %v328_v22 }
  0x7c   : > { %v445_v8 = vpop.permute.xlu2 %444 }
  0x97   : > { %v231_v11 = vpop.f32.mrf.mxu0 }
  0x98   : > { %v236_v13 = vmul.f32 0.35355338, %v231_v11 }
  0x9a   : > { %v241_v14 = vsel %vm942_vm2, %v236_v13, -1e+09 }
  0x9b   : > { %v244_v15 = vsel %vm243_vm3, %v241_v14, -inf }
  0x9c   : > { %245 = vmax.xlane.f32.xlu0 %v244_v15 }
  0x9f   : > { %v233_v16 = vpop.f32.mrf.mxu0 }
  0xa0   : > { %v237_v17 = vmul.f32 0.35355338, %v233_v16  ;;  %v562_v16 = vpop.permute.xlu2 %561 }
  0xa2   : > { %v242_v18 = vsel %vm942_vm2, %v237_v17, -1e+09 }
  0xa3   : > { %v247_v19 = vsel %vm243_vm3, %v242_v18, -inf }
  0xa4   : > { %248 = vmax.xlane.f32.xlu0 %v247_v19 }
  0xb8   : > { %446 = vrot.lane.b32.xlu0 %v798_v2, %s888_s22 }
  0xf8   : > { %v346_v39 = vpop.f32.mrf.mxu2 }
  0xf9   : > { %v351_v50 = vmul.f32 0.35355338, %v346_v39 }
  0xfb   : > { %v353_v60 = vsel %vm942_vm2, %v351_v50, -1e+09 }
  0xfc   : > { %v355_v62 = vsel %vm243_vm3, %v353_v60, -inf }
  0xfd   : > { %356 = vmax.xlane.f32.xlu2 %v355_v62 }
 0x100   : > { %v348_v44 = vpop.f32.mrf.mxu2 }
 0x101   : > { %v352_v48 = vmul.f32 0.35355338, %v348_v44 }
 0x103   : > { %v354_v56 = vsel %vm942_vm2, %v352_v48, -1e+09 }
 0x104   : > { %v358_v59 = vsel %vm243_vm3, %v354_v56, -inf }
 0x105   : > { %359 = vmax.xlane.f32.xlu0 %v358_v59 }
 0x10f   : > { %v246_v23 = vpop.xlane.xlu0 %245 }
 0x110   : > { %v250_v24 = vsub.f32 %v241_v14, %v246_v23 }
 0x112   : > { %v252_v25 = vmul.f32 1.442695, %v250_v24 }
 0x114   : > { %846 = vpow2.f32 %v252_v25 }
 0x117   : > { %v249_v26 = vpop.xlane.xlu0 %248 }
 0x118   : > { %v251_v27 = vsub.f32 %v242_v18, %v249_v26 }
 0x11a   : > { %v847_v28 = vpop.eup %846  ;;  %v254_v29 = vmul.f32 1.442695, %v251_v27 }
 0x11b   : > { %v256_v30 = vsel %vm243_vm3, %v847_v28, 0.0 }
 0x11c   : > { %848 = vpow2.f32 %v254_v29  ;;  %257 = vadd.xlane.f32.xlu1 %v256_v30 }
 0x122   : > { %v958_v31 = vpop.eup %848 }
 0x123   : > { %v259_v32 = vsel %vm243_vm3, %v958_v31, 0.0 }
 0x124   : > { %260 = vadd.xlane.f32.xlu1 %v259_v32 }
 0x12a   : > { %v447_v37 = vpop.permute.xlu0 %446 }
 0x12b   : > { %v452_v38 = vsel %vm215_vm0, %v447_v37, 0 }
 0x12c   : > { %461 = vmatpush.bf16.xpose.msrb.mxu1 %v452_v38 }
 0x13d   : > { %563 = vrot.lane.b32.xlu1 %v798_v2, %s889_s23  ;;  %v890_v2 = vmov 0.0  }
 0x13e   : > { %205 = vst [vmem:[#allocation2] sm:$0xff] %v890_v2 }
 0x13f   : > { %206 = vst [vmem:[#allocation2 + $0x8] sm:$0xff] %v890_v2 }
 0x170   : > { %v357_v21 = vpop.xlane.xlu2 %356 }
 0x171   : > { %v361_v25 = vsub.f32 %v353_v60, %v357_v21 }
 0x178   : > { %v360_v17 = vpop.xlane.xlu0 %359 }
 0x179   : > { %v362_v19 = vsub.f32 %v354_v56, %v360_v17 }
 0x17b   : > { %v365_v20 = vmul.f32 1.442695, %v362_v19 }
 0x18f   : > { %v258_v36 = vpop.xlane.xlu1 %257 }
 0x190   : > { %850 = vrcp.f32 %v258_v36  ;;  %v273_v45 = vand.u32 2147483648, %v258_v36  ;;  %v271_v47 = vand.u32 2147483647, %v258_v36  ;;  %vm267_vm5 = vweird.f32 %v258_v36 }
 0x192   : > { %v274_v52 = vor.u32 1.1754944e-38, %v273_v45  ;;  %vm272_vm7 = vcmp.eq.f32.partialorder %v271_v47, 8.507059e+37 }
 0x196   : > { %v851_v40 = vpop.eup %850 }
 0x197   : > { %v263_v41 = vmul.f32 %v851_v40, %v258_v36  ;;  %v261_v42 = vpop.xlane.xlu1 %260  ;;  %vm268_vm4 = vweird.f32 %v851_v40 }
 0x198   : > { %852 = vrcp.f32 %v261_v42  ;;  %vm269_vm6 = vmor %vm267_vm5, %vm268_vm4  ;;  %v287_v61 = vand.u32 2147483648, %v261_v42  ;;  %v285_v0 = vand.u32 2147483647, %v261_v42  ;;  %vm281_vm10 = vweird.f32 %v261_v42 }
 0x199   : > { %v264_v43 = vsub.f32 1.0, %v263_v41  ;;  %854 = vpow2.f32 %v365_v20 }
 0x19a   : > { %v288_v4 = vor.u32 1.1754944e-38, %v287_v61  ;;  %vm286_vm12 = vcmp.eq.f32.partialorder %v285_v0, 8.507059e+37 }
 0x19b   : > { %v265_v46 = vmul.f32 %v851_v40, %v264_v43 }
 0x19d   : > { %v266_v49 = vadd.f32 %v851_v40, %v265_v46 }
 0x19e   : > { %v853_v51 = vpop.eup %852 }
 0x19f   : > { %v277_v53 = vmul.f32 %v853_v51, %v261_v42  ;;  %v270_v54 = vsel %vm269_vm6, %v851_v40, %v266_v49  ;;  %vm282_vm9 = vweird.f32 %v853_v51  ;;  %v855_v29 = vpop.eup %854 }
 0x1a0   : > { %v275_v55 = vsel %vm272_vm7, %v274_v52, %v270_v54  ;;  %vm283_vm11 = vmor %vm281_vm10, %vm282_vm9  ;;  %v370_v32 = vsel %vm243_vm3, %v855_v29, 0.0 }
 0x1a1   : > { %v278_v57 = vsub.f32 1.0, %v277_v53  ;;  %v290_v58 = vmul.f32 %v847_v28, %v275_v55  ;;  %v363_v28 = vmul.f32 1.442695, %v361_v25 }
 0x1a3   : > { %v279_v63 = vmul.f32 %v853_v51, %v278_v57  ;;  %v292_v1 = vpack.c.bf16 %v290_v58, %v290_v58  ;;  %856 = vpow2.f32 %v363_v28 }
 0x1a5   : > { %v280_v3 = vadd.f32 %v853_v51, %v279_v63  ;;  %295 = vst.msk [vmem:[%s978_s27] sm:$0xf] %vm294_vm8, %v292_v1  ;;  %v299_v10 = vunpack.c.l.b16 %v292_v1 }
 0x1a7   : > { %v284_v5 = vsel %vm283_vm11, %v853_v51, %v280_v3 }
 0x1a8   : > { %v289_v6 = vsel %vm286_vm12, %v288_v4, %v284_v5 }
 0x1a9   : > { %v291_v7 = vmul.f32 %v958_v31, %v289_v6  ;;  %v1002_v36 = vpop.eup %856 }
 0x1aa   : > { %v367_v40 = vsel %vm243_vm3, %v1002_v36, 0.0 }
 0x1ab   : > { %v293_v9 = vpack.c.bf16 %v291_v7, %v291_v7 }
 0x1ad   : > { %296 = vst.msk [vmem:[%s978_s27 + $0x4] sm:$0xf] %vm294_vm8, %v293_v9  ;;  %v300_v11 = vunpack.c.l.b16 %v293_v9 }
 0x1af   : > { %v564_v13 = vpop.permute.xlu1 %563  ;;  %v301_v14 = vpack.c.b16 %v300_v11, %v299_v10 }
 0x1b0   : > { %v569_v15 = vsel %vm215_vm0, %v564_v13, 0 }
 0x1b1   : > { %804 = vmatmul.msk.bf16.vlgmr.msra.gmra.mxu1 %vm243_vm3, %v301_v14  ;;  %578 = vmatpush.bf16.xpose.msrb.mxu0 %v569_v15 }
 0x1b8   : > { %813 = vmatmul.msk.bf16.vlgmr.msrb.gmra.mxu0 %vm215_vm0, %v562_v16 }
 0x1c1   : > { %809 = vmatmul.msk.bf16.vlgmr.msrb.gmra.mxu1 %vm215_vm0, %v445_v8 }
 0x22e   : > { %v320_v18 = vpop.f32.mrf.mxu1 }
 0x22f   : > { %325 = vst.msk [vmem:[#allocation2] sm:$0xff] %vm215_vm0, %v320_v18 }
 0x235   : > { %v580_v22 = vpop.f32.mrf.mxu0 }
 0x236   : > { %v585_v23 = vmul.f32 0.35355338, %v580_v22  ;;  %v322_v24 = vpop.f32.mrf.mxu1 }
 0x237   : > { %326 = vst.msk [vmem:[#allocation2 + $0x8] sm:$0xff] %vm215_vm0, %v322_v24 }
 0x238   : > { %v587_v26 = vsel %vm942_vm2, %v585_v23, -1e+09 }
 0x239   : > { %v589_v27 = vsel %vm243_vm3, %v587_v26, -inf }
 0x23a   : > { %590 = vmax.xlane.f32.xlu0 %v589_v27 }
 0x23d   : > { %v582_v39 = vpop.f32.mrf.mxu0 }
 0x23e   : > { %v463_v30 = vpop.f32.mrf.mxu1  ;;  %v586_v43 = vmul.f32 0.35355338, %v582_v39 }
 0x23f   : > { %v468_v31 = vmul.f32 0.35355338, %v463_v30 }
 0x240   : > { %v588_v44 = vsel %vm942_vm2, %v586_v43, -1e+09 }
 0x241   : > { %v998_v33 = vsel %vm942_vm2, %v468_v31, -1e+09  ;;  %v592_v45 = vsel %vm243_vm3, %v588_v44, -inf }
 0x242   : > { %371 = vadd.xlane.f32.xlu0 %v370_v32  ;;  %v472_v34 = vsel %vm243_vm3, %v998_v33, -inf }
 0x243   : > { %473 = vmax.xlane.f32.xlu1 %v472_v34 }
 0x246   : > { %v465_v37 = vpop.f32.mrf.mxu1 }
 0x247   : > { %v469_v38 = vmul.f32 0.35355338, %v465_v37 }
 0x249   : > { %v471_v41 = vsel %vm942_vm2, %v469_v38, -1e+09 }
 0x24a   : > { %v475_v42 = vsel %vm243_vm3, %v471_v41, -inf }
 0x24b   : > { %368 = vadd.xlane.f32.xlu1 %v367_v40  ;;  %476 = vmax.xlane.f32.xlu2 %v475_v42 }
 0x253   : > { %593 = vmax.xlane.f32.xlu2 %v592_v45 }
 0x2ad   : > { %v591_v46 = vpop.xlane.xlu0 %590 }
 0x2ae   : > { %v595_v47 = vsub.f32 %v587_v26, %v591_v46 }
 0x2b0   : > { %v597_v48 = vmul.f32 1.442695, %v595_v47 }
 0x2b2   : > { %858 = vpow2.f32 %v597_v48 }
 0x2b5   : > { %v372_v49 = vpop.xlane.xlu0 %371 }
 0x2b6   : > { %860 = vrcp.f32 %v372_v49  ;;  %v474_v50 = vpop.xlane.xlu1 %473  ;;  %v398_v57 = vand.u32 2147483648, %v372_v49  ;;  %vm392_vm13 = vweird.f32 %v372_v49  ;;  %v396_v60 = vand.u32 2147483647, %v372_v49 }
 0x2b7   : > { %v478_v8 = vsub.f32 %v998_v33, %v474_v50 }
 0x2b8   : > { %v1012_v51 = vpop.eup %858  ;;  %v399_v63 = vor.u32 1.1754944e-38, %v398_v57  ;;  %vm397_vm0 = vcmp.eq.f32.partialorder %v396_v60, 8.507059e+37 }
 0x2b9   : > { %v601_v52 = vsel %vm243_vm3, %v1012_v51, 0.0  ;;  %v480_v18 = vmul.f32 1.442695, %v478_v8 }
 0x2ba   : > { %602 = vadd.xlane.f32.xlu0 %v601_v52 }
 0x2bc   : > { %v861_v53 = vpop.eup %860 }
 0x2bd   : > { %v388_v54 = vmul.f32 %v861_v53, %v372_v49  ;;  %vm393_vm14 = vweird.f32 %v861_v53 }
 0x2be   : > { %v369_v12 = vpop.xlane.xlu1 %368  ;;  %v477_v55 = vpop.xlane.xlu2 %476  ;;  %vm394_vm15 = vmor %vm392_vm13, %vm393_vm14 }
 0x2bf   : > { %v389_v56 = vsub.f32 1.0, %v388_v54  ;;  %862 = vrcp.f32 %v369_v12  ;;  %v479_v58 = vsub.f32 %v471_v41, %v477_v55  ;;  %v384_v9 = vand.u32 2147483648, %v369_v12 }
 0x2c0   : > { %v382_v15 = vand.u32 2147483647, %v369_v12  ;;  %vm378_vm2 = vweird.f32 %v369_v12 }
 0x2c1   : > { %v390_v59 = vmul.f32 %v861_v53, %v389_v56  ;;  %v482_v61 = vmul.f32 1.442695, %v479_v58  ;;  %v385_v19 = vor.u32 1.1754944e-38, %v384_v9 }
 0x2c2   : > { %vm383_vm5 = vcmp.eq.f32.partialorder %v382_v15, 8.507059e+37 }
 0x2c3   : > { %v391_v62 = vadd.f32 %v861_v53, %v390_v59  ;;  %864 = vpow2.f32 %v482_v61 }
 0x2c5   : > { %v863_v0 = vpop.eup %862  ;;  %v395_v1 = vsel %vm394_vm15, %v861_v53, %v391_v62 }
 0x2c6   : > { %v374_v2 = vmul.f32 %v863_v0, %v369_v12  ;;  %v594_v3 = vpop.xlane.xlu2 %593  ;;  %v400_v4 = vsel %vm397_vm0, %v399_v63, %v395_v1  ;;  %vm379_vm1 = vweird.f32 %v863_v0 }
 0x2c7   : > { %v596_v5 = vsub.f32 %v588_v44, %v594_v3  ;;  %v402_v6 = vmul.f32 %v855_v29, %v400_v4  ;;  %vm380_vm4 = vmor %vm378_vm2, %vm379_vm1 }
 0x2c8   : > { %v375_v7 = vsub.f32 1.0, %v374_v2 }
 0x2c9   : > { %v599_v10 = vmul.f32 1.442695, %v596_v5  ;;  %v404_v11 = vpack.c.bf16 %v402_v6, %v402_v6  ;;  %v1017_v13 = vpop.eup %864 }
 0x2ca   : > { %v376_v14 = vmul.f32 %v863_v0, %v375_v7  ;;  %v487_v16 = vsel %vm243_vm3, %v1017_v13, 0.0 }
 0x2cb   : > { %866 = vpow2.f32 %v599_v10  ;;  %807 = vst.msk [vmem:[%s978_s27 + $0xc] sm:$0xf] %vm294_vm8, %v404_v11  ;;  %488 = vadd.xlane.f32.xlu1 %v487_v16  ;;  %v411_v27 = vunpack.c.l.b16 %v404_v11 }
 0x2cc   : > { %v377_v17 = vadd.f32 %v863_v0, %v376_v14  ;;  %868 = vpow2.f32 %v480_v18 }
 0x2ce   : > { %530 = vrot.lane.b32.xlu0 %v965_v35, %s888_s22  ;;  %v381_v20 = vsel %vm380_vm4, %v863_v0, %v377_v17 }
 0x2cf   : > { %v386_v21 = vsel %vm383_vm5, %v385_v19, %v381_v20 }
 0x2d0   : > { %v401_v22 = vmul.f32 %v1002_v36, %v386_v21 }
 0x2d1   : > { %v1026_v23 = vpop.eup %866 }
 0x2d2   : > { %v604_v24 = vsel %vm243_vm3, %v1026_v23, 0.0  ;;  %v403_v25 = vpack.c.bf16 %v401_v22, %v401_v22  ;;  %v1034_v29 = vpop.eup %868 }
 0x2d3   : > { %605 = vadd.xlane.f32.xlu2 %v604_v24  ;;  %v484_v30 = vsel %vm243_vm3, %v1034_v29, 0.0 }
 0x2d4   : > { %806 = vst.msk [vmem:[%s978_s27 + $0x8] sm:$0xf] %vm294_vm8, %v403_v25  ;;  %v410_v26 = vunpack.c.l.b16 %v403_v25 }
 0x2d6   : > { %v1032_v28 = vpack.c.b16 %v411_v27, %v410_v26 }
 0x2db   : > { %485 = vadd.xlane.f32.xlu2 %v484_v30 }
 0x2e4   : > { %413 = vrot.lane.b32.xlu1 %v965_v35, %s886_s18 }
 0x2f3   : > { %647 = vrot.lane.b32.xlu2 %v965_v35, %s889_s23 }
 0x32d   : > { %v603_v31 = vpop.xlane.xlu0 %602 }
 0x32e   : > { %870 = vrcp.f32 %v603_v31  ;;  %v618_v36 = vand.u32 2147483648, %v603_v31  ;;  %v616_v38 = vand.u32 2147483647, %v603_v31  ;;  %vm612_vm7 = vweird.f32 %v603_v31 }
 0x330   : > { %v619_v40 = vor.u32 1.1754944e-38, %v618_v36  ;;  %vm617_vm10 = vcmp.eq.f32.partialorder %v616_v38, 8.507059e+37 }
 0x334   : > { %v871_v32 = vpop.eup %870 }
 0x335   : > { %v608_v33 = vmul.f32 %v871_v32, %v603_v31  ;;  %vm613_vm6 = vweird.f32 %v871_v32 }
 0x336   : > { %vm614_vm9 = vmor %vm612_vm7, %vm613_vm6 }
 0x337   : > { %v609_v34 = vsub.f32 1.0, %v608_v33 }
 0x339   : > { %v610_v37 = vmul.f32 %v871_v32, %v609_v34 }
 0x33b   : > { %v611_v39 = vadd.f32 %v871_v32, %v610_v37 }
 0x33d   : > { %v615_v41 = vsel %vm614_vm9, %v871_v32, %v611_v39  ;;  %vm558_vm9 = vcmask 195712  }
 0x33e   : > { %v620_v42 = vsel %vm617_vm10, %v619_v40, %v615_v41  ;;  %v489_v43 = vpop.xlane.xlu1 %488 }
 0x33f   : > { %v635_v35 = vmul.f32 %v1012_v51, %v620_v42  ;;  %872 = vrcp.f32 %v489_v43  ;;  %v515_v49 = vand.u32 2147483648, %v489_v43  ;;  %v513_v52 = vand.u32 2147483647, %v489_v43 }
 0x340   : > { %vm509_vm12 = vweird.f32 %v489_v43  ;;  %v531_v5 = vpop.permute.xlu0 %530 }
 0x341   : > { %v1043_v44 = vpack.c.bf16 %v635_v35, %v635_v35  ;;  %v516_v51 = vor.u32 1.1754944e-38, %v515_v49  ;;  %vm514_vm14 = vcmp.eq.f32.partialorder %v513_v52, 8.507059e+37 }
 0x343   : > { %814 = vst.msk [vmem:[%s978_s27 + $0x18] sm:$0xf] %vm294_vm8, %v1043_v44  ;;  %v644_v17 = vunpack.c.l.b16 %v1043_v44 }
 0x345   : > { %v873_v45 = vpop.eup %872 }
 0x346   : > { %v606_v46 = vpop.xlane.xlu2 %605  ;;  %v505_v47 = vmul.f32 %v873_v45, %v489_v43  ;;  %vm510_vm11 = vweird.f32 %v873_v45 }
 0x347   : > { %874 = vrcp.f32 %v606_v46  ;;  %vm511_vm13 = vmor %vm509_vm12, %vm510_vm11  ;;  %v632_v59 = vand.u32 2147483648, %v606_v46  ;;  %v630_v62 = vand.u32 2147483647, %v606_v46  ;;  %vm626_vm0 = vweird.f32 %v606_v46 }
 0x348   : > { %v506_v48 = vsub.f32 1.0, %v505_v47 }
 0x349   : > { %v633_v2 = vor.u32 1.1754944e-38, %v632_v59  ;;  %vm631_vm2 = vcmp.eq.f32.partialorder %v630_v62, 8.507059e+37 }
 0x34a   : > { %v507_v50 = vmul.f32 %v873_v45, %v506_v48 }
 0x34c   : > { %v508_v54 = vadd.f32 %v873_v45, %v507_v50 }
 0x34d   : > { %v875_v53 = vpop.eup %874 }
 0x34e   : > { %v622_v12 = vmul.f32 %v875_v53, %v606_v46  ;;  %v486_v55 = vpop.xlane.xlu2 %485  ;;  %v512_v56 = vsel %vm511_vm13, %v873_v45, %v508_v54  ;;  %vm627_vm15 = vweird.f32 %v875_v53 }
 0x34f   : > { %876 = vrcp.f32 %v486_v55  ;;  %v517_v57 = vsel %vm514_vm14, %v516_v51, %v512_v56  ;;  %vm628_vm1 = vmor %vm626_vm0, %vm627_vm15  ;;  %v501_v11 = vand.u32 2147483648, %v486_v55  ;;  %v499_v14 = vand.u32 2147483647, %v486_v55 }
 0x350   : > { %v623_v58 = vsub.f32 1.0, %v622_v12  ;;  %v519_v60 = vmul.f32 %v1017_v13, %v517_v57  ;;  %vm495_vm5 = vweird.f32 %v486_v55 }
 0x351   : > { %v502_v19 = vor.u32 1.1754944e-38, %v501_v11  ;;  %vm500_vm7 = vcmp.eq.f32.partialorder %v499_v14, 8.507059e+37 }
 0x352   : > { %v624_v61 = vmul.f32 %v875_v53, %v623_v58  ;;  %v521_v63 = vpack.c.bf16 %v519_v60, %v519_v60 }
 0x354   : > { %v625_v0 = vadd.f32 %v875_v53, %v624_v61  ;;  %811 = vst.msk [vmem:[%s978_s27 + $0x14] sm:$0xf] %vm294_vm8, %v521_v63  ;;  %v528_v26 = vunpack.c.l.b16 %v521_v63 }
 0x355   : > { %v877_v1 = vpop.eup %876 }
 0x356   : > { %v629_v3 = vsel %vm628_vm1, %v875_v53, %v625_v0  ;;  %v491_v4 = vmul.f32 %v877_v1, %v486_v55  ;;  %v648_v6 = vpop.permute.xlu2 %647  ;;  %v414_v8 = vpop.permute.xlu1 %413  ;;  %vm496_vm4 = vweird.f32 %v877_v1 }
 0x357   : > { %v634_v7 = vsel %vm631_vm2, %v633_v2, %v629_v3  ;;  %660 = vmatpush.bf16.msrb.mxu2 %v648_v6  ;;  %426 = vmatpush.bf16.msra.mxu3 %v414_v8  ;;  %vm497_vm6 = vmor %vm495_vm5, %vm496_vm4 }
 0x358   : > { %v492_v9 = vsub.f32 1.0, %v491_v4  ;;  %v636_v10 = vmul.f32 %v1026_v23, %v634_v7 }
 0x35a   : > { %v493_v13 = vmul.f32 %v877_v1, %v492_v9  ;;  %v638_v15 = vpack.c.bf16 %v636_v10, %v636_v10  ;;  %808 = vmatmul.msk.bf16.vlgmr.msra.gmra.mxu3 %vm243_vm3, %v1032_v28 }
 0x35b   : > { %543 = vmatpush.bf16.msrb.mxu3 %v531_v5 }
 0x35c   : > { %v494_v16 = vadd.f32 %v877_v1, %v493_v13  ;;  %815 = vst.msk [vmem:[%s978_s27 + $0x1c] sm:$0xf] %vm294_vm8, %v638_v15  ;;  %v645_v18 = vunpack.c.l.b16 %v638_v15 }
 0x35e   : > { %v498_v20 = vsel %vm497_vm6, %v877_v1, %v494_v16  ;;  %v646_v21 = vpack.c.b16 %v645_v18, %v644_v17 }
 0x35f   : > { %v503_v22 = vsel %vm500_vm7, %v502_v19, %v498_v20 }
 0x360   : > { %816 = vmatmul.msk.bf16.vlgmr.msrb.gmra.mxu2 %vm243_vm3, %v646_v21  ;;  %v518_v23 = vmul.f32 %v1034_v29, %v503_v22 }
 0x362   : > { %v520_v24 = vpack.c.bf16 %v518_v23, %v518_v23 }
 0x364   : > { %810 = vst.msk [vmem:[%s978_s27 + $0x10] sm:$0xf] %vm294_vm8, %v520_v24  ;;  %v527_v25 = vunpack.c.l.b16 %v520_v24  ;;  %vm441_vm8 = vcmask 130112  }
 0x366   : > { %v529_v27 = vpack.c.b16 %v528_v26, %v527_v25 }
 0x36a   : > { %812 = vmatmul.msk.bf16.vlgmr.msrb.gmra.mxu3 %vm243_vm3, %v529_v27  ;;  %vm675_vm3 = vcmask 261312  }
 0x3dd   : > { %v428_v28 = vpop.f32.mrf.mxu3 }
 0x3de   : > { %435 = vrot.lane.b32.xlu0 %v428_v28, %s891_s28 }
 0x3e3   : > { %v662_v31 = vpop.f32.mrf.mxu2 }
 0x3e5   : > { %v430_v30 = vpop.f32.mrf.mxu3 }
 0x3e6   : > { %437 = vrot.lane.b32.xlu1 %v430_v30, %s891_s28 }
 0x3eb   : > { %v664_v29 = vpop.f32.mrf.mxu2 }
 0x3ed   : > { %v545_v32 = vpop.f32.mrf.mxu3 }
 0x3ee   : > { %669 = vrot.lane.b32.xlu1 %v662_v31, %s892_s29  ;;  %552 = vrot.lane.b32.xlu2 %v545_v32, %s893_s30 }
 0x3f5   : > { %v547_v33 = vpop.f32.mrf.mxu3 }
 0x3f6   : > { %671 = vrot.lane.b32.xlu2 %v664_v29, %s892_s29  ;;  %554 = vrot.lane.b32.xlu0 %v547_v33, %s893_s30 }
 0x448   : > { %v553_v36 = vpop.permute.xlu2 %552 }
 0x450   : > { %v436_v34 = vpop.permute.xlu0 %435  ;;  %v672_v40 = vpop.permute.xlu2 %671 }
 0x451   : > { %442 = vst.msk [vmem:[#allocation2] sm:$0xff] %vm441_vm8, %v436_v34 }
 0x452   : > { %559 = vst.msk [vmem:[#allocation2] sm:$0xff] %vm558_vm9, %v553_v36 }
 0x458   : > { %v438_v37 = vpop.permute.xlu1 %437 }
 0x459   : > { %443 = vst.msk [vmem:[#allocation2 + $0x8] sm:$0xff] %vm441_vm8, %v438_v37 }
 0x460   : > { %v670_v38 = vpop.permute.xlu1 %669 }
 0x461   : > { %676 = vst.msk [vmem:[#allocation2] sm:$0xff] %vm675_vm3, %v670_v38 }
 0x468   : > { %v555_v39 = vpop.permute.xlu0 %554  ;;  %v678_v41 = vld [vmem:[#allocation2] sm:$0xff] }
 0x469   : > { %560 = vst.msk [vmem:[#allocation2 + $0x8] sm:$0xff] %vm558_vm9, %v555_v39 }
 0x46a   : > { %677 = vst.msk [vmem:[#allocation2 + $0x8] sm:$0xff] %vm675_vm3, %v672_v40 }
 0x471   : > { %v679_v42 = vld [vmem:[#allocation2 + $0x8] sm:$0xff] }
 0x472   : > { %v827_v43 = vpack.c.bf16 %v679_v42, %v678_v41 }
 0x474   : > { %828 = vst [vmem:[%s192_s7] sm:$0xff] %v827_v43  }
 0x475 PF: > { %s14_s12 = sadd.s32 1, %s884_s12  }
 0x476   : > { %p11_p4 = scmp.ge.s32.totalorder %s14_s12, 4  }
 0x478   :  { %13 = sbr.rel (!%p11_p4) target bundleno = 1 (0x1), region = 76 }

// kernel: vlt_forward.40
= control target key start
LH: loop header
LB: loop body
LE: loop exit
PB: predicated region body
PF: predicated region fallthrough
CT: control target
= control target key end

     0   :  { %v48_v6 = vlaneseq  ;;  %s457_s0 = inlined_call_operand.vmem [shape: bf16[32,128], index: 0, kind: input, shape index: {}]   ;;  %s458_s1 = inlined_call_operand.vmem [shape: f32[1,128], index: 1, kind: input, shape index: {}]   ;;  %s459_s2 = inlined_call_operand.vmem [shape: f32[1,128], index: 2, kind: input, shape index: {}]   ;;  %s460_s4 = inlined_call_operand.vmem [shape: f32[1,128], index: 4, kind: input, shape index: {}]   ;;  %s461_s3 = inlined_call_operand.vmem [shape: bf16[128,128], index: 3, kind: input, shape index: {}]   ;;  %s462_s5 = inlined_call_operand.vmem [shape: bf16[32,128], index: 5, kind: output, shape index: {}]  }
   0x1   :  { %v340_v0 = vld [vmem:[%s457_s0 + $0x8] sm:$0xff]   ;;  %v313_v1 = vld [vmem:[%s457_s0] sm:$0xff]   ;;  %v311_v28 = vld [vmem:[%s461_s3 + $0x38] sm:$0xff] }
   0x2   :  { %v318_v2 = vunpack.c.l.bf16 %v340_v0  ;;  %v314_v3 = vunpack.c.l.bf16 %v313_v1  ;;  %v319_v4 = vunpack.c.h.bf16 %v340_v0  ;;  %v315_v5 = vunpack.c.h.bf16 %v313_v1  ;;  %227 = vmatpush.bf16.msra.mxu0 %v311_v28  ;;  %343 = vmatpush.bf16.msra.mxu1 %v311_v28  ;;  %v310_v29 = vld [vmem:[%s461_s3 + $0x30] sm:$0xff]  ;;  %v309_v30 = vld [vmem:[%s461_s3 + $0x28] sm:$0xff]  ;;  %v308_v31 = vld [vmem:[%s461_s3 + $0x20] sm:$0xff] }
   0x3   :  { %v49_v7 = vand.u32 127, %v48_v6  ;;  %v307_v34 = vld [vmem:[%s461_s3 + $0x18] sm:$0xff]  ;;  %v306_v39 = vld [vmem:[%s461_s3 + $0x10] sm:$0xff]  ;;  %v305_v42 = vld [vmem:[%s461_s3 + $0x8] sm:$0xff] }
   0x4   :  { %36 = vadd.xlane.f32.xlu1 %v318_v2  ;;  %32 = vadd.xlane.f32.xlu0 %v314_v3  ;;  %v304_v45 = vld [vmem:[%s461_s3] sm:$0xff] }
   0x5   :  { %vm50_vm0 = vcmp.lt.s32.totalorder %v49_v7, 32  ;;  %v351_v7 = vld [vmem:[%s458_s1] ss:$0 sm:$0xff] }
   0x6   :  { %228 = vmatpush.bf16.msra.mxu0 %v310_v29  ;;  %344 = vmatpush.bf16.msra.mxu1 %v310_v29 }
   0xa   :  { %229 = vmatpush.bf16.msra.mxu0 %v309_v30  ;;  %345 = vmatpush.bf16.msra.mxu1 %v309_v30 }
   0xc   :  { %38 = vadd.xlane.f32.xlu1 %v319_v4  ;;  %34 = vadd.xlane.f32.xlu0 %v315_v5 }
   0xe   :  { %230 = vmatpush.bf16.msra.mxu0 %v308_v31  ;;  %346 = vmatpush.bf16.msra.mxu1 %v308_v31 }
  0x12   :  { %231 = vmatpush.bf16.msra.mxu0 %v307_v34  ;;  %347 = vmatpush.bf16.msra.mxu1 %v307_v34 }
  0x16   :  { %232 = vmatpush.bf16.msra.mxu0 %v306_v39  ;;  %348 = vmatpush.bf16.msra.mxu1 %v306_v39 }
  0x1a   :  { %233 = vmatpush.bf16.msra.mxu0 %v305_v42  ;;  %349 = vmatpush.bf16.msra.mxu1 %v305_v42 }
  0x1e   :  { %234 = vmatpush.bf16.msra.mxu0 %v304_v45  ;;  %350 = vmatpush.bf16.msra.mxu1 %v304_v45 }
  0x77   :  { %v37_v8 = vpop.xlane.xlu1 %36  ;;  %v33_v9 = vpop.xlane.xlu0 %32 }
  0x78   :  { %v42_v10 = vmul.f32 0.03125, %v37_v8  ;;  %v40_v11 = vmul.f32 0.03125, %v33_v9 }
  0x7a   :  { %v398_v12 = vsub.f32 %v318_v2, %v42_v10  ;;  %v400_v13 = vsub.f32 %v314_v3, %v40_v11 }
  0x7c   :  { %v53_v14 = vsel %vm50_vm0, %v398_v12, 0.0  ;;  %v51_v15 = vsel %vm50_vm0, %v400_v13, 0.0 }
  0x7d   :  { %v57_v16 = vmul.f32 %v53_v14, %v53_v14  ;;  %v55_v17 = vmul.f32 %v51_v15, %v51_v15 }
  0x7f   :  { %v39_v18 = vpop.xlane.xlu1 %38  ;;  %63 = vadd.xlane.f32.xlu0 %v57_v16  ;;  %59 = vadd.xlane.f32.xlu2 %v55_v17  ;;  %v35_v19 = vpop.xlane.xlu0 %34  ;;  %v352_v16 = vld [vmem:[%s459_s2] ss:$0 sm:$0xff] }
  0x80   :  { %v43_v20 = vmul.f32 0.03125, %v39_v18  ;;  %v41_v21 = vmul.f32 0.03125, %v35_v19 }
  0x82   :  { %v406_v22 = vsub.f32 %v319_v4, %v43_v20  ;;  %v408_v23 = vsub.f32 %v315_v5, %v41_v21 }
  0x84   :  { %v54_v24 = vsel %vm50_vm0, %v406_v22, 0.0  ;;  %v52_v25 = vsel %vm50_vm0, %v408_v23, 0.0 }
  0x85   :  { %v58_v26 = vmul.f32 %v54_v24, %v54_v24  ;;  %v56_v27 = vmul.f32 %v52_v25, %v52_v25 }
  0x87   :  { %65 = vadd.xlane.f32.xlu1 %v58_v26  ;;  %61 = vadd.xlane.f32.xlu2 %v56_v27 }
  0xf2   :  { %v60_v32 = vpop.xlane.xlu2 %59  ;;  %v64_v33 = vpop.xlane.xlu0 %63 }
  0xf3   :  { %v67_v35 = vmul.f32 0.03125, %v60_v32  ;;  %v69_v36 = vmul.f32 0.03125, %v64_v33 }
  0xf5   :  { %v71_v37 = vadd.f32 1e-05, %v67_v35  ;;  %v73_v38 = vadd.f32 1e-05, %v69_v36 }
  0xf7   :  { %354 = vrsqrt.f32 %v71_v37  ;;  %vm101_vm3 = vweird.f32 %v73_v38  ;;  %vm81_vm4 = vweird.f32 %v71_v37 }
  0xf8   :  { %356 = vrsqrt.f32 %v73_v38 }
  0xfa   :  { %v66_v40 = vpop.xlane.xlu1 %65  ;;  %v62_v41 = vpop.xlane.xlu2 %61 }
  0xfb   :  { %v70_v43 = vmul.f32 0.03125, %v66_v40  ;;  %v68_v44 = vmul.f32 0.03125, %v62_v41 }
  0xfd   :  { %v355_v46 = vpop.eup %354  ;;  %v74_v47 = vadd.f32 1e-05, %v70_v43  ;;  %v72_v48 = vadd.f32 1e-05, %v68_v44 }
  0xfe   :  { %v357_v49 = vpop.eup %356  ;;  %v76_v50 = vmul.f32 %v355_v46, %v71_v37  ;;  %vm82_vm2 = vweird.f32 %v355_v46 }
  0xff   :  { %v96_v51 = vmul.f32 %v357_v49, %v73_v38  ;;  %358 = vrsqrt.f32 %v74_v47  ;;  %vm102_vm1 = vweird.f32 %v357_v49  ;;  %vm83_vm6 = vmor %vm81_vm4, %vm82_vm2  ;;  %vm111_vm9 = vweird.f32 %v74_v47 }
 0x100   :  { %v77_v52 = vmul.f32 %v355_v46, %v76_v50  ;;  %360 = vrsqrt.f32 %v72_v48  ;;  %vm103_vm5 = vmor %vm101_vm3, %vm102_vm1  ;;  %vm91_vm11 = vweird.f32 %v72_v48 }
 0x101   :  { %v97_v53 = vmul.f32 %v357_v49, %v96_v51 }
 0x102   :  { %v78_v54 = vmul.f32 0.5, %v77_v52 }
 0x103   :  { %v98_v55 = vmul.f32 0.5, %v97_v53 }
 0x104   :  { %v79_v56 = vsub.f32 1.5, %v78_v54 }
 0x105   :  { %v359_v57 = vpop.eup %358  ;;  %v99_v58 = vsub.f32 1.5, %v98_v55 }
 0x106   :  { %v361_v59 = vpop.eup %360  ;;  %v106_v60 = vmul.f32 %v359_v57, %v74_v47  ;;  %v80_v61 = vmul.f32 %v355_v46, %v79_v56  ;;  %vm112_vm7 = vweird.f32 %v359_v57 }
 0x107   :  { %v100_v62 = vmul.f32 %v357_v49, %v99_v58  ;;  %v86_v63 = vmul.f32 %v361_v59, %v72_v48  ;;  %vm92_vm8 = vweird.f32 %v361_v59  ;;  %vm113_vm10 = vmor %vm111_vm9, %vm112_vm7 }
 0x108   :  { %v107_v0 = vmul.f32 %v359_v57, %v106_v60  ;;  %v84_v4 = vsel %vm83_vm6, %v355_v46, %v80_v61  ;;  %vm93_vm12 = vmor %vm91_vm11, %vm92_vm8 }
 0x109   :  { %v87_v1 = vmul.f32 %v361_v59, %v86_v63  ;;  %v104_v2 = vsel %vm103_vm5, %v357_v49, %v100_v62  ;;  %v115_v10 = vmul.f32 %v84_v4, %v400_v13 }
 0x10a   :  { %v108_v3 = vmul.f32 0.5, %v107_v0  ;;  %v117_v8 = vmul.f32 %v104_v2, %v398_v12 }
 0x10b   :  { %v88_v5 = vmul.f32 0.5, %v87_v1  ;;  %v123_v12 = vmul.f32 %v351_v7, %v115_v10 }
 0x10c   :  { %v109_v6 = vsub.f32 1.5, %v108_v3  ;;  %v125_v17 = vmul.f32 %v351_v7, %v117_v8 }
 0x10d   :  { %v89_v9 = vsub.f32 1.5, %v88_v5  ;;  %v131_v26 = vadd.f32 %v352_v16, %v123_v12 }
 0x10e   :  { %v110_v11 = vmul.f32 %v359_v57, %v109_v6  ;;  %v133_v24 = vadd.f32 %v352_v16, %v125_v17 }
 0x10f   :  { %v90_v14 = vmul.f32 %v361_v59, %v89_v9 }
 0x110   :  { %v114_v15 = vsel %vm113_vm10, %v359_v57, %v110_v11 }
 0x111   :  { %v118_v18 = vmul.f32 %v114_v15, %v406_v22  ;;  %v94_v19 = vsel %vm93_vm12, %v361_v59, %v90_v14 }
 0x112   :  { %v116_v20 = vmul.f32 %v94_v19, %v408_v23  ;;  %v353_v23 = vld [vmem:[%s460_s4] ss:$0 sm:$0xff] }
 0x113   :  { %v126_v21 = vmul.f32 %v351_v7, %v118_v18 }
 0x114   :  { %v124_v13 = vmul.f32 %v351_v7, %v116_v20 }
 0x115   :  { %v134_v25 = vadd.f32 %v352_v16, %v126_v21 }
 0x116   :  { %v132_v27 = vadd.f32 %v352_v16, %v124_v13 }
 0x117   :  { %v328_v28 = vpack.c.bf16 %v134_v25, %v133_v24 }
 0x118   :  { %v323_v29 = vpack.c.bf16 %v132_v27, %v131_v26 }
 0x119   :  { %341 = vst [vmem:[#allocation2 + $0x8] sm:$0xff] %v328_v28  }
 0x11a   :  { %324 = vst [vmem:[#allocation2] sm:$0xff] %v323_v29  }
 0x120   :  { %v303_v30 = vld [vmem:[#allocation2 + $0x8] sm:$0xff] }
 0x121   :  { %v302_v31 = vld [vmem:[#allocation2] sm:$0xff]  ;;  %240 = vmatmul.bf16.vlgmr.msra.gmra.mxu1 %v303_v30 }
 0x122   :  { %235 = vmatmul.bf16.vlgmr.msra.gmra.mxu0 %v302_v31 }
 0x19e   :  { %v241_v32 = vpop.f32.mrf.mxu1 }
 0x19f   :  { %v236_v22 = vpop.f32.mrf.mxu0  ;;  %v242_v33 = vadd.f32 %v353_v23, %v241_v32 }
 0x1a0   :  { %v237_v34 = vadd.f32 %v353_v23, %v236_v22 }
 0x1a1   :  { %v248_v39 = vmax.f32 %v242_v33, 0.0 }
 0x1a2   :  { %v246_v41 = vmax.f32 %v237_v34, 0.0 }
 0x1a6   :  { %v243_v35 = vpop.f32.mrf.mxu1 }
 0x1a7   :  { %v238_v36 = vpop.f32.mrf.mxu0  ;;  %v244_v37 = vadd.f32 %v353_v23, %v243_v35 }
 0x1a8   :  { %v239_v38 = vadd.f32 %v353_v23, %v238_v36 }
 0x1a9   :  { %v249_v40 = vmax.f32 %v244_v37, 0.0 }
 0x1aa   :  { %v247_v42 = vmax.f32 %v239_v38, 0.0 }
 0x1ab   :  { %v338_v43 = vpack.c.bf16 %v249_v40, %v248_v39 }
 0x1ac   :  { %v333_v44 = vpack.c.bf16 %v247_v42, %v246_v41 }
 0x1ad   :  { %342 = vst [vmem:[%s462_s5 + $0x8] sm:$0xff] %v338_v43  }
 0x1ae   :  { %334 = vst [vmem:[%s462_s5] sm:$0xff] %v333_v44  }

// kernel: vlt_forward.47
= control target key start
LH: loop header
LB: loop body
LE: loop exit
PB: predicated region body
PF: predicated region fallthrough
CT: control target
= control target key end

     0   :  { %s529_s1 = inlined_call_operand.vmem [shape: bf16[128,128], index: 1, kind: input, shape index: {}]   ;;  %s530_s3 = inlined_call_operand.vmem [shape: bf16[128,128], index: 3, kind: input, shape index: {}]   ;;  %s531_s2 = inlined_call_operand.vmem [shape: f32[1,128], index: 2, kind: input, shape index: {}]   ;;  %s532_s0 = inlined_call_operand.vmem [shape: bf16[8,128], index: 0, kind: input, shape index: {}]   ;;  %s533_s4 = inlined_call_operand.vmem [shape: f32[1,128], index: 4, kind: input, shape index: {}]   ;;  %s534_s5 = inlined_call_operand.vmem [shape: bf16[128,128], index: 5, kind: input, shape index: {}]   ;;  %s535_s6 = inlined_call_operand.vmem [shape: f32[1,128], index: 6, kind: input, shape index: {}]   ;;  %s536_s7 = inlined_call_operand.vmem [shape: f32[8,128], index: 7, kind: output, shape index: {}]  }
   0x1   :  { %v382_v0 = vld [vmem:[%s529_s1 + $0x38] sm:$0xff]  ;;  %v381_v1 = vld [vmem:[%s529_s1 + $0x30] sm:$0xff]  ;;  %v380_v4 = vld [vmem:[%s529_s1 + $0x28] sm:$0xff] }
   0x2   :  { %95 = vmatpush.bf16.msra.mxu0 %v382_v0  ;;  %v390_v2 = vld [vmem:[%s530_s3 + $0x38] sm:$0xff]  ;;  %v389_v3 = vld [vmem:[%s530_s3 + $0x30] sm:$0xff]  ;;  %v388_v5 = vld [vmem:[%s530_s3 + $0x28] sm:$0xff] }
   0x3   :  { %178 = vmatpush.bf16.msra.mxu1 %v390_v2  ;;  %v379_v6 = vld [vmem:[%s529_s1 + $0x20] sm:$0xff]  ;;  %v378_v8 = vld [vmem:[%s529_s1 + $0x18] sm:$0xff]  ;;  %v377_v10 = vld [vmem:[%s529_s1 + $0x10] sm:$0xff] }
   0x4   :  { %v387_v7 = vld [vmem:[%s530_s3 + $0x20] sm:$0xff]  ;;  %v386_v9 = vld [vmem:[%s530_s3 + $0x18] sm:$0xff]  ;;  %v385_v11 = vld [vmem:[%s530_s3 + $0x10] sm:$0xff] }
   0x5   :  { %v376_v12 = vld [vmem:[%s529_s1 + $0x8] sm:$0xff]  ;;  %v375_v13 = vld [vmem:[%s529_s1] sm:$0xff]  ;;  %v398_v17 = vld [vmem:[%s534_s5 + $0x38] sm:$0xff] }
   0x6   :  { %96 = vmatpush.bf16.msra.mxu0 %v381_v1  ;;  %v26_v14 = vld [vmem:[%s532_s0] sm:$0xf]  ;;  %v384_v15 = vld [vmem:[%s530_s3 + $0x8] sm:$0xff]  ;;  %261 = vmatpush.bf16.msra.mxu2 %v398_v17  ;;  %v397_v18 = vld [vmem:[%s534_s5 + $0x30] sm:$0xff] }
   0x7   :  { %179 = vmatpush.bf16.msra.mxu1 %v389_v3  ;;  %v383_v16 = vld [vmem:[%s530_s3] sm:$0xff]  ;;  %v396_v19 = vld [vmem:[%s534_s5 + $0x28] sm:$0xff]  ;;  %v394_v21 = vld [vmem:[%s534_s5 + $0x18] sm:$0xff] }
   0x8   :  { %v395_v20 = vld [vmem:[%s534_s5 + $0x20] sm:$0xff]  ;;  %v393_v22 = vld [vmem:[%s534_s5 + $0x10] sm:$0xff]  ;;  %v392_v29 = vld [vmem:[%s534_s5 + $0x8] sm:$0xff] }
   0x9   :  { %v399_v23 = vld [vmem:[%s531_s2] ss:$0 sm:$0xff] }
   0xa   :  { %97 = vmatpush.bf16.msra.mxu0 %v380_v4  ;;  %262 = vmatpush.bf16.msra.mxu2 %v397_v18  ;;  %v391_v30 = vld [vmem:[%s534_s5] sm:$0xff] }
   0xb   :  { %180 = vmatpush.bf16.msra.mxu1 %v388_v5  ;;  %v400_v31 = vld [vmem:[%s533_s4] ss:$0 sm:$0xff] }
   0xc   :  { %v401_v37 = vld [vmem:[%s535_s6] ss:$0 sm:$0xff] }
   0xe   :  { %98 = vmatpush.bf16.msra.mxu0 %v379_v6  ;;  %263 = vmatpush.bf16.msra.mxu2 %v396_v19 }
   0xf   :  { %181 = vmatpush.bf16.msra.mxu1 %v387_v7 }
  0x12   :  { %99 = vmatpush.bf16.msra.mxu0 %v378_v8  ;;  %264 = vmatpush.bf16.msra.mxu2 %v395_v20 }
  0x13   :  { %182 = vmatpush.bf16.msra.mxu1 %v386_v9 }
  0x16   :  { %100 = vmatpush.bf16.msra.mxu0 %v377_v10  ;;  %265 = vmatpush.bf16.msra.mxu2 %v394_v21 }
  0x17   :  { %183 = vmatpush.bf16.msra.mxu1 %v385_v11 }
  0x1a   :  { %101 = vmatpush.bf16.msra.mxu0 %v376_v12  ;;  %266 = vmatpush.bf16.msra.mxu2 %v393_v22 }
  0x1b   :  { %184 = vmatpush.bf16.msra.mxu1 %v384_v15 }
  0x1e   :  { %102 = vmatpush.bf16.msra.mxu0 %v375_v13  ;;  %267 = vmatpush.bf16.msra.mxu2 %v392_v29 }
  0x1f   :  { %185 = vmatpush.bf16.msra.mxu1 %v383_v16 }
  0x21   :  { %103 = vmatmul.bf16.vlgmr.msra.gmra.mxu0 %v26_v14 }
  0x22   :  { %268 = vmatpush.bf16.msra.mxu2 %v391_v30 }
  0x9e   :  { %v104_v24 = vpop.f32.mrf.mxu0 }
  0x9f   :  { %v105_v25 = vadd.f32 %v399_v23, %v104_v24 }
  0xa1   :  { %v108_v26 = vmax.f32 %v105_v25, 0.0 }
  0xa3   :  { %v109_v27 = vpack.c.bf16 %v108_v26, %v108_v26 }
  0xa5   :  { %186 = vmatmul.bf16.vlgmr.msra.gmra.mxu1 %v109_v27 }
  0xa6   :  { %v106_v28 = vpop.f32.mrf.mxu0 }
 0x122   :  { %v187_v32 = vpop.f32.mrf.mxu1 }
 0x123   :  { %v188_v33 = vadd.f32 %v400_v31, %v187_v32 }
 0x125   :  { %v191_v34 = vmax.f32 %v188_v33, 0.0 }
 0x127   :  { %v192_v35 = vpack.c.bf16 %v191_v34, %v191_v34 }
 0x129   :  { %269 = vmatmul.bf16.vlgmr.msra.gmra.mxu2 %v192_v35 }
 0x12a   :  { %v189_v36 = vpop.f32.mrf.mxu1 }
 0x1ac   :  { %v270_v38 = vpop.f32.mrf.mxu2 }
 0x1ad   :  { %v271_v39 = vadd.f32 %v401_v37, %v270_v38 }
 0x1af   :  { %274 = vst [vmem:[%s536_s7] sm:$0xff] %v271_v39 }
 0x1b4   :  { %v272_v40 = vpop.f32.mrf.mxu2 }

</bundles_post_ra>
